<compile_context>
chip_gen: v5e
topology: v5e:2x2
jax: 0.10.0
libtpu: 0.0.40
codegen_flags: <defaults>
</compile_context>

<pallas_src>
import functools
import math

import numpy as np
import jax
import jax.numpy as jnp
from jax.experimental import pallas as pl
from jax.experimental.pallas import tpu as pltpu

LN_EPS = 1e-6               # torchvision ViT uses LayerNorm(eps=1e-6)
_MM_DTYPE = jnp.bfloat16    # MXU operand dtype (accumulate in f32)
_NEG_INF = -1e30            # block-diagonal attention mask value


def _fullspec(shape):
    zeros = (0,) * len(shape)
    return pl.BlockSpec(shape, lambda i, _z=zeros: _z)


# ------------------------- the single fused kernel ---------------------------

def _vit_fused_kernel(
    patches_ref, conv_w_ref, conv_b_ref,
    expand_ref, base_ref, bias_ref, cls_sel_ref,
    ln1_g_ref, ln1_b_ref,
    q_w_ref, q_b_ref, k_w_ref, k_b_ref, v_w_ref, v_b_ref,
    o_w_ref, o_b_ref,
    ln2_g_ref, ln2_b_ref,
    mlp_w1_ref, mlp_b1_ref, mlp_w2_ref, mlp_b2_ref,
    lnf_g_ref, lnf_b_ref,
    out_ref,
    *, num_layers, num_heads, head_dim):
    """Whole ViT-body forward on flat (B*S, H) activations, fully in VMEM."""
    f32 = jnp.float32
    inv_sqrt2 = 1.0 / math.sqrt(2.0)
    scale = 1.0 / math.sqrt(head_dim)

    def mm(a, b):
        # bf16 operands on the MXU, f32 accumulation.
        return jnp.dot(a.astype(_MM_DTYPE), b.astype(_MM_DTYPE),
                       preferred_element_type=f32)

    def layernorm(t, g, b):
        mu = jnp.mean(t, axis=-1, keepdims=True)
        var = jnp.mean(jnp.square(t - mu), axis=-1, keepdims=True)
        return (t - mu) * jax.lax.rsqrt(var + LN_EPS) * g + b

    # Patch embedding + [CLS] + positional embedding expressed as dense matmuls
    # (no in-kernel concat / scatter / reshape -> no layout-hostile movement).
    tokens = mm(patches_ref[...], conv_w_ref[...]) + conv_b_ref[...]     # (B*np, H)
    x = mm(expand_ref[...], tokens) + base_ref[...]                      # (B*S, H)

    bias = bias_ref[...]                                                 # (B*S, B*S)

    for l in range(num_layers):
        # ---- multi-head self-attention block (pre-LN) ----
        y = layernorm(x, ln1_g_ref[l], ln1_b_ref[l])
        attn = None
        for h in range(num_heads):
            i = l * num_heads + h
            q = mm(y, q_w_ref[i]) + q_b_ref[i]                           # (B*S, Dh)
            k = mm(y, k_w_ref[i]) + k_b_ref[i]
            v = mm(y, v_w_ref[i]) + v_b_ref[i]
            s = jax.lax.dot_general(                                     # q @ k^T
                q.astype(_MM_DTYPE), k.astype(_MM_DTYPE),
                (((1,), (1,)), ((), ())), preferred_element_type=f32)
            s = s * scale + bias                                         # block-diag mask
            s = s - jnp.max(s, axis=-1, keepdims=True)
            p = jnp.exp(s)
            p = p * pl.reciprocal(jnp.sum(p, axis=-1, keepdims=True), approx=True)
            head_out = mm(p, v)                                          # (B*S, Dh)
            contrib = mm(head_out, o_w_ref[i])                           # (B*S, H)
            attn = contrib if attn is None else attn + contrib
        x = x + attn + o_b_ref[l]                                        # residual

        # ---- MLP block (pre-LN, exact erf GELU) ----
        y2 = layernorm(x, ln2_g_ref[l], ln2_b_ref[l])
        h1 = mm(y2, mlp_w1_ref[l]) + mlp_b1_ref[l]
        h1 = 0.5 * h1 * (1.0 + jax.lax.erf(h1 * inv_sqrt2))
        x = x + mm(h1, mlp_w2_ref[l]) + mlp_b2_ref[l]                    # residual

    # Final LayerNorm only on the CLS rows (row selection done with a tiny matmul,
    # commutes with per-row LN); single lane-dense (B, H) output write.
    cls = jnp.dot(cls_sel_ref[...], x, preferred_element_type=f32)       # (B, H)
    out_ref[...] = layernorm(cls, lnf_g_ref[...], lnf_b_ref[...]).astype(out_ref.dtype)


# ------------------------- host-side glue / packing --------------------------

def _pack_params(params, num_heads):
    """Stack per-layer weights; split QKV / out-proj into per-(layer,head) slabs
    so the kernel only ever indexes leading ref axes (no lane slicing)."""
    layers = params["layers"]
    L = len(layers)
    hidden = params["conv_b"].shape[0]
    Dh = hidden // num_heads

    def stack(name):
        return jnp.stack([lp[name] for lp in layers], axis=0)

    in_w = stack("in_proj_w")                                   # (L, H, 3H), cols [q|k|v]
    in_b = stack("in_proj_b")                                   # (L, 3H)

    def w_heads(which):                                         # 0=q, 1=k, 2=v
        blk = in_w[:, :, which * hidden:(which + 1) * hidden]   # (L, H, H)
        blk = blk.reshape(L, hidden, num_heads, Dh).transpose(0, 2, 1, 3)
        return blk.reshape(L * num_heads, hidden, Dh)

    def b_heads(which):
        blk = in_b[:, which * hidden:(which + 1) * hidden]      # (L, H)
        return blk.reshape(L * num_heads, 1, Dh)

    packed = dict(
        ln1_g=stack("ln1_g").reshape(L, 1, hidden),
        ln1_b=stack("ln1_b").reshape(L, 1, hidden),
        q_w=w_heads(0), q_b=b_heads(0),
        k_w=w_heads(1), k_b=b_heads(1),
        v_w=w_heads(2), v_b=b_heads(2),
        o_w=stack("out_proj_w").reshape(L * num_heads, Dh, hidden),
        o_b=stack("out_proj_b").reshape(L, 1, hidden),
        ln2_g=stack("ln2_g").reshape(L, 1, hidden),
        ln2_b=stack("ln2_b").reshape(L, 1, hidden),
        mlp_w1=stack("mlp_w1"),
        mlp_b1=stack("mlp_b1").reshape(L, 1, -1),
        mlp_w2=stack("mlp_w2"),
        mlp_b2=stack("mlp_b2").reshape(L, 1, hidden),
    )
    return packed, L, Dh


def transformer_vision_encoder_forward(params, x, *, patch_size, num_heads):
    """features = vision_model(x) with heads = Identity (CLS-token features)."""
    B, C, Himg, Wimg = x.shape
    P = patch_size
    nh, nw = Himg // P, Wimg // P
    n_patch = nh * nw
    hidden = params["conv_b"].shape[0]
    S = n_patch + 1
    BS = B * S

    # Conv2d(C, hidden, kernel=P, stride=P) == patchify + matmul.
    # TODO(synk): at 224x224 move this NCHW patch-gather into the kernel via a
    # BlockSpec index_map (or one NHWC pre-permute); it is negligible at 64x64.
    patches = (x.reshape(B, C, nh, P, nw, P)
                 .transpose(0, 2, 4, 1, 3, 5)
                 .reshape(B * n_patch, C * P * P))

    # Static (trace-time) helper matrices.
    rows = np.arange(BS)
    b_idx, s_idx = rows // S, rows % S
    expand = np.zeros((BS, B * n_patch), np.float32)     # scatter patch tokens to flat rows
    m = s_idx > 0
    expand[rows[m], b_idx[m] * n_patch + (s_idx[m] - 1)] = 1.0
    attn_bias = np.where(b_idx[:, None] == b_idx[None, :], 0.0, _NEG_INF).astype(np.float32)
    cls_sel = np.zeros((B, BS), np.float32)              # pick row b*S for each batch
    cls_sel[np.arange(B), np.arange(B) * S] = 1.0

    pos = params["pos_embedding"][0]                     # (S, H)
    cls_tok = params["class_token"][0]                   # (1, H)
    base = jnp.tile(jnp.concatenate([cls_tok + pos[:1], pos[1:]], axis=0), (B, 1))

    packed, L, Dh = _pack_params(params, num_heads)

    args = (patches.astype(jnp.float32),
            params["conv_w"], params["conv_b"].reshape(1, hidden),
            jnp.asarray(expand), base, jnp.asarray(attn_bias), jnp.asarray(cls_sel),
            packed["ln1_g"], packed["ln1_b"],
            packed["q_w"], packed["q_b"], packed["k_w"], packed["k_b"],
            packed["v_w"], packed["v_b"], packed["o_w"], packed["o_b"],
            packed["ln2_g"], packed["ln2_b"],
            packed["mlp_w1"], packed["mlp_b1"], packed["mlp_w2"], packed["mlp_b2"],
            params["ln_g"].reshape(1, hidden), params["ln_b"].reshape(1, hidden))

    kernel = functools.partial(_vit_fused_kernel, num_layers=L,
                               num_heads=num_heads, head_dim=Dh)

    # Whole forward = ONE pallas_call; everything fits VMEM at this size.
    # NOTE: at real vit_b_32 sizes the full-array blocks must become tiled
    # (tm, tn, tk) matmul grids ('parallel' row/col axes for v7x megacore), with
    # tile budgets re-derived for v7x 64 MiB VMEM / v5e 16 MiB scoped default.
    return pl.pallas_call(
        kernel,
        out_shape=jax.ShapeDtypeStruct((B, hidden), x.dtype),
        grid=(1,),
        in_specs=[_fullspec(a.shape) for a in args],
        out_specs=_fullspec((B, hidden)),
        compiler_params=pltpu.CompilerParams(dimension_semantics=("arbitrary",)),
    )(*args)


# ----------------------------- parameter init --------------------------------

def init_vit_params(key, *, image_size=64, patch_size=32, in_channels=3,
                    hidden=32, num_layers=2, num_heads=4, mlp_dim=64):
    n_patches = (image_size // patch_size) ** 2
    seq_len = n_patches + 1

    def norm(k, shape, std=0.02):
        return (std * jax.random.normal(k, shape)).astype(jnp.float32)

    keys = jax.random.split(key, 2 + num_layers)
    params = {
        "conv_w": norm(keys[0], (in_channels * patch_size * patch_size, hidden)),
        "conv_b": jnp.zeros((hidden,), jnp.float32),
        "class_token": jnp.zeros((1, 1, hidden), jnp.float32),
        "pos_embedding": norm(keys[1], (1, seq_len, hidden)),
        "ln_g": jnp.ones((hidden,), jnp.float32),
        "ln_b": jnp.zeros((hidden,), jnp.float32),
        "layers": [],
    }
    for l in range(num_layers):
        lk = jax.random.split(keys[2 + l], 4)
        params["layers"].append({
            "ln1_g": jnp.ones((hidden,), jnp.float32),
            "ln1_b": jnp.zeros((hidden,), jnp.float32),
            "in_proj_w": norm(lk[0], (hidden, 3 * hidden)),
            "in_proj_b": jnp.zeros((3 * hidden,), jnp.float32),
            "out_proj_w": norm(lk[1], (hidden, hidden)),
            "out_proj_b": jnp.zeros((hidden,), jnp.float32),
            "ln2_g": jnp.ones((hidden,), jnp.float32),
            "ln2_b": jnp.zeros((hidden,), jnp.float32),
            "mlp_w1": norm(lk[2], (hidden, mlp_dim)),
            "mlp_b1": jnp.zeros((mlp_dim,), jnp.float32),
            "mlp_w2": norm(lk[3], (mlp_dim, hidden)),
            "mlp_b2": jnp.zeros((hidden,), jnp.float32),
        })
    return params


if __name__ == "__main__":
    key = jax.random.PRNGKey(0)
    pkey, xkey = jax.random.split(key)

    PATCH, HEADS = 32, 4
    params = init_vit_params(pkey, image_size=64, patch_size=PATCH, in_channels=3,
                             hidden=32, num_layers=2, num_heads=HEADS, mlp_dim=64)

    x = jax.random.normal(xkey, (2, 3, 64, 64), dtype=jnp.float32)   # NCHW

    fwd = jax.jit(functools.partial(transformer_vision_encoder_forward,
                                    patch_size=PATCH, num_heads=HEADS))
    feats = jax.block_until_ready(fwd(params, x))

    assert feats.shape == (2, 32), feats.shape
    assert bool(jnp.all(jnp.isfinite(feats)))
    print("KERNEL_OK")
</pallas_src>

<mosaic_0001>
module attributes {stable_mosaic.version = 11 : i64} {
  func.func @_vit_fused_kernel(%arg0: i32, %arg1: memref<8x3072xf32, #tpu.memory_space<vmem>>, %arg2: memref<3072x32xf32, #tpu.memory_space<vmem>>, %arg3: memref<1x32xf32, #tpu.memory_space<vmem>>, %arg4: memref<10x8xf32, #tpu.memory_space<vmem>>, %arg5: memref<10x32xf32, #tpu.memory_space<vmem>>, %arg6: memref<10x10xf32, #tpu.memory_space<vmem>>, %arg7: memref<2x10xf32, #tpu.memory_space<vmem>>, %arg8: memref<2x1x32xf32, #tpu.memory_space<vmem>>, %arg9: memref<2x1x32xf32, #tpu.memory_space<vmem>>, %arg10: memref<8x32x8xf32, #tpu.memory_space<vmem>>, %arg11: memref<8x1x8xf32, #tpu.memory_space<vmem>>, %arg12: memref<8x32x8xf32, #tpu.memory_space<vmem>>, %arg13: memref<8x1x8xf32, #tpu.memory_space<vmem>>, %arg14: memref<8x32x8xf32, #tpu.memory_space<vmem>>, %arg15: memref<8x1x8xf32, #tpu.memory_space<vmem>>, %arg16: memref<8x8x32xf32, #tpu.memory_space<vmem>>, %arg17: memref<2x1x32xf32, #tpu.memory_space<vmem>>, %arg18: memref<2x1x32xf32, #tpu.memory_space<vmem>>, %arg19: memref<2x1x32xf32, #tpu.memory_space<vmem>>, %arg20: memref<2x32x64xf32, #tpu.memory_space<vmem>>, %arg21: memref<2x1x64xf32, #tpu.memory_space<vmem>>, %arg22: memref<2x64x32xf32, #tpu.memory_space<vmem>>, %arg23: memref<2x1x32xf32, #tpu.memory_space<vmem>>, %arg24: memref<1x32xf32, #tpu.memory_space<vmem>>, %arg25: memref<1x32xf32, #tpu.memory_space<vmem>>, %arg26: memref<2x32xf32, #tpu.memory_space<vmem>>) attributes {dimension_semantics = [#tpu.dimension_semantics<arbitrary>], iteration_bounds = array<i64: 1>, scalar_prefetch = 0 : i64, scratch_operands = 0 : i64, tpu.core_type = #tpu.core_type<tc>, window_params = [{pipeline_mode = #tpu.pipeline_mode<synchronous>, transform_indices = @transform_0, window_bounds = array<i64: 8, 3072>}, {pipeline_mode = #tpu.pipeline_mode<synchronous>, transform_indices = @transform_1, window_bounds = array<i64: 3072, 32>}, {pipeline_mode = #tpu.pipeline_mode<synchronous>, transform_indices = @transform_2, window_bounds = array<i64: 1, 32>}, {pipeline_mode = #tpu.pipeline_mode<synchronous>, transform_indices = @transform_3, window_bounds = array<i64: 10, 8>}, {pipeline_mode = #tpu.pipeline_mode<synchronous>, transform_indices = @transform_4, window_bounds = array<i64: 10, 32>}, {pipeline_mode = #tpu.pipeline_mode<synchronous>, transform_indices = @transform_5, window_bounds = array<i64: 10, 10>}, {pipeline_mode = #tpu.pipeline_mode<synchronous>, transform_indices = @transform_6, window_bounds = array<i64: 2, 10>}, {pipeline_mode = #tpu.pipeline_mode<synchronous>, transform_indices = @transform_7, window_bounds = array<i64: 2, 1, 32>}, {pipeline_mode = #tpu.pipeline_mode<synchronous>, transform_indices = @transform_8, window_bounds = array<i64: 2, 1, 32>}, {pipeline_mode = #tpu.pipeline_mode<synchronous>, transform_indices = @transform_9, window_bounds = array<i64: 8, 32, 8>}, {pipeline_mode = #tpu.pipeline_mode<synchronous>, transform_indices = @transform_10, window_bounds = array<i64: 8, 1, 8>}, {pipeline_mode = #tpu.pipeline_mode<synchronous>, transform_indices = @transform_11, window_bounds = array<i64: 8, 32, 8>}, {pipeline_mode = #tpu.pipeline_mode<synchronous>, transform_indices = @transform_12, window_bounds = array<i64: 8, 1, 8>}, {pipeline_mode = #tpu.pipeline_mode<synchronous>, transform_indices = @transform_13, window_bounds = array<i64: 8, 32, 8>}, {pipeline_mode = #tpu.pipeline_mode<synchronous>, transform_indices = @transform_14, window_bounds = array<i64: 8, 1, 8>}, {pipeline_mode = #tpu.pipeline_mode<synchronous>, transform_indices = @transform_15, window_bounds = array<i64: 8, 8, 32>}, {pipeline_mode = #tpu.pipeline_mode<synchronous>, transform_indices = @transform_16, window_bounds = array<i64: 2, 1, 32>}, {pipeline_mode = #tpu.pipeline_mode<synchronous>, transform_indices = @transform_17, window_bounds = array<i64: 2, 1, 32>}, {pipeline_mode = #tpu.pipeline_mode<synchronous>, transform_indices = @transform_18, window_bounds = array<i64: 2, 1, 32>}, {pipeline_mode = #tpu.pipeline_mode<synchronous>, transform_indices = @transform_19, window_bounds = array<i64: 2, 32, 64>}, {pipeline_mode = #tpu.pipeline_mode<synchronous>, transform_indices = @transform_20, window_bounds = array<i64: 2, 1, 64>}, {pipeline_mode = #tpu.pipeline_mode<synchronous>, transform_indices = @transform_21, window_bounds = array<i64: 2, 64, 32>}, {pipeline_mode = #tpu.pipeline_mode<synchronous>, transform_indices = @transform_22, window_bounds = array<i64: 2, 1, 32>}, {pipeline_mode = #tpu.pipeline_mode<synchronous>, transform_indices = @transform_23, window_bounds = array<i64: 1, 32>}, {pipeline_mode = #tpu.pipeline_mode<synchronous>, transform_indices = @transform_24, window_bounds = array<i64: 1, 32>}, {pipeline_mode = #tpu.pipeline_mode<synchronous>, transform_indices = @transform_25, window_bounds = array<i64: 2, 32>}]} {
    %c0 = arith.constant 0 : index
    %c0_0 = arith.constant 0 : index
    %0 = vector.load %arg1[%c0, %c0_0] : memref<8x3072xf32, #tpu.memory_space<vmem>>, vector<8x3072xf32>
    %c0_1 = arith.constant 0 : index
    %c0_2 = arith.constant 0 : index
    %1 = vector.load %arg2[%c0_1, %c0_2] : memref<3072x32xf32, #tpu.memory_space<vmem>>, vector<3072x32xf32>
    %2 = arith.truncf %0 : vector<8x3072xf32> to vector<8x3072xbf16>
    %3 = arith.truncf %1 : vector<3072x32xf32> to vector<3072x32xbf16>
    %cst = arith.constant dense<0.000000e+00> : vector<8x32xf32>
    %4 = tpu.matmul %2, %3, %cst {dimension_numbers = #tpu.dot_dimension_numbers<[1], [0], [0], [1], [0, 0, 1, 1], [], []>} : vector<8x3072xbf16>, vector<3072x32xbf16>, vector<8x32xf32> -> vector<8x32xf32>
    %c0_3 = arith.constant 0 : index
    %c0_4 = arith.constant 0 : index
    %5 = vector.load %arg3[%c0_3, %c0_4] : memref<1x32xf32, #tpu.memory_space<vmem>>, vector<1x32xf32>
    %6 = vector.broadcast %5 : vector<1x32xf32> to vector<8x32xf32>
    %7 = arith.addf %4, %6 : vector<8x32xf32>
    %c0_5 = arith.constant 0 : index
    %c0_6 = arith.constant 0 : index
    %8 = vector.load %arg4[%c0_5, %c0_6] : memref<10x8xf32, #tpu.memory_space<vmem>>, vector<10x8xf32>
    %9 = arith.truncf %8 : vector<10x8xf32> to vector<10x8xbf16>
    %10 = arith.truncf %7 : vector<8x32xf32> to vector<8x32xbf16>
    %cst_7 = arith.constant dense<0.000000e+00> : vector<10x32xf32>
    %11 = tpu.matmul %9, %10, %cst_7 {dimension_numbers = #tpu.dot_dimension_numbers<[1], [0], [0], [1], [0, 0, 1, 1], [], []>} : vector<10x8xbf16>, vector<8x32xbf16>, vector<10x32xf32> -> vector<10x32xf32>
    %c0_8 = arith.constant 0 : index
    %c0_9 = arith.constant 0 : index
    %12 = vector.load %arg5[%c0_8, %c0_9] : memref<10x32xf32, #tpu.memory_space<vmem>>, vector<10x32xf32>
    %13 = arith.addf %11, %12 : vector<10x32xf32>
    %c0_10 = arith.constant 0 : index
    %c0_11 = arith.constant 0 : index
    %14 = vector.load %arg6[%c0_10, %c0_11] : memref<10x10xf32, #tpu.memory_space<vmem>>, vector<10x10xf32>
    %c0_12 = arith.constant 0 : index
    %c0_13 = arith.constant 0 : index
    %c0_14 = arith.constant 0 : index
    %15 = vector.load %arg8[%c0_12, %c0_13, %c0_14] : memref<2x1x32xf32, #tpu.memory_space<vmem>>, vector<1x1x32xf32>
    %16 = vector.shape_cast %15 : vector<1x1x32xf32> to vector<1x32xf32>
    %c0_15 = arith.constant 0 : index
    %c0_16 = arith.constant 0 : index
    %c0_17 = arith.constant 0 : index
    %17 = vector.load %arg9[%c0_15, %c0_16, %c0_17] : memref<2x1x32xf32, #tpu.memory_space<vmem>>, vector<1x1x32xf32>
    %18 = vector.shape_cast %17 : vector<1x1x32xf32> to vector<1x32xf32>
    %cst_18 = arith.constant dense<0.000000e+00> : vector<10xf32>
    %19 = vector.multi_reduction <add>, %13, %cst_18 [1] : vector<10x32xf32> to vector<10xf32>
    %20 = vector.shape_cast %19 : vector<10xf32> to vector<10x1xf32>
    %cst_19 = arith.constant 3.200000e+01 : f32
    %21 = vector.broadcast %cst_19 : f32 to vector<10x1xf32>
    %22 = arith.divf %20, %21 : vector<10x1xf32>
    %23 = vector.broadcast %22 : vector<10x1xf32> to vector<10x32xf32>
    %24 = arith.subf %13, %23 : vector<10x32xf32>
    %25 = arith.mulf %24, %24 : vector<10x32xf32>
    %cst_20 = arith.constant dense<0.000000e+00> : vector<10xf32>
    %26 = vector.multi_reduction <add>, %25, %cst_20 [1] : vector<10x32xf32> to vector<10xf32>
    %27 = vector.shape_cast %26 : vector<10xf32> to vector<10x1xf32>
    %cst_21 = arith.constant 3.200000e+01 : f32
    %28 = vector.broadcast %cst_21 : f32 to vector<10x1xf32>
    %29 = arith.divf %27, %28 : vector<10x1xf32>
    %30 = vector.broadcast %22 : vector<10x1xf32> to vector<10x32xf32>
    %31 = arith.subf %13, %30 : vector<10x32xf32>
    %cst_22 = arith.constant 9.99999997E-7 : f32
    %32 = vector.broadcast %cst_22 : f32 to vector<10x1xf32>
    %33 = arith.addf %29, %32 : vector<10x1xf32>
    %34 = math.rsqrt %33 : vector<10x1xf32>
    %35 = vector.broadcast %34 : vector<10x1xf32> to vector<10x32xf32>
    %36 = arith.mulf %31, %35 : vector<10x32xf32>
    %37 = vector.broadcast %16 : vector<1x32xf32> to vector<10x32xf32>
    %38 = arith.mulf %36, %37 : vector<10x32xf32>
    %39 = vector.broadcast %18 : vector<1x32xf32> to vector<10x32xf32>
    %40 = arith.addf %38, %39 : vector<10x32xf32>
    %c0_23 = arith.constant 0 : index
    %c0_24 = arith.constant 0 : index
    %c0_25 = arith.constant 0 : index
    %41 = vector.load %arg10[%c0_23, %c0_24, %c0_25] : memref<8x32x8xf32, #tpu.memory_space<vmem>>, vector<1x32x8xf32>
    %42 = vector.shape_cast %41 : vector<1x32x8xf32> to vector<32x8xf32>
    %43 = arith.truncf %40 : vector<10x32xf32> to vector<10x32xbf16>
    %44 = arith.truncf %42 : vector<32x8xf32> to vector<32x8xbf16>
    %cst_26 = arith.constant dense<0.000000e+00> : vector<10x8xf32>
    %45 = tpu.matmul %43, %44, %cst_26 {dimension_numbers = #tpu.dot_dimension_numbers<[1], [0], [0], [1], [0, 0, 1, 1], [], []>} : vector<10x32xbf16>, vector<32x8xbf16>, vector<10x8xf32> -> vector<10x8xf32>
    %c0_27 = arith.constant 0 : index
    %c0_28 = arith.constant 0 : index
    %c0_29 = arith.constant 0 : index
    %46 = vector.load %arg11[%c0_27, %c0_28, %c0_29] : memref<8x1x8xf32, #tpu.memory_space<vmem>>, vector<1x1x8xf32>
    %47 = vector.shape_cast %46 : vector<1x1x8xf32> to vector<1x8xf32>
    %48 = vector.broadcast %47 : vector<1x8xf32> to vector<10x8xf32>
    %49 = arith.addf %45, %48 : vector<10x8xf32>
    %c0_30 = arith.constant 0 : index
    %c0_31 = arith.constant 0 : index
    %c0_32 = arith.constant 0 : index
    %50 = vector.load %arg12[%c0_30, %c0_31, %c0_32] : memref<8x32x8xf32, #tpu.memory_space<vmem>>, vector<1x32x8xf32>
    %51 = vector.shape_cast %50 : vector<1x32x8xf32> to vector<32x8xf32>
    %52 = arith.truncf %40 : vector<10x32xf32> to vector<10x32xbf16>
    %53 = arith.truncf %51 : vector<32x8xf32> to vector<32x8xbf16>
    %cst_33 = arith.constant dense<0.000000e+00> : vector<10x8xf32>
    %54 = tpu.matmul %52, %53, %cst_33 {dimension_numbers = #tpu.dot_dimension_numbers<[1], [0], [0], [1], [0, 0, 1, 1], [], []>} : vector<10x32xbf16>, vector<32x8xbf16>, vector<10x8xf32> -> vector<10x8xf32>
    %c0_34 = arith.constant 0 : index
    %c0_35 = arith.constant 0 : index
    %c0_36 = arith.constant 0 : index
    %55 = vector.load %arg13[%c0_34, %c0_35, %c0_36] : memref<8x1x8xf32, #tpu.memory_space<vmem>>, vector<1x1x8xf32>
    %56 = vector.shape_cast %55 : vector<1x1x8xf32> to vector<1x8xf32>
    %57 = vector.broadcast %56 : vector<1x8xf32> to vector<10x8xf32>
    %58 = arith.addf %54, %57 : vector<10x8xf32>
    %c0_37 = arith.constant 0 : index
    %c0_38 = arith.constant 0 : index
    %c0_39 = arith.constant 0 : index
    %59 = vector.load %arg14[%c0_37, %c0_38, %c0_39] : memref<8x32x8xf32, #tpu.memory_space<vmem>>, vector<1x32x8xf32>
    %60 = vector.shape_cast %59 : vector<1x32x8xf32> to vector<32x8xf32>
    %61 = arith.truncf %40 : vector<10x32xf32> to vector<10x32xbf16>
    %62 = arith.truncf %60 : vector<32x8xf32> to vector<32x8xbf16>
    %cst_40 = arith.constant dense<0.000000e+00> : vector<10x8xf32>
    %63 = tpu.matmul %61, %62, %cst_40 {dimension_numbers = #tpu.dot_dimension_numbers<[1], [0], [0], [1], [0, 0, 1, 1], [], []>} : vector<10x32xbf16>, vector<32x8xbf16>, vector<10x8xf32> -> vector<10x8xf32>
    %c0_41 = arith.constant 0 : index
    %c0_42 = arith.constant 0 : index
    %c0_43 = arith.constant 0 : index
    %64 = vector.load %arg15[%c0_41, %c0_42, %c0_43] : memref<8x1x8xf32, #tpu.memory_space<vmem>>, vector<1x1x8xf32>
    %65 = vector.shape_cast %64 : vector<1x1x8xf32> to vector<1x8xf32>
    %66 = vector.broadcast %65 : vector<1x8xf32> to vector<10x8xf32>
    %67 = arith.addf %63, %66 : vector<10x8xf32>
    %68 = arith.truncf %49 : vector<10x8xf32> to vector<10x8xbf16>
    %69 = arith.truncf %58 : vector<10x8xf32> to vector<10x8xbf16>
    %cst_44 = arith.constant dense<0.000000e+00> : vector<10x10xf32>
    %70 = tpu.matmul %68, %69, %cst_44 {dimension_numbers = #tpu.dot_dimension_numbers<[1], [1], [0], [0], [0, 0, 1, 0], [], []>} : vector<10x8xbf16>, vector<10x8xbf16>, vector<10x10xf32> -> vector<10x10xf32>
    %cst_45 = arith.constant 0.353553385 : f32
    %71 = vector.broadcast %cst_45 : f32 to vector<10x10xf32>
    %72 = arith.mulf %70, %71 : vector<10x10xf32>
    %73 = arith.addf %72, %14 : vector<10x10xf32>
    %cst_46 = arith.constant dense<0xFF800000> : vector<10xf32>
    %74 = vector.multi_reduction <maximumf>, %73, %cst_46 [1] : vector<10x10xf32> to vector<10xf32>
    %75 = vector.shape_cast %74 : vector<10xf32> to vector<10x1xf32>
    %76 = vector.broadcast %75 : vector<10x1xf32> to vector<10x10xf32>
    %77 = arith.subf %73, %76 : vector<10x10xf32>
    %78 = math.exp %77 : vector<10x10xf32>
    %cst_47 = arith.constant dense<0.000000e+00> : vector<10xf32>
    %79 = vector.multi_reduction <add>, %78, %cst_47 [1] : vector<10x10xf32> to vector<10xf32>
    %80 = vector.shape_cast %79 : vector<10xf32> to vector<10x1xf32>
    %81 = tpu.reciprocal %80 {approx = true} : vector<10x1xf32> -> vector<10x1xf32>
    %82 = vector.broadcast %81 : vector<10x1xf32> to vector<10x10xf32>
    %83 = arith.mulf %78, %82 : vector<10x10xf32>
    %84 = arith.truncf %83 : vector<10x10xf32> to vector<10x10xbf16>
    %85 = arith.truncf %67 : vector<10x8xf32> to vector<10x8xbf16>
    %cst_48 = arith.constant dense<0.000000e+00> : vector<10x8xf32>
    %86 = tpu.matmul %84, %85, %cst_48 {dimension_numbers = #tpu.dot_dimension_numbers<[1], [0], [0], [1], [0, 0, 1, 1], [], []>} : vector<10x10xbf16>, vector<10x8xbf16>, vector<10x8xf32> -> vector<10x8xf32>
    %c0_49 = arith.constant 0 : index
    %c0_50 = arith.constant 0 : index
    %c0_51 = arith.constant 0 : index
    %87 = vector.load %arg16[%c0_49, %c0_50, %c0_51] : memref<8x8x32xf32, #tpu.memory_space<vmem>>, vector<1x8x32xf32>
    %88 = vector.shape_cast %87 : vector<1x8x32xf32> to vector<8x32xf32>
    %89 = arith.truncf %86 : vector<10x8xf32> to vector<10x8xbf16>
    %90 = arith.truncf %88 : vector<8x32xf32> to vector<8x32xbf16>
    %cst_52 = arith.constant dense<0.000000e+00> : vector<10x32xf32>
    %91 = tpu.matmul %89, %90, %cst_52 {dimension_numbers = #tpu.dot_dimension_numbers<[1], [0], [0], [1], [0, 0, 1, 1], [], []>} : vector<10x8xbf16>, vector<8x32xbf16>, vector<10x32xf32> -> vector<10x32xf32>
    %c1 = arith.constant 1 : index
    %c0_53 = arith.constant 0 : index
    %c0_54 = arith.constant 0 : index
    %92 = vector.load %arg10[%c1, %c0_53, %c0_54] : memref<8x32x8xf32, #tpu.memory_space<vmem>>, vector<1x32x8xf32>
    %93 = vector.shape_cast %92 : vector<1x32x8xf32> to vector<32x8xf32>
    %94 = arith.truncf %40 : vector<10x32xf32> to vector<10x32xbf16>
    %95 = arith.truncf %93 : vector<32x8xf32> to vector<32x8xbf16>
    %cst_55 = arith.constant dense<0.000000e+00> : vector<10x8xf32>
    %96 = tpu.matmul %94, %95, %cst_55 {dimension_numbers = #tpu.dot_dimension_numbers<[1], [0], [0], [1], [0, 0, 1, 1], [], []>} : vector<10x32xbf16>, vector<32x8xbf16>, vector<10x8xf32> -> vector<10x8xf32>
    %c1_56 = arith.constant 1 : index
    %c0_57 = arith.constant 0 : index
    %c0_58 = arith.constant 0 : index
    %97 = vector.load %arg11[%c1_56, %c0_57, %c0_58] : memref<8x1x8xf32, #tpu.memory_space<vmem>>, vector<1x1x8xf32>
    %98 = vector.shape_cast %97 : vector<1x1x8xf32> to vector<1x8xf32>
    %99 = vector.broadcast %98 : vector<1x8xf32> to vector<10x8xf32>
    %100 = arith.addf %96, %99 : vector<10x8xf32>
    %c1_59 = arith.constant 1 : index
    %c0_60 = arith.constant 0 : index
    %c0_61 = arith.constant 0 : index
    %101 = vector.load %arg12[%c1_59, %c0_60, %c0_61] : memref<8x32x8xf32, #tpu.memory_space<vmem>>, vector<1x32x8xf32>
    %102 = vector.shape_cast %101 : vector<1x32x8xf32> to vector<32x8xf32>
    %103 = arith.truncf %40 : vector<10x32xf32> to vector<10x32xbf16>
    %104 = arith.truncf %102 : vector<32x8xf32> to vector<32x8xbf16>
    %cst_62 = arith.constant dense<0.000000e+00> : vector<10x8xf32>
    %105 = tpu.matmul %103, %104, %cst_62 {dimension_numbers = #tpu.dot_dimension_numbers<[1], [0], [0], [1], [0, 0, 1, 1], [], []>} : vector<10x32xbf16>, vector<32x8xbf16>, vector<10x8xf32> -> vector<10x8xf32>
    %c1_63 = arith.constant 1 : index
    %c0_64 = arith.constant 0 : index
    %c0_65 = arith.constant 0 : index
    %106 = vector.load %arg13[%c1_63, %c0_64, %c0_65] : memref<8x1x8xf32, #tpu.memory_space<vmem>>, vector<1x1x8xf32>
    %107 = vector.shape_cast %106 : vector<1x1x8xf32> to vector<1x8xf32>
    %108 = vector.broadcast %107 : vector<1x8xf32> to vector<10x8xf32>
    %109 = arith.addf %105, %108 : vector<10x8xf32>
    %c1_66 = arith.constant 1 : index
    %c0_67 = arith.constant 0 : index
    %c0_68 = arith.constant 0 : index
    %110 = vector.load %arg14[%c1_66, %c0_67, %c0_68] : memref<8x32x8xf32, #tpu.memory_space<vmem>>, vector<1x32x8xf32>
    %111 = vector.shape_cast %110 : vector<1x32x8xf32> to vector<32x8xf32>
    %112 = arith.truncf %40 : vector<10x32xf32> to vector<10x32xbf16>
    %113 = arith.truncf %111 : vector<32x8xf32> to vector<32x8xbf16>
    %cst_69 = arith.constant dense<0.000000e+00> : vector<10x8xf32>
    %114 = tpu.matmul %112, %113, %cst_69 {dimension_numbers = #tpu.dot_dimension_numbers<[1], [0], [0], [1], [0, 0, 1, 1], [], []>} : vector<10x32xbf16>, vector<32x8xbf16>, vector<10x8xf32> -> vector<10x8xf32>
    %c1_70 = arith.constant 1 : index
    %c0_71 = arith.constant 0 : index
    %c0_72 = arith.constant 0 : index
    %115 = vector.load %arg15[%c1_70, %c0_71, %c0_72] : memref<8x1x8xf32, #tpu.memory_space<vmem>>, vector<1x1x8xf32>
    %116 = vector.shape_cast %115 : vector<1x1x8xf32> to vector<1x8xf32>
    %117 = vector.broadcast %116 : vector<1x8xf32> to vector<10x8xf32>
    %118 = arith.addf %114, %117 : vector<10x8xf32>
    %119 = arith.truncf %100 : vector<10x8xf32> to vector<10x8xbf16>
    %120 = arith.truncf %109 : vector<10x8xf32> to vector<10x8xbf16>
    %cst_73 = arith.constant dense<0.000000e+00> : vector<10x10xf32>
    %121 = tpu.matmul %119, %120, %cst_73 {dimension_numbers = #tpu.dot_dimension_numbers<[1], [1], [0], [0], [0, 0, 1, 0], [], []>} : vector<10x8xbf16>, vector<10x8xbf16>, vector<10x10xf32> -> vector<10x10xf32>
    %cst_74 = arith.constant 0.353553385 : f32
    %122 = vector.broadcast %cst_74 : f32 to vector<10x10xf32>
    %123 = arith.mulf %121, %122 : vector<10x10xf32>
    %124 = arith.addf %123, %14 : vector<10x10xf32>
    %cst_75 = arith.constant dense<0xFF800000> : vector<10xf32>
    %125 = vector.multi_reduction <maximumf>, %124, %cst_75 [1] : vector<10x10xf32> to vector<10xf32>
    %126 = vector.shape_cast %125 : vector<10xf32> to vector<10x1xf32>
    %127 = vector.broadcast %126 : vector<10x1xf32> to vector<10x10xf32>
    %128 = arith.subf %124, %127 : vector<10x10xf32>
    %129 = math.exp %128 : vector<10x10xf32>
    %cst_76 = arith.constant dense<0.000000e+00> : vector<10xf32>
    %130 = vector.multi_reduction <add>, %129, %cst_76 [1] : vector<10x10xf32> to vector<10xf32>
    %131 = vector.shape_cast %130 : vector<10xf32> to vector<10x1xf32>
    %132 = tpu.reciprocal %131 {approx = true} : vector<10x1xf32> -> vector<10x1xf32>
    %133 = vector.broadcast %132 : vector<10x1xf32> to vector<10x10xf32>
    %134 = arith.mulf %129, %133 : vector<10x10xf32>
    %135 = arith.truncf %134 : vector<10x10xf32> to vector<10x10xbf16>
    %136 = arith.truncf %118 : vector<10x8xf32> to vector<10x8xbf16>
    %cst_77 = arith.constant dense<0.000000e+00> : vector<10x8xf32>
    %137 = tpu.matmul %135, %136, %cst_77 {dimension_numbers = #tpu.dot_dimension_numbers<[1], [0], [0], [1], [0, 0, 1, 1], [], []>} : vector<10x10xbf16>, vector<10x8xbf16>, vector<10x8xf32> -> vector<10x8xf32>
    %c1_78 = arith.constant 1 : index
    %c0_79 = arith.constant 0 : index
    %c0_80 = arith.constant 0 : index
    %138 = vector.load %arg16[%c1_78, %c0_79, %c0_80] : memref<8x8x32xf32, #tpu.memory_space<vmem>>, vector<1x8x32xf32>
    %139 = vector.shape_cast %138 : vector<1x8x32xf32> to vector<8x32xf32>
    %140 = arith.truncf %137 : vector<10x8xf32> to vector<10x8xbf16>
    %141 = arith.truncf %139 : vector<8x32xf32> to vector<8x32xbf16>
    %cst_81 = arith.constant dense<0.000000e+00> : vector<10x32xf32>
    %142 = tpu.matmul %140, %141, %cst_81 {dimension_numbers = #tpu.dot_dimension_numbers<[1], [0], [0], [1], [0, 0, 1, 1], [], []>} : vector<10x8xbf16>, vector<8x32xbf16>, vector<10x32xf32> -> vector<10x32xf32>
    %143 = arith.addf %91, %142 : vector<10x32xf32>
    %c2 = arith.constant 2 : index
    %c0_82 = arith.constant 0 : index
    %c0_83 = arith.constant 0 : index
    %144 = vector.load %arg10[%c2, %c0_82, %c0_83] : memref<8x32x8xf32, #tpu.memory_space<vmem>>, vector<1x32x8xf32>
    %145 = vector.shape_cast %144 : vector<1x32x8xf32> to vector<32x8xf32>
    %146 = arith.truncf %40 : vector<10x32xf32> to vector<10x32xbf16>
    %147 = arith.truncf %145 : vector<32x8xf32> to vector<32x8xbf16>
    %cst_84 = arith.constant dense<0.000000e+00> : vector<10x8xf32>
    %148 = tpu.matmul %146, %147, %cst_84 {dimension_numbers = #tpu.dot_dimension_numbers<[1], [0], [0], [1], [0, 0, 1, 1], [], []>} : vector<10x32xbf16>, vector<32x8xbf16>, vector<10x8xf32> -> vector<10x8xf32>
    %c2_85 = arith.constant 2 : index
    %c0_86 = arith.constant 0 : index
    %c0_87 = arith.constant 0 : index
    %149 = vector.load %arg11[%c2_85, %c0_86, %c0_87] : memref<8x1x8xf32, #tpu.memory_space<vmem>>, vector<1x1x8xf32>
    %150 = vector.shape_cast %149 : vector<1x1x8xf32> to vector<1x8xf32>
    %151 = vector.broadcast %150 : vector<1x8xf32> to vector<10x8xf32>
    %152 = arith.addf %148, %151 : vector<10x8xf32>
    %c2_88 = arith.constant 2 : index
    %c0_89 = arith.constant 0 : index
    %c0_90 = arith.constant 0 : index
    %153 = vector.load %arg12[%c2_88, %c0_89, %c0_90] : memref<8x32x8xf32, #tpu.memory_space<vmem>>, vector<1x32x8xf32>
    %154 = vector.shape_cast %153 : vector<1x32x8xf32> to vector<32x8xf32>
    %155 = arith.truncf %40 : vector<10x32xf32> to vector<10x32xbf16>
    %156 = arith.truncf %154 : vector<32x8xf32> to vector<32x8xbf16>
    %cst_91 = arith.constant dense<0.000000e+00> : vector<10x8xf32>
    %157 = tpu.matmul %155, %156, %cst_91 {dimension_numbers = #tpu.dot_dimension_numbers<[1], [0], [0], [1], [0, 0, 1, 1], [], []>} : vector<10x32xbf16>, vector<32x8xbf16>, vector<10x8xf32> -> vector<10x8xf32>
    %c2_92 = arith.constant 2 : index
    %c0_93 = arith.constant 0 : index
    %c0_94 = arith.constant 0 : index
    %158 = vector.load %arg13[%c2_92, %c0_93, %c0_94] : memref<8x1x8xf32, #tpu.memory_space<vmem>>, vector<1x1x8xf32>
    %159 = vector.shape_cast %158 : vector<1x1x8xf32> to vector<1x8xf32>
    %160 = vector.broadcast %159 : vector<1x8xf32> to vector<10x8xf32>
    %161 = arith.addf %157, %160 : vector<10x8xf32>
    %c2_95 = arith.constant 2 : index
    %c0_96 = arith.constant 0 : index
    %c0_97 = arith.constant 0 : index
    %162 = vector.load %arg14[%c2_95, %c0_96, %c0_97] : memref<8x32x8xf32, #tpu.memory_space<vmem>>, vector<1x32x8xf32>
    %163 = vector.shape_cast %162 : vector<1x32x8xf32> to vector<32x8xf32>
    %164 = arith.truncf %40 : vector<10x32xf32> to vector<10x32xbf16>
    %165 = arith.truncf %163 : vector<32x8xf32> to vector<32x8xbf16>
    %cst_98 = arith.constant dense<0.000000e+00> : vector<10x8xf32>
    %166 = tpu.matmul %164, %165, %cst_98 {dimension_numbers = #tpu.dot_dimension_numbers<[1], [0], [0], [1], [0, 0, 1, 1], [], []>} : vector<10x32xbf16>, vector<32x8xbf16>, vector<10x8xf32> -> vector<10x8xf32>
    %c2_99 = arith.constant 2 : index
    %c0_100 = arith.constant 0 : index
    %c0_101 = arith.constant 0 : index
    %167 = vector.load %arg15[%c2_99, %c0_100, %c0_101] : memref<8x1x8xf32, #tpu.memory_space<vmem>>, vector<1x1x8xf32>
    %168 = vector.shape_cast %167 : vector<1x1x8xf32> to vector<1x8xf32>
    %169 = vector.broadcast %168 : vector<1x8xf32> to vector<10x8xf32>
    %170 = arith.addf %166, %169 : vector<10x8xf32>
    %171 = arith.truncf %152 : vector<10x8xf32> to vector<10x8xbf16>
    %172 = arith.truncf %161 : vector<10x8xf32> to vector<10x8xbf16>
    %cst_102 = arith.constant dense<0.000000e+00> : vector<10x10xf32>
    %173 = tpu.matmul %171, %172, %cst_102 {dimension_numbers = #tpu.dot_dimension_numbers<[1], [1], [0], [0], [0, 0, 1, 0], [], []>} : vector<10x8xbf16>, vector<10x8xbf16>, vector<10x10xf32> -> vector<10x10xf32>
    %cst_103 = arith.constant 0.353553385 : f32
    %174 = vector.broadcast %cst_103 : f32 to vector<10x10xf32>
    %175 = arith.mulf %173, %174 : vector<10x10xf32>
    %176 = arith.addf %175, %14 : vector<10x10xf32>
    %cst_104 = arith.constant dense<0xFF800000> : vector<10xf32>
    %177 = vector.multi_reduction <maximumf>, %176, %cst_104 [1] : vector<10x10xf32> to vector<10xf32>
    %178 = vector.shape_cast %177 : vector<10xf32> to vector<10x1xf32>
    %179 = vector.broadcast %178 : vector<10x1xf32> to vector<10x10xf32>
    %180 = arith.subf %176, %179 : vector<10x10xf32>
    %181 = math.exp %180 : vector<10x10xf32>
    %cst_105 = arith.constant dense<0.000000e+00> : vector<10xf32>
    %182 = vector.multi_reduction <add>, %181, %cst_105 [1] : vector<10x10xf32> to vector<10xf32>
    %183 = vector.shape_cast %182 : vector<10xf32> to vector<10x1xf32>
    %184 = tpu.reciprocal %183 {approx = true} : vector<10x1xf32> -> vector<10x1xf32>
    %185 = vector.broadcast %184 : vector<10x1xf32> to vector<10x10xf32>
    %186 = arith.mulf %181, %185 : vector<10x10xf32>
    %187 = arith.truncf %186 : vector<10x10xf32> to vector<10x10xbf16>
    %188 = arith.truncf %170 : vector<10x8xf32> to vector<10x8xbf16>
    %cst_106 = arith.constant dense<0.000000e+00> : vector<10x8xf32>
    %189 = tpu.matmul %187, %188, %cst_106 {dimension_numbers = #tpu.dot_dimension_numbers<[1], [0], [0], [1], [0, 0, 1, 1], [], []>} : vector<10x10xbf16>, vector<10x8xbf16>, vector<10x8xf32> -> vector<10x8xf32>
    %c2_107 = arith.constant 2 : index
    %c0_108 = arith.constant 0 : index
    %c0_109 = arith.constant 0 : index
    %190 = vector.load %arg16[%c2_107, %c0_108, %c0_109] : memref<8x8x32xf32, #tpu.memory_space<vmem>>, vector<1x8x32xf32>
    %191 = vector.shape_cast %190 : vector<1x8x32xf32> to vector<8x32xf32>
    %192 = arith.truncf %189 : vector<10x8xf32> to vector<10x8xbf16>
    %193 = arith.truncf %191 : vector<8x32xf32> to vector<8x32xbf16>
    %cst_110 = arith.constant dense<0.000000e+00> : vector<10x32xf32>
    %194 = tpu.matmul %192, %193, %cst_110 {dimension_numbers = #tpu.dot_dimension_numbers<[1], [0], [0], [1], [0, 0, 1, 1], [], []>} : vector<10x8xbf16>, vector<8x32xbf16>, vector<10x32xf32> -> vector<10x32xf32>
    %195 = arith.addf %143, %194 : vector<10x32xf32>
    %c3 = arith.constant 3 : index
    %c0_111 = arith.constant 0 : index
    %c0_112 = arith.constant 0 : index
    %196 = vector.load %arg10[%c3, %c0_111, %c0_112] : memref<8x32x8xf32, #tpu.memory_space<vmem>>, vector<1x32x8xf32>
    %197 = vector.shape_cast %196 : vector<1x32x8xf32> to vector<32x8xf32>
    %198 = arith.truncf %40 : vector<10x32xf32> to vector<10x32xbf16>
    %199 = arith.truncf %197 : vector<32x8xf32> to vector<32x8xbf16>
    %cst_113 = arith.constant dense<0.000000e+00> : vector<10x8xf32>
    %200 = tpu.matmul %198, %199, %cst_113 {dimension_numbers = #tpu.dot_dimension_numbers<[1], [0], [0], [1], [0, 0, 1, 1], [], []>} : vector<10x32xbf16>, vector<32x8xbf16>, vector<10x8xf32> -> vector<10x8xf32>
    %c3_114 = arith.constant 3 : index
    %c0_115 = arith.constant 0 : index
    %c0_116 = arith.constant 0 : index
    %201 = vector.load %arg11[%c3_114, %c0_115, %c0_116] : memref<8x1x8xf32, #tpu.memory_space<vmem>>, vector<1x1x8xf32>
    %202 = vector.shape_cast %201 : vector<1x1x8xf32> to vector<1x8xf32>
    %203 = vector.broadcast %202 : vector<1x8xf32> to vector<10x8xf32>
    %204 = arith.addf %200, %203 : vector<10x8xf32>
    %c3_117 = arith.constant 3 : index
    %c0_118 = arith.constant 0 : index
    %c0_119 = arith.constant 0 : index
    %205 = vector.load %arg12[%c3_117, %c0_118, %c0_119] : memref<8x32x8xf32, #tpu.memory_space<vmem>>, vector<1x32x8xf32>
    %206 = vector.shape_cast %205 : vector<1x32x8xf32> to vector<32x8xf32>
    %207 = arith.truncf %40 : vector<10x32xf32> to vector<10x32xbf16>
    %208 = arith.truncf %206 : vector<32x8xf32> to vector<32x8xbf16>
    %cst_120 = arith.constant dense<0.000000e+00> : vector<10x8xf32>
    %209 = tpu.matmul %207, %208, %cst_120 {dimension_numbers = #tpu.dot_dimension_numbers<[1], [0], [0], [1], [0, 0, 1, 1], [], []>} : vector<10x32xbf16>, vector<32x8xbf16>, vector<10x8xf32> -> vector<10x8xf32>
    %c3_121 = arith.constant 3 : index
    %c0_122 = arith.constant 0 : index
    %c0_123 = arith.constant 0 : index
    %210 = vector.load %arg13[%c3_121, %c0_122, %c0_123] : memref<8x1x8xf32, #tpu.memory_space<vmem>>, vector<1x1x8xf32>
    %211 = vector.shape_cast %210 : vector<1x1x8xf32> to vector<1x8xf32>
    %212 = vector.broadcast %211 : vector<1x8xf32> to vector<10x8xf32>
    %213 = arith.addf %209, %212 : vector<10x8xf32>
    %c3_124 = arith.constant 3 : index
    %c0_125 = arith.constant 0 : index
    %c0_126 = arith.constant 0 : index
    %214 = vector.load %arg14[%c3_124, %c0_125, %c0_126] : memref<8x32x8xf32, #tpu.memory_space<vmem>>, vector<1x32x8xf32>
    %215 = vector.shape_cast %214 : vector<1x32x8xf32> to vector<32x8xf32>
    %216 = arith.truncf %40 : vector<10x32xf32> to vector<10x32xbf16>
    %217 = arith.truncf %215 : vector<32x8xf32> to vector<32x8xbf16>
    %cst_127 = arith.constant dense<0.000000e+00> : vector<10x8xf32>
    %218 = tpu.matmul %216, %217, %cst_127 {dimension_numbers = #tpu.dot_dimension_numbers<[1], [0], [0], [1], [0, 0, 1, 1], [], []>} : vector<10x32xbf16>, vector<32x8xbf16>, vector<10x8xf32> -> vector<10x8xf32>
    %c3_128 = arith.constant 3 : index
    %c0_129 = arith.constant 0 : index
    %c0_130 = arith.constant 0 : index
    %219 = vector.load %arg15[%c3_128, %c0_129, %c0_130] : memref<8x1x8xf32, #tpu.memory_space<vmem>>, vector<1x1x8xf32>
    %220 = vector.shape_cast %219 : vector<1x1x8xf32> to vector<1x8xf32>
    %221 = vector.broadcast %220 : vector<1x8xf32> to vector<10x8xf32>
    %222 = arith.addf %218, %221 : vector<10x8xf32>
    %223 = arith.truncf %204 : vector<10x8xf32> to vector<10x8xbf16>
    %224 = arith.truncf %213 : vector<10x8xf32> to vector<10x8xbf16>
    %cst_131 = arith.constant dense<0.000000e+00> : vector<10x10xf32>
    %225 = tpu.matmul %223, %224, %cst_131 {dimension_numbers = #tpu.dot_dimension_numbers<[1], [1], [0], [0], [0, 0, 1, 0], [], []>} : vector<10x8xbf16>, vector<10x8xbf16>, vector<10x10xf32> -> vector<10x10xf32>
    %cst_132 = arith.constant 0.353553385 : f32
    %226 = vector.broadcast %cst_132 : f32 to vector<10x10xf32>
    %227 = arith.mulf %225, %226 : vector<10x10xf32>
    %228 = arith.addf %227, %14 : vector<10x10xf32>
    %cst_133 = arith.constant dense<0xFF800000> : vector<10xf32>
    %229 = vector.multi_reduction <maximumf>, %228, %cst_133 [1] : vector<10x10xf32> to vector<10xf32>
    %230 = vector.shape_cast %229 : vector<10xf32> to vector<10x1xf32>
    %231 = vector.broadcast %230 : vector<10x1xf32> to vector<10x10xf32>
    %232 = arith.subf %228, %231 : vector<10x10xf32>
    %233 = math.exp %232 : vector<10x10xf32>
    %cst_134 = arith.constant dense<0.000000e+00> : vector<10xf32>
    %234 = vector.multi_reduction <add>, %233, %cst_134 [1] : vector<10x10xf32> to vector<10xf32>
    %235 = vector.shape_cast %234 : vector<10xf32> to vector<10x1xf32>
    %236 = tpu.reciprocal %235 {approx = true} : vector<10x1xf32> -> vector<10x1xf32>
    %237 = vector.broadcast %236 : vector<10x1xf32> to vector<10x10xf32>
    %238 = arith.mulf %233, %237 : vector<10x10xf32>
    %239 = arith.truncf %238 : vector<10x10xf32> to vector<10x10xbf16>
    %240 = arith.truncf %222 : vector<10x8xf32> to vector<10x8xbf16>
    %cst_135 = arith.constant dense<0.000000e+00> : vector<10x8xf32>
    %241 = tpu.matmul %239, %240, %cst_135 {dimension_numbers = #tpu.dot_dimension_numbers<[1], [0], [0], [1], [0, 0, 1, 1], [], []>} : vector<10x10xbf16>, vector<10x8xbf16>, vector<10x8xf32> -> vector<10x8xf32>
    %c3_136 = arith.constant 3 : index
    %c0_137 = arith.constant 0 : index
    %c0_138 = arith.constant 0 : index
    %242 = vector.load %arg16[%c3_136, %c0_137, %c0_138] : memref<8x8x32xf32, #tpu.memory_space<vmem>>, vector<1x8x32xf32>
    %243 = vector.shape_cast %242 : vector<1x8x32xf32> to vector<8x32xf32>
    %244 = arith.truncf %241 : vector<10x8xf32> to vector<10x8xbf16>
    %245 = arith.truncf %243 : vector<8x32xf32> to vector<8x32xbf16>
    %cst_139 = arith.constant dense<0.000000e+00> : vector<10x32xf32>
    %246 = tpu.matmul %244, %245, %cst_139 {dimension_numbers = #tpu.dot_dimension_numbers<[1], [0], [0], [1], [0, 0, 1, 1], [], []>} : vector<10x8xbf16>, vector<8x32xbf16>, vector<10x32xf32> -> vector<10x32xf32>
    %247 = arith.addf %195, %246 : vector<10x32xf32>
    %248 = arith.addf %13, %247 : vector<10x32xf32>
    %c0_140 = arith.constant 0 : index
    %c0_141 = arith.constant 0 : index
    %c0_142 = arith.constant 0 : index
    %249 = vector.load %arg17[%c0_140, %c0_141, %c0_142] : memref<2x1x32xf32, #tpu.memory_space<vmem>>, vector<1x1x32xf32>
    %250 = vector.shape_cast %249 : vector<1x1x32xf32> to vector<1x32xf32>
    %251 = vector.broadcast %250 : vector<1x32xf32> to vector<10x32xf32>
    %252 = arith.addf %248, %251 : vector<10x32xf32>
    %c0_143 = arith.constant 0 : index
    %c0_144 = arith.constant 0 : index
    %c0_145 = arith.constant 0 : index
    %253 = vector.load %arg18[%c0_143, %c0_144, %c0_145] : memref<2x1x32xf32, #tpu.memory_space<vmem>>, vector<1x1x32xf32>
    %254 = vector.shape_cast %253 : vector<1x1x32xf32> to vector<1x32xf32>
    %c0_146 = arith.constant 0 : index
    %c0_147 = arith.constant 0 : index
    %c0_148 = arith.constant 0 : index
    %255 = vector.load %arg19[%c0_146, %c0_147, %c0_148] : memref<2x1x32xf32, #tpu.memory_space<vmem>>, vector<1x1x32xf32>
    %256 = vector.shape_cast %255 : vector<1x1x32xf32> to vector<1x32xf32>
    %cst_149 = arith.constant dense<0.000000e+00> : vector<10xf32>
    %257 = vector.multi_reduction <add>, %252, %cst_149 [1] : vector<10x32xf32> to vector<10xf32>
    %258 = vector.shape_cast %257 : vector<10xf32> to vector<10x1xf32>
    %cst_150 = arith.constant 3.200000e+01 : f32
    %259 = vector.broadcast %cst_150 : f32 to vector<10x1xf32>
    %260 = arith.divf %258, %259 : vector<10x1xf32>
    %261 = vector.broadcast %260 : vector<10x1xf32> to vector<10x32xf32>
    %262 = arith.subf %252, %261 : vector<10x32xf32>
    %263 = arith.mulf %262, %262 : vector<10x32xf32>
    %cst_151 = arith.constant dense<0.000000e+00> : vector<10xf32>
    %264 = vector.multi_reduction <add>, %263, %cst_151 [1] : vector<10x32xf32> to vector<10xf32>
    %265 = vector.shape_cast %264 : vector<10xf32> to vector<10x1xf32>
    %cst_152 = arith.constant 3.200000e+01 : f32
    %266 = vector.broadcast %cst_152 : f32 to vector<10x1xf32>
    %267 = arith.divf %265, %266 : vector<10x1xf32>
    %268 = vector.broadcast %260 : vector<10x1xf32> to vector<10x32xf32>
    %269 = arith.subf %252, %268 : vector<10x32xf32>
    %cst_153 = arith.constant 9.99999997E-7 : f32
    %270 = vector.broadcast %cst_153 : f32 to vector<10x1xf32>
    %271 = arith.addf %267, %270 : vector<10x1xf32>
    %272 = math.rsqrt %271 : vector<10x1xf32>
    %273 = vector.broadcast %272 : vector<10x1xf32> to vector<10x32xf32>
    %274 = arith.mulf %269, %273 : vector<10x32xf32>
    %275 = vector.broadcast %254 : vector<1x32xf32> to vector<10x32xf32>
    %276 = arith.mulf %274, %275 : vector<10x32xf32>
    %277 = vector.broadcast %256 : vector<1x32xf32> to vector<10x32xf32>
    %278 = arith.addf %276, %277 : vector<10x32xf32>
    %c0_154 = arith.constant 0 : index
    %c0_155 = arith.constant 0 : index
    %c0_156 = arith.constant 0 : index
    %279 = vector.load %arg20[%c0_154, %c0_155, %c0_156] : memref<2x32x64xf32, #tpu.memory_space<vmem>>, vector<1x32x64xf32>
    %280 = vector.shape_cast %279 : vector<1x32x64xf32> to vector<32x64xf32>
    %281 = arith.truncf %278 : vector<10x32xf32> to vector<10x32xbf16>
    %282 = arith.truncf %280 : vector<32x64xf32> to vector<32x64xbf16>
    %cst_157 = arith.constant dense<0.000000e+00> : vector<10x64xf32>
    %283 = tpu.matmul %281, %282, %cst_157 {dimension_numbers = #tpu.dot_dimension_numbers<[1], [0], [0], [1], [0, 0, 1, 1], [], []>} : vector<10x32xbf16>, vector<32x64xbf16>, vector<10x64xf32> -> vector<10x64xf32>
    %c0_158 = arith.constant 0 : index
    %c0_159 = arith.constant 0 : index
    %c0_160 = arith.constant 0 : index
    %284 = vector.load %arg21[%c0_158, %c0_159, %c0_160] : memref<2x1x64xf32, #tpu.memory_space<vmem>>, vector<1x1x64xf32>
    %285 = vector.shape_cast %284 : vector<1x1x64xf32> to vector<1x64xf32>
    %286 = vector.broadcast %285 : vector<1x64xf32> to vector<10x64xf32>
    %287 = arith.addf %283, %286 : vector<10x64xf32>
    %cst_161 = arith.constant 5.000000e-01 : f32
    %288 = vector.broadcast %cst_161 : f32 to vector<10x64xf32>
    %289 = arith.mulf %288, %287 : vector<10x64xf32>
    %cst_162 = arith.constant 0.707106769 : f32
    %290 = vector.broadcast %cst_162 : f32 to vector<10x64xf32>
    %291 = arith.mulf %287, %290 : vector<10x64xf32>
    %292 = math.erf %291 : vector<10x64xf32>
    %cst_163 = arith.constant 1.000000e+00 : f32
    %293 = vector.broadcast %cst_163 : f32 to vector<10x64xf32>
    %294 = arith.addf %293, %292 : vector<10x64xf32>
    %295 = arith.mulf %289, %294 : vector<10x64xf32>
    %c0_164 = arith.constant 0 : index
    %c0_165 = arith.constant 0 : index
    %c0_166 = arith.constant 0 : index
    %296 = vector.load %arg22[%c0_164, %c0_165, %c0_166] : memref<2x64x32xf32, #tpu.memory_space<vmem>>, vector<1x64x32xf32>
    %297 = vector.shape_cast %296 : vector<1x64x32xf32> to vector<64x32xf32>
    %298 = arith.truncf %295 : vector<10x64xf32> to vector<10x64xbf16>
    %299 = arith.truncf %297 : vector<64x32xf32> to vector<64x32xbf16>
    %cst_167 = arith.constant dense<0.000000e+00> : vector<10x32xf32>
    %300 = tpu.matmul %298, %299, %cst_167 {dimension_numbers = #tpu.dot_dimension_numbers<[1], [0], [0], [1], [0, 0, 1, 1], [], []>} : vector<10x64xbf16>, vector<64x32xbf16>, vector<10x32xf32> -> vector<10x32xf32>
    %301 = arith.addf %252, %300 : vector<10x32xf32>
    %c0_168 = arith.constant 0 : index
    %c0_169 = arith.constant 0 : index
    %c0_170 = arith.constant 0 : index
    %302 = vector.load %arg23[%c0_168, %c0_169, %c0_170] : memref<2x1x32xf32, #tpu.memory_space<vmem>>, vector<1x1x32xf32>
    %303 = vector.shape_cast %302 : vector<1x1x32xf32> to vector<1x32xf32>
    %304 = vector.broadcast %303 : vector<1x32xf32> to vector<10x32xf32>
    %305 = arith.addf %301, %304 : vector<10x32xf32>
    %c1_171 = arith.constant 1 : index
    %c0_172 = arith.constant 0 : index
    %c0_173 = arith.constant 0 : index
    %306 = vector.load %arg8[%c1_171, %c0_172, %c0_173] : memref<2x1x32xf32, #tpu.memory_space<vmem>>, vector<1x1x32xf32>
    %307 = vector.shape_cast %306 : vector<1x1x32xf32> to vector<1x32xf32>
    %c1_174 = arith.constant 1 : index
    %c0_175 = arith.constant 0 : index
    %c0_176 = arith.constant 0 : index
    %308 = vector.load %arg9[%c1_174, %c0_175, %c0_176] : memref<2x1x32xf32, #tpu.memory_space<vmem>>, vector<1x1x32xf32>
    %309 = vector.shape_cast %308 : vector<1x1x32xf32> to vector<1x32xf32>
    %cst_177 = arith.constant dense<0.000000e+00> : vector<10xf32>
    %310 = vector.multi_reduction <add>, %305, %cst_177 [1] : vector<10x32xf32> to vector<10xf32>
    %311 = vector.shape_cast %310 : vector<10xf32> to vector<10x1xf32>
    %cst_178 = arith.constant 3.200000e+01 : f32
    %312 = vector.broadcast %cst_178 : f32 to vector<10x1xf32>
    %313 = arith.divf %311, %312 : vector<10x1xf32>
    %314 = vector.broadcast %313 : vector<10x1xf32> to vector<10x32xf32>
    %315 = arith.subf %305, %314 : vector<10x32xf32>
    %316 = arith.mulf %315, %315 : vector<10x32xf32>
    %cst_179 = arith.constant dense<0.000000e+00> : vector<10xf32>
    %317 = vector.multi_reduction <add>, %316, %cst_179 [1] : vector<10x32xf32> to vector<10xf32>
    %318 = vector.shape_cast %317 : vector<10xf32> to vector<10x1xf32>
    %cst_180 = arith.constant 3.200000e+01 : f32
    %319 = vector.broadcast %cst_180 : f32 to vector<10x1xf32>
    %320 = arith.divf %318, %319 : vector<10x1xf32>
    %321 = vector.broadcast %313 : vector<10x1xf32> to vector<10x32xf32>
    %322 = arith.subf %305, %321 : vector<10x32xf32>
    %cst_181 = arith.constant 9.99999997E-7 : f32
    %323 = vector.broadcast %cst_181 : f32 to vector<10x1xf32>
    %324 = arith.addf %320, %323 : vector<10x1xf32>
    %325 = math.rsqrt %324 : vector<10x1xf32>
    %326 = vector.broadcast %325 : vector<10x1xf32> to vector<10x32xf32>
    %327 = arith.mulf %322, %326 : vector<10x32xf32>
    %328 = vector.broadcast %307 : vector<1x32xf32> to vector<10x32xf32>
    %329 = arith.mulf %327, %328 : vector<10x32xf32>
    %330 = vector.broadcast %309 : vector<1x32xf32> to vector<10x32xf32>
    %331 = arith.addf %329, %330 : vector<10x32xf32>
    %c4 = arith.constant 4 : index
    %c0_182 = arith.constant 0 : index
    %c0_183 = arith.constant 0 : index
    %332 = vector.load %arg10[%c4, %c0_182, %c0_183] : memref<8x32x8xf32, #tpu.memory_space<vmem>>, vector<1x32x8xf32>
    %333 = vector.shape_cast %332 : vector<1x32x8xf32> to vector<32x8xf32>
    %334 = arith.truncf %331 : vector<10x32xf32> to vector<10x32xbf16>
    %335 = arith.truncf %333 : vector<32x8xf32> to vector<32x8xbf16>
    %cst_184 = arith.constant dense<0.000000e+00> : vector<10x8xf32>
    %336 = tpu.matmul %334, %335, %cst_184 {dimension_numbers = #tpu.dot_dimension_numbers<[1], [0], [0], [1], [0, 0, 1, 1], [], []>} : vector<10x32xbf16>, vector<32x8xbf16>, vector<10x8xf32> -> vector<10x8xf32>
    %c4_185 = arith.constant 4 : index
    %c0_186 = arith.constant 0 : index
    %c0_187 = arith.constant 0 : index
    %337 = vector.load %arg11[%c4_185, %c0_186, %c0_187] : memref<8x1x8xf32, #tpu.memory_space<vmem>>, vector<1x1x8xf32>
    %338 = vector.shape_cast %337 : vector<1x1x8xf32> to vector<1x8xf32>
    %339 = vector.broadcast %338 : vector<1x8xf32> to vector<10x8xf32>
    %340 = arith.addf %336, %339 : vector<10x8xf32>
    %c4_188 = arith.constant 4 : index
    %c0_189 = arith.constant 0 : index
    %c0_190 = arith.constant 0 : index
    %341 = vector.load %arg12[%c4_188, %c0_189, %c0_190] : memref<8x32x8xf32, #tpu.memory_space<vmem>>, vector<1x32x8xf32>
    %342 = vector.shape_cast %341 : vector<1x32x8xf32> to vector<32x8xf32>
    %343 = arith.truncf %331 : vector<10x32xf32> to vector<10x32xbf16>
    %344 = arith.truncf %342 : vector<32x8xf32> to vector<32x8xbf16>
    %cst_191 = arith.constant dense<0.000000e+00> : vector<10x8xf32>
    %345 = tpu.matmul %343, %344, %cst_191 {dimension_numbers = #tpu.dot_dimension_numbers<[1], [0], [0], [1], [0, 0, 1, 1], [], []>} : vector<10x32xbf16>, vector<32x8xbf16>, vector<10x8xf32> -> vector<10x8xf32>
    %c4_192 = arith.constant 4 : index
    %c0_193 = arith.constant 0 : index
    %c0_194 = arith.constant 0 : index
    %346 = vector.load %arg13[%c4_192, %c0_193, %c0_194] : memref<8x1x8xf32, #tpu.memory_space<vmem>>, vector<1x1x8xf32>
    %347 = vector.shape_cast %346 : vector<1x1x8xf32> to vector<1x8xf32>
    %348 = vector.broadcast %347 : vector<1x8xf32> to vector<10x8xf32>
    %349 = arith.addf %345, %348 : vector<10x8xf32>
    %c4_195 = arith.constant 4 : index
    %c0_196 = arith.constant 0 : index
    %c0_197 = arith.constant 0 : index
    %350 = vector.load %arg14[%c4_195, %c0_196, %c0_197] : memref<8x32x8xf32, #tpu.memory_space<vmem>>, vector<1x32x8xf32>
    %351 = vector.shape_cast %350 : vector<1x32x8xf32> to vector<32x8xf32>
    %352 = arith.truncf %331 : vector<10x32xf32> to vector<10x32xbf16>
    %353 = arith.truncf %351 : vector<32x8xf32> to vector<32x8xbf16>
    %cst_198 = arith.constant dense<0.000000e+00> : vector<10x8xf32>
    %354 = tpu.matmul %352, %353, %cst_198 {dimension_numbers = #tpu.dot_dimension_numbers<[1], [0], [0], [1], [0, 0, 1, 1], [], []>} : vector<10x32xbf16>, vector<32x8xbf16>, vector<10x8xf32> -> vector<10x8xf32>
    %c4_199 = arith.constant 4 : index
    %c0_200 = arith.constant 0 : index
    %c0_201 = arith.constant 0 : index
    %355 = vector.load %arg15[%c4_199, %c0_200, %c0_201] : memref<8x1x8xf32, #tpu.memory_space<vmem>>, vector<1x1x8xf32>
    %356 = vector.shape_cast %355 : vector<1x1x8xf32> to vector<1x8xf32>
    %357 = vector.broadcast %356 : vector<1x8xf32> to vector<10x8xf32>
    %358 = arith.addf %354, %357 : vector<10x8xf32>
    %359 = arith.truncf %340 : vector<10x8xf32> to vector<10x8xbf16>
    %360 = arith.truncf %349 : vector<10x8xf32> to vector<10x8xbf16>
    %cst_202 = arith.constant dense<0.000000e+00> : vector<10x10xf32>
    %361 = tpu.matmul %359, %360, %cst_202 {dimension_numbers = #tpu.dot_dimension_numbers<[1], [1], [0], [0], [0, 0, 1, 0], [], []>} : vector<10x8xbf16>, vector<10x8xbf16>, vector<10x10xf32> -> vector<10x10xf32>
    %cst_203 = arith.constant 0.353553385 : f32
    %362 = vector.broadcast %cst_203 : f32 to vector<10x10xf32>
    %363 = arith.mulf %361, %362 : vector<10x10xf32>
    %364 = arith.addf %363, %14 : vector<10x10xf32>
    %cst_204 = arith.constant dense<0xFF800000> : vector<10xf32>
    %365 = vector.multi_reduction <maximumf>, %364, %cst_204 [1] : vector<10x10xf32> to vector<10xf32>
    %366 = vector.shape_cast %365 : vector<10xf32> to vector<10x1xf32>
    %367 = vector.broadcast %366 : vector<10x1xf32> to vector<10x10xf32>
    %368 = arith.subf %364, %367 : vector<10x10xf32>
    %369 = math.exp %368 : vector<10x10xf32>
    %cst_205 = arith.constant dense<0.000000e+00> : vector<10xf32>
    %370 = vector.multi_reduction <add>, %369, %cst_205 [1] : vector<10x10xf32> to vector<10xf32>
    %371 = vector.shape_cast %370 : vector<10xf32> to vector<10x1xf32>
    %372 = tpu.reciprocal %371 {approx = true} : vector<10x1xf32> -> vector<10x1xf32>
    %373 = vector.broadcast %372 : vector<10x1xf32> to vector<10x10xf32>
    %374 = arith.mulf %369, %373 : vector<10x10xf32>
    %375 = arith.truncf %374 : vector<10x10xf32> to vector<10x10xbf16>
    %376 = arith.truncf %358 : vector<10x8xf32> to vector<10x8xbf16>
    %cst_206 = arith.constant dense<0.000000e+00> : vector<10x8xf32>
    %377 = tpu.matmul %375, %376, %cst_206 {dimension_numbers = #tpu.dot_dimension_numbers<[1], [0], [0], [1], [0, 0, 1, 1], [], []>} : vector<10x10xbf16>, vector<10x8xbf16>, vector<10x8xf32> -> vector<10x8xf32>
    %c4_207 = arith.constant 4 : index
    %c0_208 = arith.constant 0 : index
    %c0_209 = arith.constant 0 : index
    %378 = vector.load %arg16[%c4_207, %c0_208, %c0_209] : memref<8x8x32xf32, #tpu.memory_space<vmem>>, vector<1x8x32xf32>
    %379 = vector.shape_cast %378 : vector<1x8x32xf32> to vector<8x32xf32>
    %380 = arith.truncf %377 : vector<10x8xf32> to vector<10x8xbf16>
    %381 = arith.truncf %379 : vector<8x32xf32> to vector<8x32xbf16>
    %cst_210 = arith.constant dense<0.000000e+00> : vector<10x32xf32>
    %382 = tpu.matmul %380, %381, %cst_210 {dimension_numbers = #tpu.dot_dimension_numbers<[1], [0], [0], [1], [0, 0, 1, 1], [], []>} : vector<10x8xbf16>, vector<8x32xbf16>, vector<10x32xf32> -> vector<10x32xf32>
    %c5 = arith.constant 5 : index
    %c0_211 = arith.constant 0 : index
    %c0_212 = arith.constant 0 : index
    %383 = vector.load %arg10[%c5, %c0_211, %c0_212] : memref<8x32x8xf32, #tpu.memory_space<vmem>>, vector<1x32x8xf32>
    %384 = vector.shape_cast %383 : vector<1x32x8xf32> to vector<32x8xf32>
    %385 = arith.truncf %331 : vector<10x32xf32> to vector<10x32xbf16>
    %386 = arith.truncf %384 : vector<32x8xf32> to vector<32x8xbf16>
    %cst_213 = arith.constant dense<0.000000e+00> : vector<10x8xf32>
    %387 = tpu.matmul %385, %386, %cst_213 {dimension_numbers = #tpu.dot_dimension_numbers<[1], [0], [0], [1], [0, 0, 1, 1], [], []>} : vector<10x32xbf16>, vector<32x8xbf16>, vector<10x8xf32> -> vector<10x8xf32>
    %c5_214 = arith.constant 5 : index
    %c0_215 = arith.constant 0 : index
    %c0_216 = arith.constant 0 : index
    %388 = vector.load %arg11[%c5_214, %c0_215, %c0_216] : memref<8x1x8xf32, #tpu.memory_space<vmem>>, vector<1x1x8xf32>
    %389 = vector.shape_cast %388 : vector<1x1x8xf32> to vector<1x8xf32>
    %390 = vector.broadcast %389 : vector<1x8xf32> to vector<10x8xf32>
    %391 = arith.addf %387, %390 : vector<10x8xf32>
    %c5_217 = arith.constant 5 : index
    %c0_218 = arith.constant 0 : index
    %c0_219 = arith.constant 0 : index
    %392 = vector.load %arg12[%c5_217, %c0_218, %c0_219] : memref<8x32x8xf32, #tpu.memory_space<vmem>>, vector<1x32x8xf32>
    %393 = vector.shape_cast %392 : vector<1x32x8xf32> to vector<32x8xf32>
    %394 = arith.truncf %331 : vector<10x32xf32> to vector<10x32xbf16>
    %395 = arith.truncf %393 : vector<32x8xf32> to vector<32x8xbf16>
    %cst_220 = arith.constant dense<0.000000e+00> : vector<10x8xf32>
    %396 = tpu.matmul %394, %395, %cst_220 {dimension_numbers = #tpu.dot_dimension_numbers<[1], [0], [0], [1], [0, 0, 1, 1], [], []>} : vector<10x32xbf16>, vector<32x8xbf16>, vector<10x8xf32> -> vector<10x8xf32>
    %c5_221 = arith.constant 5 : index
    %c0_222 = arith.constant 0 : index
    %c0_223 = arith.constant 0 : index
    %397 = vector.load %arg13[%c5_221, %c0_222, %c0_223] : memref<8x1x8xf32, #tpu.memory_space<vmem>>, vector<1x1x8xf32>
    %398 = vector.shape_cast %397 : vector<1x1x8xf32> to vector<1x8xf32>
    %399 = vector.broadcast %398 : vector<1x8xf32> to vector<10x8xf32>
    %400 = arith.addf %396, %399 : vector<10x8xf32>
    %c5_224 = arith.constant 5 : index
    %c0_225 = arith.constant 0 : index
    %c0_226 = arith.constant 0 : index
    %401 = vector.load %arg14[%c5_224, %c0_225, %c0_226] : memref<8x32x8xf32, #tpu.memory_space<vmem>>, vector<1x32x8xf32>
    %402 = vector.shape_cast %401 : vector<1x32x8xf32> to vector<32x8xf32>
    %403 = arith.truncf %331 : vector<10x32xf32> to vector<10x32xbf16>
    %404 = arith.truncf %402 : vector<32x8xf32> to vector<32x8xbf16>
    %cst_227 = arith.constant dense<0.000000e+00> : vector<10x8xf32>
    %405 = tpu.matmul %403, %404, %cst_227 {dimension_numbers = #tpu.dot_dimension_numbers<[1], [0], [0], [1], [0, 0, 1, 1], [], []>} : vector<10x32xbf16>, vector<32x8xbf16>, vector<10x8xf32> -> vector<10x8xf32>
    %c5_228 = arith.constant 5 : index
    %c0_229 = arith.constant 0 : index
    %c0_230 = arith.constant 0 : index
    %406 = vector.load %arg15[%c5_228, %c0_229, %c0_230] : memref<8x1x8xf32, #tpu.memory_space<vmem>>, vector<1x1x8xf32>
    %407 = vector.shape_cast %406 : vector<1x1x8xf32> to vector<1x8xf32>
    %408 = vector.broadcast %407 : vector<1x8xf32> to vector<10x8xf32>
    %409 = arith.addf %405, %408 : vector<10x8xf32>
    %410 = arith.truncf %391 : vector<10x8xf32> to vector<10x8xbf16>
    %411 = arith.truncf %400 : vector<10x8xf32> to vector<10x8xbf16>
    %cst_231 = arith.constant dense<0.000000e+00> : vector<10x10xf32>
    %412 = tpu.matmul %410, %411, %cst_231 {dimension_numbers = #tpu.dot_dimension_numbers<[1], [1], [0], [0], [0, 0, 1, 0], [], []>} : vector<10x8xbf16>, vector<10x8xbf16>, vector<10x10xf32> -> vector<10x10xf32>
    %cst_232 = arith.constant 0.353553385 : f32
    %413 = vector.broadcast %cst_232 : f32 to vector<10x10xf32>
    %414 = arith.mulf %412, %413 : vector<10x10xf32>
    %415 = arith.addf %414, %14 : vector<10x10xf32>
    %cst_233 = arith.constant dense<0xFF800000> : vector<10xf32>
    %416 = vector.multi_reduction <maximumf>, %415, %cst_233 [1] : vector<10x10xf32> to vector<10xf32>
    %417 = vector.shape_cast %416 : vector<10xf32> to vector<10x1xf32>
    %418 = vector.broadcast %417 : vector<10x1xf32> to vector<10x10xf32>
    %419 = arith.subf %415, %418 : vector<10x10xf32>
    %420 = math.exp %419 : vector<10x10xf32>
    %cst_234 = arith.constant dense<0.000000e+00> : vector<10xf32>
    %421 = vector.multi_reduction <add>, %420, %cst_234 [1] : vector<10x10xf32> to vector<10xf32>
    %422 = vector.shape_cast %421 : vector<10xf32> to vector<10x1xf32>
    %423 = tpu.reciprocal %422 {approx = true} : vector<10x1xf32> -> vector<10x1xf32>
    %424 = vector.broadcast %423 : vector<10x1xf32> to vector<10x10xf32>
    %425 = arith.mulf %420, %424 : vector<10x10xf32>
    %426 = arith.truncf %425 : vector<10x10xf32> to vector<10x10xbf16>
    %427 = arith.truncf %409 : vector<10x8xf32> to vector<10x8xbf16>
    %cst_235 = arith.constant dense<0.000000e+00> : vector<10x8xf32>
    %428 = tpu.matmul %426, %427, %cst_235 {dimension_numbers = #tpu.dot_dimension_numbers<[1], [0], [0], [1], [0, 0, 1, 1], [], []>} : vector<10x10xbf16>, vector<10x8xbf16>, vector<10x8xf32> -> vector<10x8xf32>
    %c5_236 = arith.constant 5 : index
    %c0_237 = arith.constant 0 : index
    %c0_238 = arith.constant 0 : index
    %429 = vector.load %arg16[%c5_236, %c0_237, %c0_238] : memref<8x8x32xf32, #tpu.memory_space<vmem>>, vector<1x8x32xf32>
    %430 = vector.shape_cast %429 : vector<1x8x32xf32> to vector<8x32xf32>
    %431 = arith.truncf %428 : vector<10x8xf32> to vector<10x8xbf16>
    %432 = arith.truncf %430 : vector<8x32xf32> to vector<8x32xbf16>
    %cst_239 = arith.constant dense<0.000000e+00> : vector<10x32xf32>
    %433 = tpu.matmul %431, %432, %cst_239 {dimension_numbers = #tpu.dot_dimension_numbers<[1], [0], [0], [1], [0, 0, 1, 1], [], []>} : vector<10x8xbf16>, vector<8x32xbf16>, vector<10x32xf32> -> vector<10x32xf32>
    %434 = arith.addf %382, %433 : vector<10x32xf32>
    %c6 = arith.constant 6 : index
    %c0_240 = arith.constant 0 : index
    %c0_241 = arith.constant 0 : index
    %435 = vector.load %arg10[%c6, %c0_240, %c0_241] : memref<8x32x8xf32, #tpu.memory_space<vmem>>, vector<1x32x8xf32>
    %436 = vector.shape_cast %435 : vector<1x32x8xf32> to vector<32x8xf32>
    %437 = arith.truncf %331 : vector<10x32xf32> to vector<10x32xbf16>
    %438 = arith.truncf %436 : vector<32x8xf32> to vector<32x8xbf16>
    %cst_242 = arith.constant dense<0.000000e+00> : vector<10x8xf32>
    %439 = tpu.matmul %437, %438, %cst_242 {dimension_numbers = #tpu.dot_dimension_numbers<[1], [0], [0], [1], [0, 0, 1, 1], [], []>} : vector<10x32xbf16>, vector<32x8xbf16>, vector<10x8xf32> -> vector<10x8xf32>
    %c6_243 = arith.constant 6 : index
    %c0_244 = arith.constant 0 : index
    %c0_245 = arith.constant 0 : index
    %440 = vector.load %arg11[%c6_243, %c0_244, %c0_245] : memref<8x1x8xf32, #tpu.memory_space<vmem>>, vector<1x1x8xf32>
    %441 = vector.shape_cast %440 : vector<1x1x8xf32> to vector<1x8xf32>
    %442 = vector.broadcast %441 : vector<1x8xf32> to vector<10x8xf32>
    %443 = arith.addf %439, %442 : vector<10x8xf32>
    %c6_246 = arith.constant 6 : index
    %c0_247 = arith.constant 0 : index
    %c0_248 = arith.constant 0 : index
    %444 = vector.load %arg12[%c6_246, %c0_247, %c0_248] : memref<8x32x8xf32, #tpu.memory_space<vmem>>, vector<1x32x8xf32>
    %445 = vector.shape_cast %444 : vector<1x32x8xf32> to vector<32x8xf32>
    %446 = arith.truncf %331 : vector<10x32xf32> to vector<10x32xbf16>
    %447 = arith.truncf %445 : vector<32x8xf32> to vector<32x8xbf16>
    %cst_249 = arith.constant dense<0.000000e+00> : vector<10x8xf32>
    %448 = tpu.matmul %446, %447, %cst_249 {dimension_numbers = #tpu.dot_dimension_numbers<[1], [0], [0], [1], [0, 0, 1, 1], [], []>} : vector<10x32xbf16>, vector<32x8xbf16>, vector<10x8xf32> -> vector<10x8xf32>
    %c6_250 = arith.constant 6 : index
    %c0_251 = arith.constant 0 : index
    %c0_252 = arith.constant 0 : index
    %449 = vector.load %arg13[%c6_250, %c0_251, %c0_252] : memref<8x1x8xf32, #tpu.memory_space<vmem>>, vector<1x1x8xf32>
    %450 = vector.shape_cast %449 : vector<1x1x8xf32> to vector<1x8xf32>
    %451 = vector.broadcast %450 : vector<1x8xf32> to vector<10x8xf32>
    %452 = arith.addf %448, %451 : vector<10x8xf32>
    %c6_253 = arith.constant 6 : index
    %c0_254 = arith.constant 0 : index
    %c0_255 = arith.constant 0 : index
    %453 = vector.load %arg14[%c6_253, %c0_254, %c0_255] : memref<8x32x8xf32, #tpu.memory_space<vmem>>, vector<1x32x8xf32>
    %454 = vector.shape_cast %453 : vector<1x32x8xf32> to vector<32x8xf32>
    %455 = arith.truncf %331 : vector<10x32xf32> to vector<10x32xbf16>
    %456 = arith.truncf %454 : vector<32x8xf32> to vector<32x8xbf16>
    %cst_256 = arith.constant dense<0.000000e+00> : vector<10x8xf32>
    %457 = tpu.matmul %455, %456, %cst_256 {dimension_numbers = #tpu.dot_dimension_numbers<[1], [0], [0], [1], [0, 0, 1, 1], [], []>} : vector<10x32xbf16>, vector<32x8xbf16>, vector<10x8xf32> -> vector<10x8xf32>
    %c6_257 = arith.constant 6 : index
    %c0_258 = arith.constant 0 : index
    %c0_259 = arith.constant 0 : index
    %458 = vector.load %arg15[%c6_257, %c0_258, %c0_259] : memref<8x1x8xf32, #tpu.memory_space<vmem>>, vector<1x1x8xf32>
    %459 = vector.shape_cast %458 : vector<1x1x8xf32> to vector<1x8xf32>
    %460 = vector.broadcast %459 : vector<1x8xf32> to vector<10x8xf32>
    %461 = arith.addf %457, %460 : vector<10x8xf32>
    %462 = arith.truncf %443 : vector<10x8xf32> to vector<10x8xbf16>
    %463 = arith.truncf %452 : vector<10x8xf32> to vector<10x8xbf16>
    %cst_260 = arith.constant dense<0.000000e+00> : vector<10x10xf32>
    %464 = tpu.matmul %462, %463, %cst_260 {dimension_numbers = #tpu.dot_dimension_numbers<[1], [1], [0], [0], [0, 0, 1, 0], [], []>} : vector<10x8xbf16>, vector<10x8xbf16>, vector<10x10xf32> -> vector<10x10xf32>
    %cst_261 = arith.constant 0.353553385 : f32
    %465 = vector.broadcast %cst_261 : f32 to vector<10x10xf32>
    %466 = arith.mulf %464, %465 : vector<10x10xf32>
    %467 = arith.addf %466, %14 : vector<10x10xf32>
    %cst_262 = arith.constant dense<0xFF800000> : vector<10xf32>
    %468 = vector.multi_reduction <maximumf>, %467, %cst_262 [1] : vector<10x10xf32> to vector<10xf32>
    %469 = vector.shape_cast %468 : vector<10xf32> to vector<10x1xf32>
    %470 = vector.broadcast %469 : vector<10x1xf32> to vector<10x10xf32>
    %471 = arith.subf %467, %470 : vector<10x10xf32>
    %472 = math.exp %471 : vector<10x10xf32>
    %cst_263 = arith.constant dense<0.000000e+00> : vector<10xf32>
    %473 = vector.multi_reduction <add>, %472, %cst_263 [1] : vector<10x10xf32> to vector<10xf32>
    %474 = vector.shape_cast %473 : vector<10xf32> to vector<10x1xf32>
    %475 = tpu.reciprocal %474 {approx = true} : vector<10x1xf32> -> vector<10x1xf32>
    %476 = vector.broadcast %475 : vector<10x1xf32> to vector<10x10xf32>
    %477 = arith.mulf %472, %476 : vector<10x10xf32>
    %478 = arith.truncf %477 : vector<10x10xf32> to vector<10x10xbf16>
    %479 = arith.truncf %461 : vector<10x8xf32> to vector<10x8xbf16>
    %cst_264 = arith.constant dense<0.000000e+00> : vector<10x8xf32>
    %480 = tpu.matmul %478, %479, %cst_264 {dimension_numbers = #tpu.dot_dimension_numbers<[1], [0], [0], [1], [0, 0, 1, 1], [], []>} : vector<10x10xbf16>, vector<10x8xbf16>, vector<10x8xf32> -> vector<10x8xf32>
    %c6_265 = arith.constant 6 : index
    %c0_266 = arith.constant 0 : index
    %c0_267 = arith.constant 0 : index
    %481 = vector.load %arg16[%c6_265, %c0_266, %c0_267] : memref<8x8x32xf32, #tpu.memory_space<vmem>>, vector<1x8x32xf32>
    %482 = vector.shape_cast %481 : vector<1x8x32xf32> to vector<8x32xf32>
    %483 = arith.truncf %480 : vector<10x8xf32> to vector<10x8xbf16>
    %484 = arith.truncf %482 : vector<8x32xf32> to vector<8x32xbf16>
    %cst_268 = arith.constant dense<0.000000e+00> : vector<10x32xf32>
    %485 = tpu.matmul %483, %484, %cst_268 {dimension_numbers = #tpu.dot_dimension_numbers<[1], [0], [0], [1], [0, 0, 1, 1], [], []>} : vector<10x8xbf16>, vector<8x32xbf16>, vector<10x32xf32> -> vector<10x32xf32>
    %486 = arith.addf %434, %485 : vector<10x32xf32>
    %c7 = arith.constant 7 : index
    %c0_269 = arith.constant 0 : index
    %c0_270 = arith.constant 0 : index
    %487 = vector.load %arg10[%c7, %c0_269, %c0_270] : memref<8x32x8xf32, #tpu.memory_space<vmem>>, vector<1x32x8xf32>
    %488 = vector.shape_cast %487 : vector<1x32x8xf32> to vector<32x8xf32>
    %489 = arith.truncf %331 : vector<10x32xf32> to vector<10x32xbf16>
    %490 = arith.truncf %488 : vector<32x8xf32> to vector<32x8xbf16>
    %cst_271 = arith.constant dense<0.000000e+00> : vector<10x8xf32>
    %491 = tpu.matmul %489, %490, %cst_271 {dimension_numbers = #tpu.dot_dimension_numbers<[1], [0], [0], [1], [0, 0, 1, 1], [], []>} : vector<10x32xbf16>, vector<32x8xbf16>, vector<10x8xf32> -> vector<10x8xf32>
    %c7_272 = arith.constant 7 : index
    %c0_273 = arith.constant 0 : index
    %c0_274 = arith.constant 0 : index
    %492 = vector.load %arg11[%c7_272, %c0_273, %c0_274] : memref<8x1x8xf32, #tpu.memory_space<vmem>>, vector<1x1x8xf32>
    %493 = vector.shape_cast %492 : vector<1x1x8xf32> to vector<1x8xf32>
    %494 = vector.broadcast %493 : vector<1x8xf32> to vector<10x8xf32>
    %495 = arith.addf %491, %494 : vector<10x8xf32>
    %c7_275 = arith.constant 7 : index
    %c0_276 = arith.constant 0 : index
    %c0_277 = arith.constant 0 : index
    %496 = vector.load %arg12[%c7_275, %c0_276, %c0_277] : memref<8x32x8xf32, #tpu.memory_space<vmem>>, vector<1x32x8xf32>
    %497 = vector.shape_cast %496 : vector<1x32x8xf32> to vector<32x8xf32>
    %498 = arith.truncf %331 : vector<10x32xf32> to vector<10x32xbf16>
    %499 = arith.truncf %497 : vector<32x8xf32> to vector<32x8xbf16>
    %cst_278 = arith.constant dense<0.000000e+00> : vector<10x8xf32>
    %500 = tpu.matmul %498, %499, %cst_278 {dimension_numbers = #tpu.dot_dimension_numbers<[1], [0], [0], [1], [0, 0, 1, 1], [], []>} : vector<10x32xbf16>, vector<32x8xbf16>, vector<10x8xf32> -> vector<10x8xf32>
    %c7_279 = arith.constant 7 : index
    %c0_280 = arith.constant 0 : index
    %c0_281 = arith.constant 0 : index
    %501 = vector.load %arg13[%c7_279, %c0_280, %c0_281] : memref<8x1x8xf32, #tpu.memory_space<vmem>>, vector<1x1x8xf32>
    %502 = vector.shape_cast %501 : vector<1x1x8xf32> to vector<1x8xf32>
    %503 = vector.broadcast %502 : vector<1x8xf32> to vector<10x8xf32>
    %504 = arith.addf %500, %503 : vector<10x8xf32>
    %c7_282 = arith.constant 7 : index
    %c0_283 = arith.constant 0 : index
    %c0_284 = arith.constant 0 : index
    %505 = vector.load %arg14[%c7_282, %c0_283, %c0_284] : memref<8x32x8xf32, #tpu.memory_space<vmem>>, vector<1x32x8xf32>
    %506 = vector.shape_cast %505 : vector<1x32x8xf32> to vector<32x8xf32>
    %507 = arith.truncf %331 : vector<10x32xf32> to vector<10x32xbf16>
    %508 = arith.truncf %506 : vector<32x8xf32> to vector<32x8xbf16>
    %cst_285 = arith.constant dense<0.000000e+00> : vector<10x8xf32>
    %509 = tpu.matmul %507, %508, %cst_285 {dimension_numbers = #tpu.dot_dimension_numbers<[1], [0], [0], [1], [0, 0, 1, 1], [], []>} : vector<10x32xbf16>, vector<32x8xbf16>, vector<10x8xf32> -> vector<10x8xf32>
    %c7_286 = arith.constant 7 : index
    %c0_287 = arith.constant 0 : index
    %c0_288 = arith.constant 0 : index
    %510 = vector.load %arg15[%c7_286, %c0_287, %c0_288] : memref<8x1x8xf32, #tpu.memory_space<vmem>>, vector<1x1x8xf32>
    %511 = vector.shape_cast %510 : vector<1x1x8xf32> to vector<1x8xf32>
    %512 = vector.broadcast %511 : vector<1x8xf32> to vector<10x8xf32>
    %513 = arith.addf %509, %512 : vector<10x8xf32>
    %514 = arith.truncf %495 : vector<10x8xf32> to vector<10x8xbf16>
    %515 = arith.truncf %504 : vector<10x8xf32> to vector<10x8xbf16>
    %cst_289 = arith.constant dense<0.000000e+00> : vector<10x10xf32>
    %516 = tpu.matmul %514, %515, %cst_289 {dimension_numbers = #tpu.dot_dimension_numbers<[1], [1], [0], [0], [0, 0, 1, 0], [], []>} : vector<10x8xbf16>, vector<10x8xbf16>, vector<10x10xf32> -> vector<10x10xf32>
    %cst_290 = arith.constant 0.353553385 : f32
    %517 = vector.broadcast %cst_290 : f32 to vector<10x10xf32>
    %518 = arith.mulf %516, %517 : vector<10x10xf32>
    %519 = arith.addf %518, %14 : vector<10x10xf32>
    %cst_291 = arith.constant dense<0xFF800000> : vector<10xf32>
    %520 = vector.multi_reduction <maximumf>, %519, %cst_291 [1] : vector<10x10xf32> to vector<10xf32>
    %521 = vector.shape_cast %520 : vector<10xf32> to vector<10x1xf32>
    %522 = vector.broadcast %521 : vector<10x1xf32> to vector<10x10xf32>
    %523 = arith.subf %519, %522 : vector<10x10xf32>
    %524 = math.exp %523 : vector<10x10xf32>
    %cst_292 = arith.constant dense<0.000000e+00> : vector<10xf32>
    %525 = vector.multi_reduction <add>, %524, %cst_292 [1] : vector<10x10xf32> to vector<10xf32>
    %526 = vector.shape_cast %525 : vector<10xf32> to vector<10x1xf32>
    %527 = tpu.reciprocal %526 {approx = true} : vector<10x1xf32> -> vector<10x1xf32>
    %528 = vector.broadcast %527 : vector<10x1xf32> to vector<10x10xf32>
    %529 = arith.mulf %524, %528 : vector<10x10xf32>
    %530 = arith.truncf %529 : vector<10x10xf32> to vector<10x10xbf16>
    %531 = arith.truncf %513 : vector<10x8xf32> to vector<10x8xbf16>
    %cst_293 = arith.constant dense<0.000000e+00> : vector<10x8xf32>
    %532 = tpu.matmul %530, %531, %cst_293 {dimension_numbers = #tpu.dot_dimension_numbers<[1], [0], [0], [1], [0, 0, 1, 1], [], []>} : vector<10x10xbf16>, vector<10x8xbf16>, vector<10x8xf32> -> vector<10x8xf32>
    %c7_294 = arith.constant 7 : index
    %c0_295 = arith.constant 0 : index
    %c0_296 = arith.constant 0 : index
    %533 = vector.load %arg16[%c7_294, %c0_295, %c0_296] : memref<8x8x32xf32, #tpu.memory_space<vmem>>, vector<1x8x32xf32>
    %534 = vector.shape_cast %533 : vector<1x8x32xf32> to vector<8x32xf32>
    %535 = arith.truncf %532 : vector<10x8xf32> to vector<10x8xbf16>
    %536 = arith.truncf %534 : vector<8x32xf32> to vector<8x32xbf16>
    %cst_297 = arith.constant dense<0.000000e+00> : vector<10x32xf32>
    %537 = tpu.matmul %535, %536, %cst_297 {dimension_numbers = #tpu.dot_dimension_numbers<[1], [0], [0], [1], [0, 0, 1, 1], [], []>} : vector<10x8xbf16>, vector<8x32xbf16>, vector<10x32xf32> -> vector<10x32xf32>
    %538 = arith.addf %486, %537 : vector<10x32xf32>
    %539 = arith.addf %305, %538 : vector<10x32xf32>
    %c1_298 = arith.constant 1 : index
    %c0_299 = arith.constant 0 : index
    %c0_300 = arith.constant 0 : index
    %540 = vector.load %arg17[%c1_298, %c0_299, %c0_300] : memref<2x1x32xf32, #tpu.memory_space<vmem>>, vector<1x1x32xf32>
    %541 = vector.shape_cast %540 : vector<1x1x32xf32> to vector<1x32xf32>
    %542 = vector.broadcast %541 : vector<1x32xf32> to vector<10x32xf32>
    %543 = arith.addf %539, %542 : vector<10x32xf32>
    %c1_301 = arith.constant 1 : index
    %c0_302 = arith.constant 0 : index
    %c0_303 = arith.constant 0 : index
    %544 = vector.load %arg18[%c1_301, %c0_302, %c0_303] : memref<2x1x32xf32, #tpu.memory_space<vmem>>, vector<1x1x32xf32>
    %545 = vector.shape_cast %544 : vector<1x1x32xf32> to vector<1x32xf32>
    %c1_304 = arith.constant 1 : index
    %c0_305 = arith.constant 0 : index
    %c0_306 = arith.constant 0 : index
    %546 = vector.load %arg19[%c1_304, %c0_305, %c0_306] : memref<2x1x32xf32, #tpu.memory_space<vmem>>, vector<1x1x32xf32>
    %547 = vector.shape_cast %546 : vector<1x1x32xf32> to vector<1x32xf32>
    %cst_307 = arith.constant dense<0.000000e+00> : vector<10xf32>
    %548 = vector.multi_reduction <add>, %543, %cst_307 [1] : vector<10x32xf32> to vector<10xf32>
    %549 = vector.shape_cast %548 : vector<10xf32> to vector<10x1xf32>
    %cst_308 = arith.constant 3.200000e+01 : f32
    %550 = vector.broadcast %cst_308 : f32 to vector<10x1xf32>
    %551 = arith.divf %549, %550 : vector<10x1xf32>
    %552 = vector.broadcast %551 : vector<10x1xf32> to vector<10x32xf32>
    %553 = arith.subf %543, %552 : vector<10x32xf32>
    %554 = arith.mulf %553, %553 : vector<10x32xf32>
    %cst_309 = arith.constant dense<0.000000e+00> : vector<10xf32>
    %555 = vector.multi_reduction <add>, %554, %cst_309 [1] : vector<10x32xf32> to vector<10xf32>
    %556 = vector.shape_cast %555 : vector<10xf32> to vector<10x1xf32>
    %cst_310 = arith.constant 3.200000e+01 : f32
    %557 = vector.broadcast %cst_310 : f32 to vector<10x1xf32>
    %558 = arith.divf %556, %557 : vector<10x1xf32>
    %559 = vector.broadcast %551 : vector<10x1xf32> to vector<10x32xf32>
    %560 = arith.subf %543, %559 : vector<10x32xf32>
    %cst_311 = arith.constant 9.99999997E-7 : f32
    %561 = vector.broadcast %cst_311 : f32 to vector<10x1xf32>
    %562 = arith.addf %558, %561 : vector<10x1xf32>
    %563 = math.rsqrt %562 : vector<10x1xf32>
    %564 = vector.broadcast %563 : vector<10x1xf32> to vector<10x32xf32>
    %565 = arith.mulf %560, %564 : vector<10x32xf32>
    %566 = vector.broadcast %545 : vector<1x32xf32> to vector<10x32xf32>
    %567 = arith.mulf %565, %566 : vector<10x32xf32>
    %568 = vector.broadcast %547 : vector<1x32xf32> to vector<10x32xf32>
    %569 = arith.addf %567, %568 : vector<10x32xf32>
    %c1_312 = arith.constant 1 : index
    %c0_313 = arith.constant 0 : index
    %c0_314 = arith.constant 0 : index
    %570 = vector.load %arg20[%c1_312, %c0_313, %c0_314] : memref<2x32x64xf32, #tpu.memory_space<vmem>>, vector<1x32x64xf32>
    %571 = vector.shape_cast %570 : vector<1x32x64xf32> to vector<32x64xf32>
    %572 = arith.truncf %569 : vector<10x32xf32> to vector<10x32xbf16>
    %573 = arith.truncf %571 : vector<32x64xf32> to vector<32x64xbf16>
    %cst_315 = arith.constant dense<0.000000e+00> : vector<10x64xf32>
    %574 = tpu.matmul %572, %573, %cst_315 {dimension_numbers = #tpu.dot_dimension_numbers<[1], [0], [0], [1], [0, 0, 1, 1], [], []>} : vector<10x32xbf16>, vector<32x64xbf16>, vector<10x64xf32> -> vector<10x64xf32>
    %c1_316 = arith.constant 1 : index
    %c0_317 = arith.constant 0 : index
    %c0_318 = arith.constant 0 : index
    %575 = vector.load %arg21[%c1_316, %c0_317, %c0_318] : memref<2x1x64xf32, #tpu.memory_space<vmem>>, vector<1x1x64xf32>
    %576 = vector.shape_cast %575 : vector<1x1x64xf32> to vector<1x64xf32>
    %577 = vector.broadcast %576 : vector<1x64xf32> to vector<10x64xf32>
    %578 = arith.addf %574, %577 : vector<10x64xf32>
    %cst_319 = arith.constant 5.000000e-01 : f32
    %579 = vector.broadcast %cst_319 : f32 to vector<10x64xf32>
    %580 = arith.mulf %579, %578 : vector<10x64xf32>
    %cst_320 = arith.constant 0.707106769 : f32
    %581 = vector.broadcast %cst_320 : f32 to vector<10x64xf32>
    %582 = arith.mulf %578, %581 : vector<10x64xf32>
    %583 = math.erf %582 : vector<10x64xf32>
    %cst_321 = arith.constant 1.000000e+00 : f32
    %584 = vector.broadcast %cst_321 : f32 to vector<10x64xf32>
    %585 = arith.addf %584, %583 : vector<10x64xf32>
    %586 = arith.mulf %580, %585 : vector<10x64xf32>
    %c1_322 = arith.constant 1 : index
    %c0_323 = arith.constant 0 : index
    %c0_324 = arith.constant 0 : index
    %587 = vector.load %arg22[%c1_322, %c0_323, %c0_324] : memref<2x64x32xf32, #tpu.memory_space<vmem>>, vector<1x64x32xf32>
    %588 = vector.shape_cast %587 : vector<1x64x32xf32> to vector<64x32xf32>
    %589 = arith.truncf %586 : vector<10x64xf32> to vector<10x64xbf16>
    %590 = arith.truncf %588 : vector<64x32xf32> to vector<64x32xbf16>
    %cst_325 = arith.constant dense<0.000000e+00> : vector<10x32xf32>
    %591 = tpu.matmul %589, %590, %cst_325 {dimension_numbers = #tpu.dot_dimension_numbers<[1], [0], [0], [1], [0, 0, 1, 1], [], []>} : vector<10x64xbf16>, vector<64x32xbf16>, vector<10x32xf32> -> vector<10x32xf32>
    %592 = arith.addf %543, %591 : vector<10x32xf32>
    %c1_326 = arith.constant 1 : index
    %c0_327 = arith.constant 0 : index
    %c0_328 = arith.constant 0 : index
    %593 = vector.load %arg23[%c1_326, %c0_327, %c0_328] : memref<2x1x32xf32, #tpu.memory_space<vmem>>, vector<1x1x32xf32>
    %594 = vector.shape_cast %593 : vector<1x1x32xf32> to vector<1x32xf32>
    %595 = vector.broadcast %594 : vector<1x32xf32> to vector<10x32xf32>
    %596 = arith.addf %592, %595 : vector<10x32xf32>
    %c0_329 = arith.constant 0 : index
    %c0_330 = arith.constant 0 : index
    %597 = vector.load %arg7[%c0_329, %c0_330] : memref<2x10xf32, #tpu.memory_space<vmem>>, vector<2x10xf32>
    %cst_331 = arith.constant dense<0.000000e+00> : vector<2x32xf32>
    %598 = tpu.matmul %597, %596, %cst_331 {dimension_numbers = #tpu.dot_dimension_numbers<[1], [0], [0], [1], [0, 0, 1, 1], [], []>} : vector<2x10xf32>, vector<10x32xf32>, vector<2x32xf32> -> vector<2x32xf32>
    %c0_332 = arith.constant 0 : index
    %c0_333 = arith.constant 0 : index
    %599 = vector.load %arg24[%c0_332, %c0_333] : memref<1x32xf32, #tpu.memory_space<vmem>>, vector<1x32xf32>
    %c0_334 = arith.constant 0 : index
    %c0_335 = arith.constant 0 : index
    %600 = vector.load %arg25[%c0_334, %c0_335] : memref<1x32xf32, #tpu.memory_space<vmem>>, vector<1x32xf32>
    %cst_336 = arith.constant dense<0.000000e+00> : vector<2xf32>
    %601 = vector.multi_reduction <add>, %598, %cst_336 [1] : vector<2x32xf32> to vector<2xf32>
    %602 = vector.shape_cast %601 : vector<2xf32> to vector<2x1xf32>
    %cst_337 = arith.constant 3.200000e+01 : f32
    %603 = vector.broadcast %cst_337 : f32 to vector<2x1xf32>
    %604 = arith.divf %602, %603 : vector<2x1xf32>
    %605 = vector.broadcast %604 : vector<2x1xf32> to vector<2x32xf32>
    %606 = arith.subf %598, %605 : vector<2x32xf32>
    %607 = arith.mulf %606, %606 : vector<2x32xf32>
    %cst_338 = arith.constant dense<0.000000e+00> : vector<2xf32>
    %608 = vector.multi_reduction <add>, %607, %cst_338 [1] : vector<2x32xf32> to vector<2xf32>
    %609 = vector.shape_cast %608 : vector<2xf32> to vector<2x1xf32>
    %cst_339 = arith.constant 3.200000e+01 : f32
    %610 = vector.broadcast %cst_339 : f32 to vector<2x1xf32>
    %611 = arith.divf %609, %610 : vector<2x1xf32>
    %612 = vector.broadcast %604 : vector<2x1xf32> to vector<2x32xf32>
    %613 = arith.subf %598, %612 : vector<2x32xf32>
    %cst_340 = arith.constant 9.99999997E-7 : f32
    %614 = vector.broadcast %cst_340 : f32 to vector<2x1xf32>
    %615 = arith.addf %611, %614 : vector<2x1xf32>
    %616 = math.rsqrt %615 : vector<2x1xf32>
    %617 = vector.broadcast %616 : vector<2x1xf32> to vector<2x32xf32>
    %618 = arith.mulf %613, %617 : vector<2x32xf32>
    %619 = vector.broadcast %599 : vector<1x32xf32> to vector<2x32xf32>
    %620 = arith.mulf %618, %619 : vector<2x32xf32>
    %621 = vector.broadcast %600 : vector<1x32xf32> to vector<2x32xf32>
    %622 = arith.addf %620, %621 : vector<2x32xf32>
    %c0_341 = arith.constant 0 : index
    %c0_342 = arith.constant 0 : index
    %623 = vector.load %arg26[%c0_341, %c0_342] : memref<2x32xf32, #tpu.memory_space<vmem>>, vector<2x32xf32>
    tpu.vector_store %arg26[%c0_341, %c0_342], %622 {strides = array<i32>} : memref<2x32xf32, #tpu.memory_space<vmem>>, vector<2x32xf32>,
    return
  }
  func.func @transform_0(%arg0: i32) -> (i32, i32) {
    %c0_i32 = arith.constant 0 : i32
    %c0_i32_0 = arith.constant 0 : i32
    %c0_i32_1 = arith.constant 0 : i32
    return %c0_i32, %c0_i32_0 : i32, i32
  }
  func.func @transform_1(%arg0: i32) -> (i32, i32) {
    %c0_i32 = arith.constant 0 : i32
    %c0_i32_0 = arith.constant 0 : i32
    %c0_i32_1 = arith.constant 0 : i32
    return %c0_i32, %c0_i32_0 : i32, i32
  }
  func.func @transform_2(%arg0: i32) -> (i32, i32) {
    %c0_i32 = arith.constant 0 : i32
    %c0_i32_0 = arith.constant 0 : i32
    %c0_i32_1 = arith.constant 0 : i32
    return %c0_i32, %c0_i32_0 : i32, i32
  }
  func.func @transform_3(%arg0: i32) -> (i32, i32) {
    %c0_i32 = arith.constant 0 : i32
    %c0_i32_0 = arith.constant 0 : i32
    %c0_i32_1 = arith.constant 0 : i32
    return %c0_i32, %c0_i32_0 : i32, i32
  }
  func.func @transform_4(%arg0: i32) -> (i32, i32) {
    %c0_i32 = arith.constant 0 : i32
    %c0_i32_0 = arith.constant 0 : i32
    %c0_i32_1 = arith.constant 0 : i32
    return %c0_i32, %c0_i32_0 : i32, i32
  }
  func.func @transform_5(%arg0: i32) -> (i32, i32) {
    %c0_i32 = arith.constant 0 : i32
    %c0_i32_0 = arith.constant 0 : i32
    %c0_i32_1 = arith.constant 0 : i32
    return %c0_i32, %c0_i32_0 : i32, i32
  }
  func.func @transform_6(%arg0: i32) -> (i32, i32) {
    %c0_i32 = arith.constant 0 : i32
    %c0_i32_0 = arith.constant 0 : i32
    %c0_i32_1 = arith.constant 0 : i32
    return %c0_i32, %c0_i32_0 : i32, i32
  }
  func.func @transform_7(%arg0: i32) -> (i32, i32, i32) {
    %c0_i32 = arith.constant 0 : i32
    %c0_i32_0 = arith.constant 0 : i32
    %c0_i32_1 = arith.constant 0 : i32
    %c0_i32_2 = arith.constant 0 : i32
    return %c0_i32, %c0_i32_0, %c0_i32_1 : i32, i32, i32
  }
  func.func @transform_8(%arg0: i32) -> (i32, i32, i32) {
    %c0_i32 = arith.constant 0 : i32
    %c0_i32_0 = arith.constant 0 : i32
    %c0_i32_1 = arith.constant 0 : i32
    %c0_i32_2 = arith.constant 0 : i32
    return %c0_i32, %c0_i32_0, %c0_i32_1 : i32, i32, i32
  }
  func.func @transform_9(%arg0: i32) -> (i32, i32, i32) {
    %c0_i32 = arith.constant 0 : i32
    %c0_i32_0 = arith.constant 0 : i32
    %c0_i32_1 = arith.constant 0 : i32
    %c0_i32_2 = arith.constant 0 : i32
    return %c0_i32, %c0_i32_0, %c0_i32_1 : i32, i32, i32
  }
  func.func @transform_10(%arg0: i32) -> (i32, i32, i32) {
    %c0_i32 = arith.constant 0 : i32
    %c0_i32_0 = arith.constant 0 : i32
    %c0_i32_1 = arith.constant 0 : i32
    %c0_i32_2 = arith.constant 0 : i32
    return %c0_i32, %c0_i32_0, %c0_i32_1 : i32, i32, i32
  }
  func.func @transform_11(%arg0: i32) -> (i32, i32, i32) {
    %c0_i32 = arith.constant 0 : i32
    %c0_i32_0 = arith.constant 0 : i32
    %c0_i32_1 = arith.constant 0 : i32
    %c0_i32_2 = arith.constant 0 : i32
    return %c0_i32, %c0_i32_0, %c0_i32_1 : i32, i32, i32
  }
  func.func @transform_12(%arg0: i32) -> (i32, i32, i32) {
    %c0_i32 = arith.constant 0 : i32
    %c0_i32_0 = arith.constant 0 : i32
    %c0_i32_1 = arith.constant 0 : i32
    %c0_i32_2 = arith.constant 0 : i32
    return %c0_i32, %c0_i32_0, %c0_i32_1 : i32, i32, i32
  }
  func.func @transform_13(%arg0: i32) -> (i32, i32, i32) {
    %c0_i32 = arith.constant 0 : i32
    %c0_i32_0 = arith.constant 0 : i32
    %c0_i32_1 = arith.constant 0 : i32
    %c0_i32_2 = arith.constant 0 : i32
    return %c0_i32, %c0_i32_0, %c0_i32_1 : i32, i32, i32
  }
  func.func @transform_14(%arg0: i32) -> (i32, i32, i32) {
    %c0_i32 = arith.constant 0 : i32
    %c0_i32_0 = arith.constant 0 : i32
    %c0_i32_1 = arith.constant 0 : i32
    %c0_i32_2 = arith.constant 0 : i32
    return %c0_i32, %c0_i32_0, %c0_i32_1 : i32, i32, i32
  }
  func.func @transform_15(%arg0: i32) -> (i32, i32, i32) {
    %c0_i32 = arith.constant 0 : i32
    %c0_i32_0 = arith.constant 0 : i32
    %c0_i32_1 = arith.constant 0 : i32
    %c0_i32_2 = arith.constant 0 : i32
    return %c0_i32, %c0_i32_0, %c0_i32_1 : i32, i32, i32
  }
  func.func @transform_16(%arg0: i32) -> (i32, i32, i32) {
    %c0_i32 = arith.constant 0 : i32
    %c0_i32_0 = arith.constant 0 : i32
    %c0_i32_1 = arith.constant 0 : i32
    %c0_i32_2 = arith.constant 0 : i32
    return %c0_i32, %c0_i32_0, %c0_i32_1 : i32, i32, i32
  }
  func.func @transform_17(%arg0: i32) -> (i32, i32, i32) {
    %c0_i32 = arith.constant 0 : i32
    %c0_i32_0 = arith.constant 0 : i32
    %c0_i32_1 = arith.constant 0 : i32
    %c0_i32_2 = arith.constant 0 : i32
    return %c0_i32, %c0_i32_0, %c0_i32_1 : i32, i32, i32
  }
  func.func @transform_18(%arg0: i32) -> (i32, i32, i32) {
    %c0_i32 = arith.constant 0 : i32
    %c0_i32_0 = arith.constant 0 : i32
    %c0_i32_1 = arith.constant 0 : i32
    %c0_i32_2 = arith.constant 0 : i32
    return %c0_i32, %c0_i32_0, %c0_i32_1 : i32, i32, i32
  }
  func.func @transform_19(%arg0: i32) -> (i32, i32, i32) {
    %c0_i32 = arith.constant 0 : i32
    %c0_i32_0 = arith.constant 0 : i32
    %c0_i32_1 = arith.constant 0 : i32
    %c0_i32_2 = arith.constant 0 : i32
    return %c0_i32, %c0_i32_0, %c0_i32_1 : i32, i32, i32
  }
  func.func @transform_20(%arg0: i32) -> (i32, i32, i32) {
    %c0_i32 = arith.constant 0 : i32
    %c0_i32_0 = arith.constant 0 : i32
    %c0_i32_1 = arith.constant 0 : i32
    %c0_i32_2 = arith.constant 0 : i32
    return %c0_i32, %c0_i32_0, %c0_i32_1 : i32, i32, i32
  }
  func.func @transform_21(%arg0: i32) -> (i32, i32, i32) {
    %c0_i32 = arith.constant 0 : i32
    %c0_i32_0 = arith.constant 0 : i32
    %c0_i32_1 = arith.constant 0 : i32
    %c0_i32_2 = arith.constant 0 : i32
    return %c0_i32, %c0_i32_0, %c0_i32_1 : i32, i32, i32
  }
  func.func @transform_22(%arg0: i32) -> (i32, i32, i32) {
    %c0_i32 = arith.constant 0 : i32
    %c0_i32_0 = arith.constant 0 : i32
    %c0_i32_1 = arith.constant 0 : i32
    %c0_i32_2 = arith.constant 0 : i32
    return %c0_i32, %c0_i32_0, %c0_i32_1 : i32, i32, i32
  }
  func.func @transform_23(%arg0: i32) -> (i32, i32) {
    %c0_i32 = arith.constant 0 : i32
    %c0_i32_0 = arith.constant 0 : i32
    %c0_i32_1 = arith.constant 0 : i32
    return %c0_i32, %c0_i32_0 : i32, i32
  }
  func.func @transform_24(%arg0: i32) -> (i32, i32) {
    %c0_i32 = arith.constant 0 : i32
    %c0_i32_0 = arith.constant 0 : i32
    %c0_i32_1 = arith.constant 0 : i32
    return %c0_i32, %c0_i32_0 : i32, i32
  }
  func.func @transform_25(%arg0: i32) -> (i32, i32) {
    %c0_i32 = arith.constant 0 : i32
    %c0_i32_0 = arith.constant 0 : i32
    %c0_i32_1 = arith.constant 0 : i32
    return %c0_i32, %c0_i32_0 : i32, i32
  }
}

</mosaic_0001>

<bundles_post_ra>
// kernel: tile.9
= control target key start
LH: loop header
LB: loop body
LE: loop exit
PB: predicated region body
PF: predicated region fallthrough
CT: control target
= control target key end

     0   :  { %vm3_vm0 = vcmask 261120   ;;  %s34_s0 = inlined_call_operand.vmem [shape: f32[2,5,32], index: 0, kind: input, shape index: {}]   ;;  %s35_s1 = inlined_call_operand.vmem [shape: f32[10,32], index: 1, kind: output, shape index: {}]  }
   0x1   :  { %v2_v0 = vld [vmem:[%s34_s0] sm:$0x1f]   ;;  %v10_v1 = vld [vmem:[%s34_s0 + $0x8] sm:$0x1f]  }
   0x2   :  { %4 = vst.msk [vmem:[%s35_s1] sm:$0x1f] %vm3_vm0, %v2_v0  }
   0x3   :  { %11 = vst.msk [vmem:[%s35_s1 + $0x5] sm:$0x1f] %vm3_vm0, %v10_v1  }

// kernel: transformer_vision_encoder_forward.1
= control target key start
LH: loop header
LB: loop body
LE: loop exit
PB: predicated region body
PF: predicated region fallthrough
CT: control target
= control target key end

     0   :  { %s5670_s0 = inlined_call_operand.vmem [shape: f32[8,3072], index: 0, kind: input, shape index: {}]   ;;  %s5671_s1 = inlined_call_operand.vmem [shape: f32[3072,32], index: 1, kind: input, shape index: {}]   ;;  %s5672_s2 = inlined_call_operand.vmem [shape: f32[1,32], index: 2, kind: input, shape index: {}]   ;;  %s5673_s3 = inlined_call_operand.vmem [shape: f32[10,8], index: 3, kind: input, shape index: {}]   ;;  %s5674_s4 = inlined_call_operand.vmem [shape: f32[10,32], index: 4, kind: input, shape index: {}]   ;;  %s5675_s5 = inlined_call_operand.vmem [shape: f32[10,10], index: 5, kind: input, shape index: {}]   ;;  %s5676_s6 = inlined_call_operand.vmem [shape: f32[2,10], index: 6, kind: input, shape index: {}]   ;;  %s5677_s7 = inlined_call_operand.vmem [shape: f32[2,1,32], index: 7, kind: input, shape index: {}]   ;;  %s5678_s8 = inlined_call_operand.vmem [shape: f32[2,1,32], index: 8, kind: input, shape index: {}]   ;;  %s5679_s9 = inlined_call_operand.vmem [shape: f32[8,32,8], index: 9, kind: input, shape index: {}]   ;;  %s5680_s10 = inlined_call_operand.vmem [shape: f32[8,1,8], index: 10, kind: input, shape index: {}]   ;;  %s5681_s11 = inlined_call_operand.vmem [shape: f32[8,32,8], index: 11, kind: input, shape index: {}]   ;;  %s5682_s12 = inlined_call_operand.vmem [shape: f32[8,1,8], index: 12, kind: input, shape index: {}]   ;;  %s5683_s13 = inlined_call_operand.vmem [shape: f32[8,32,8], index: 13, kind: input, shape index: {}]   ;;  %s5684_s14 = inlined_call_operand.vmem [shape: f32[8,1,8], index: 14, kind: input, shape index: {}]   ;;  %s5685_s15 = inlined_call_operand.vmem [shape: f32[8,8,32], index: 15, kind: input, shape index: {}]   ;;  %s5686_s16 = inlined_call_operand.vmem [shape: f32[2,1,32], index: 16, kind: input, shape index: {}]   ;;  %s5687_s17 = inlined_call_operand.vmem [shape: f32[2,1,32], index: 17, kind: input, shape index: {}]   ;;  %s5688_s18 = inlined_call_operand.vmem [shape: f32[2,1,32], index: 18, kind: input, shape index: {}]   ;;  %s5689_s19 = inlined_call_operand.vmem [shape: f32[2,32,64], index: 19, kind: input, shape index: {}]   ;;  %s5690_s20 = inlined_call_operand.vmem [shape: f32[2,1,64], index: 20, kind: input, shape index: {}]   ;;  %s5691_s21 = inlined_call_operand.vmem [shape: f32[2,64,32], index: 21, kind: input, shape index: {}]   ;;  %s5692_s22 = inlined_call_operand.vmem [shape: f32[2,1,32], index: 22, kind: input, shape index: {}]   ;;  %s5693_s23 = inlined_call_operand.vmem [shape: f32[1,32], index: 23, kind: input, shape index: {}]   ;;  %s5694_s24 = inlined_call_operand.vmem [shape: f32[1,32], index: 24, kind: input, shape index: {}]   ;;  %s5695_s25 = inlined_call_operand.hbm [shape: f32[2,32], index: 25, kind: output, shape index: {}]  }
   0x1   :  { %5704 = sst [smem:[#allocation5_spill]] %s5670_s0 }
   0x2   :  { %5705 = sst [smem:[#allocation6_spill]] %s5671_s1 }
   0x3   :  { %5706 = sst [smem:[#allocation7_spill]] %s5672_s2 }
   0x4   :  { %5707 = sst [smem:[#allocation8_spill]] %s5673_s3 }
   0x5   :  { %5708 = sst [smem:[#allocation9_spill]] %s5674_s4 }
   0x6   :  { %5709 = sst [smem:[#allocation10_spill]] %s5675_s5 }
   0x7   :  { %5710 = sst [smem:[#allocation11_spill]] %s5676_s6 }
   0x8   :  { %5711 = sst [smem:[#allocation12_spill]] %s5677_s7 }
   0x9   :  { %5712 = sst [smem:[#allocation13_spill]] %s5678_s8 }
   0xa   :  { %5713 = sst [smem:[#allocation14_spill]] %s5679_s9 }
   0xb   :  { %s5714_s6 = sld [smem:[#allocation6_spill]] }
   0xc   :  { %s5715_s5 = sld [smem:[#allocation5_spill]] }
  0x11   :  { %v120_v0 = vld [vmem:[%s5714_s6 + $0x70] sm:$0xff]  ;;  %v121_v1 = vld [vmem:[%s5714_s6 + $0x78] sm:$0xff]  ;;  %v118_v11 = vld [vmem:[%s5714_s6 + $0x60] sm:$0xff] }
  0x12   :  { %v136_v2 = vld [vmem:[%s5714_s6 + $0xf0] sm:$0xff]  ;;  %v521_v3 = vpack.c.bf16 %v121_v1, %v120_v0  ;;  %v137_v4 = vld [vmem:[%s5714_s6 + $0xf8] sm:$0xff]  ;;  %v119_v13 = vld [vmem:[%s5714_s6 + $0x68] sm:$0xff] }
  0x13   :  { %v152_v5 = vld [vmem:[%s5714_s6 + $0x170] sm:$0xff]  ;;  %v153_v6 = vld [vmem:[%s5714_s6 + $0x178] sm:$0xff]  ;;  %v529_v7 = vpack.c.bf16 %v137_v4, %v136_v2  ;;  %v134_v14 = vld [vmem:[%s5714_s6 + $0xe0] sm:$0xff]  ;;  %v520_v16 = vpack.c.bf16 %v119_v13, %v118_v11 }
  0x14   :  { %v537_v8 = vpack.c.bf16 %v153_v6, %v152_v5  ;;  %v168_v9 = vld [vmem:[%s5714_s6 + $0x1f0] sm:$0xff]  ;;  %v169_v10 = vld [vmem:[%s5714_s6 + $0x1f8] sm:$0xff]  ;;  %710 = vmatpush.bf16.msra.mxu0 %v521_v3  ;;  %v135_v15 = vld [vmem:[%s5714_s6 + $0xe8] sm:$0xff] }
  0x15   :  { %v545_v12 = vpack.c.bf16 %v169_v10, %v168_v9  ;;  %723 = vmatpush.bf16.msra.mxu1 %v529_v7  ;;  %v528_v17 = vpack.c.bf16 %v135_v15, %v134_v14  ;;  %v150_v18 = vld [vmem:[%s5714_s6 + $0x160] sm:$0xff]  ;;  %v151_v19 = vld [vmem:[%s5714_s6 + $0x168] sm:$0xff]  ;;  %v116_v23 = vld [vmem:[%s5714_s6 + $0x50] sm:$0xff] }
  0x16   :  { %736 = vmatpush.bf16.msra.mxu2 %v537_v8  ;;  %v166_v20 = vld [vmem:[%s5714_s6 + $0x1e0] sm:$0xff]  ;;  %v536_v21 = vpack.c.bf16 %v151_v19, %v150_v18  ;;  %v167_v22 = vld [vmem:[%s5714_s6 + $0x1e8] sm:$0xff]  ;;  %v117_v24 = vld [vmem:[%s5714_s6 + $0x58] sm:$0xff] }
  0x17   :  { %749 = vmatpush.bf16.msra.mxu3 %v545_v12  ;;  %v544_v25 = vpack.c.bf16 %v167_v22, %v166_v20  ;;  %v132_v26 = vld [vmem:[%s5714_s6 + $0xd0] sm:$0xff]  ;;  %v133_v27 = vld [vmem:[%s5714_s6 + $0xd8] sm:$0xff]  ;;  %v519_v29 = vpack.c.bf16 %v117_v24, %v116_v23  ;;  %v114_v35 = vld [vmem:[%s5714_s6 + $0x40] sm:$0xff] }
  0x18   :  { %v148_v28 = vld [vmem:[%s5714_s6 + $0x150] sm:$0xff]  ;;  %711 = vmatpush.bf16.msra.mxu0 %v520_v16  ;;  %v149_v30 = vld [vmem:[%s5714_s6 + $0x158] sm:$0xff]  ;;  %v527_v33 = vpack.c.bf16 %v133_v27, %v132_v26  ;;  %v115_v36 = vld [vmem:[%s5714_s6 + $0x48] sm:$0xff] }
  0x19   :  { %v164_v31 = vld [vmem:[%s5714_s6 + $0x1d0] sm:$0xff]  ;;  %v165_v32 = vld [vmem:[%s5714_s6 + $0x1d8] sm:$0xff]  ;;  %724 = vmatpush.bf16.msra.mxu1 %v528_v17  ;;  %v535_v34 = vpack.c.bf16 %v149_v30, %v148_v28  ;;  %v130_v37 = vld [vmem:[%s5714_s6 + $0xc0] sm:$0xff]  ;;  %v518_v44 = vpack.c.bf16 %v115_v36, %v114_v35 }
  0x1a   :  { %737 = vmatpush.bf16.msra.mxu2 %v536_v21  ;;  %v543_v38 = vpack.c.bf16 %v165_v32, %v164_v31  ;;  %v131_v39 = vld [vmem:[%s5714_s6 + $0xc8] sm:$0xff]  ;;  %v146_v40 = vld [vmem:[%s5714_s6 + $0x140] sm:$0xff]  ;;  %v112_v47 = vld [vmem:[%s5714_s6 + $0x30] sm:$0xff] }
  0x1b   :  { %750 = vmatpush.bf16.msra.mxu3 %v544_v25  ;;  %v147_v41 = vld [vmem:[%s5714_s6 + $0x148] sm:$0xff]  ;;  %v162_v42 = vld [vmem:[%s5714_s6 + $0x1c0] sm:$0xff]  ;;  %v526_v45 = vpack.c.bf16 %v131_v39, %v130_v37  ;;  %v113_v48 = vld [vmem:[%s5714_s6 + $0x38] sm:$0xff] }
  0x1c   :  { %v163_v43 = vld [vmem:[%s5714_s6 + $0x1c8] sm:$0xff]  ;;  %712 = vmatpush.bf16.msra.mxu0 %v519_v29  ;;  %v534_v46 = vpack.c.bf16 %v147_v41, %v146_v40  ;;  %v128_v49 = vld [vmem:[%s5714_s6 + $0xb0] sm:$0xff]  ;;  %v129_v51 = vld [vmem:[%s5714_s6 + $0xb8] sm:$0xff]  ;;  %v517_v56 = vpack.c.bf16 %v113_v48, %v112_v47 }
  0x1d   :  { %725 = vmatpush.bf16.msra.mxu1 %v527_v33  ;;  %v542_v50 = vpack.c.bf16 %v163_v43, %v162_v42  ;;  %v144_v52 = vld [vmem:[%s5714_s6 + $0x130] sm:$0xff]  ;;  %v145_v53 = vld [vmem:[%s5714_s6 + $0x138] sm:$0xff]  ;;  %v525_v57 = vpack.c.bf16 %v129_v51, %v128_v49  ;;  %v110_v59 = vld [vmem:[%s5714_s6 + $0x20] sm:$0xff] }
  0x1e   :  { %738 = vmatpush.bf16.msra.mxu2 %v535_v34  ;;  %v160_v54 = vld [vmem:[%s5714_s6 + $0x1b0] sm:$0xff]  ;;  %v161_v55 = vld [vmem:[%s5714_s6 + $0x1b8] sm:$0xff]  ;;  %v533_v58 = vpack.c.bf16 %v145_v53, %v144_v52  ;;  %v111_v60 = vld [vmem:[%s5714_s6 + $0x28] sm:$0xff] }
  0x1f   :  { %751 = vmatpush.bf16.msra.mxu3 %v543_v38  ;;  %v126_v61 = vld [vmem:[%s5714_s6 + $0xa0] sm:$0xff]  ;;  %v541_v62 = vpack.c.bf16 %v161_v55, %v160_v54  ;;  %v127_v63 = vld [vmem:[%s5714_s6 + $0xa8] sm:$0xff]  ;;  %v516_v4 = vpack.c.bf16 %v111_v60, %v110_v59  ;;  %v108_v7 = vld [vmem:[%s5714_s6 + $0x10] sm:$0xff] }
  0x20   :  { %713 = vmatpush.bf16.msra.mxu0 %v518_v44  ;;  %v142_v0 = vld [vmem:[%s5714_s6 + $0x120] sm:$0xff]  ;;  %v143_v1 = vld [vmem:[%s5714_s6 + $0x128] sm:$0xff]  ;;  %v524_v5 = vpack.c.bf16 %v127_v63, %v126_v61  ;;  %v109_v8 = vld [vmem:[%s5714_s6 + $0x18] sm:$0xff] }
  0x21   :  { %726 = vmatpush.bf16.msra.mxu1 %v526_v45  ;;  %v158_v2 = vld [vmem:[%s5714_s6 + $0x1a0] sm:$0xff]  ;;  %v159_v3 = vld [vmem:[%s5714_s6 + $0x1a8] sm:$0xff]  ;;  %v532_v6 = vpack.c.bf16 %v143_v1, %v142_v0  ;;  %v124_v9 = vld [vmem:[%s5714_s6 + $0x90] sm:$0xff]  ;;  %v515_v16 = vpack.c.bf16 %v109_v8, %v108_v7 }
  0x22   :  { %739 = vmatpush.bf16.msra.mxu2 %v534_v46  ;;  %v540_v10 = vpack.c.bf16 %v159_v3, %v158_v2  ;;  %v125_v11 = vld [vmem:[%s5714_s6 + $0x98] sm:$0xff]  ;;  %v140_v12 = vld [vmem:[%s5714_s6 + $0x110] sm:$0xff]  ;;  %v106_v17 = vld [vmem:[%s5714_s6] sm:$0xff] }
  0x23   :  { %752 = vmatpush.bf16.msra.mxu3 %v542_v50  ;;  %v141_v13 = vld [vmem:[%s5714_s6 + $0x118] sm:$0xff]  ;;  %v156_v14 = vld [vmem:[%s5714_s6 + $0x190] sm:$0xff]  ;;  %v107_v18 = vld [vmem:[%s5714_s6 + $0x8] sm:$0xff]  ;;  %v523_v19 = vpack.c.bf16 %v125_v11, %v124_v9 }
  0x24   :  { %714 = vmatpush.bf16.msra.mxu0 %v517_v56  ;;  %v157_v15 = vld [vmem:[%s5714_s6 + $0x198] sm:$0xff]  ;;  %v531_v20 = vpack.c.bf16 %v141_v13, %v140_v12  ;;  %v122_v21 = vld [vmem:[%s5714_s6 + $0x80] sm:$0xff]  ;;  %v123_v22 = vld [vmem:[%s5714_s6 + $0x88] sm:$0xff]  ;;  %v514_v31 = vpack.c.bf16 %v107_v18, %v106_v17 }
  0x25   :  { %727 = vmatpush.bf16.msra.mxu1 %v525_v57  ;;  %v138_v23 = vld [vmem:[%s5714_s6 + $0x100] sm:$0xff]  ;;  %v539_v24 = vpack.c.bf16 %v157_v15, %v156_v14  ;;  %v139_v25 = vld [vmem:[%s5714_s6 + $0x108] sm:$0xff]  ;;  %v184_v28 = vld [vmem:[%s5714_s6 + $0x270] sm:$0xff]  ;;  %v522_v35 = vpack.c.bf16 %v123_v22, %v122_v21 }
  0x26   :  { %740 = vmatpush.bf16.msra.mxu2 %v533_v58  ;;  %v154_v26 = vld [vmem:[%s5714_s6 + $0x180] sm:$0xff]  ;;  %v155_v27 = vld [vmem:[%s5714_s6 + $0x188] sm:$0xff]  ;;  %v185_v29 = vld [vmem:[%s5714_s6 + $0x278] sm:$0xff]  ;;  %v530_v36 = vpack.c.bf16 %v139_v25, %v138_v23 }
  0x27   :  { %753 = vmatpush.bf16.msra.mxu3 %v541_v62  ;;  %v200_v30 = vld [vmem:[%s5714_s6 + $0x2f0] sm:$0xff]  ;;  %v201_v32 = vld [vmem:[%s5714_s6 + $0x2f8] sm:$0xff]  ;;  %v538_v39 = vpack.c.bf16 %v155_v27, %v154_v26  ;;  %v553_v40 = vpack.c.bf16 %v185_v29, %v184_v28  ;;  %v182_v43 = vld [vmem:[%s5714_s6 + $0x260] sm:$0xff] }
  0x28   :  { %715 = vmatpush.bf16.msra.mxu0 %v516_v4  ;;  %v216_v33 = vld [vmem:[%s5714_s6 + $0x370] sm:$0xff]  ;;  %v217_v34 = vld [vmem:[%s5714_s6 + $0x378] sm:$0xff]  ;;  %v561_v41 = vpack.c.bf16 %v201_v32, %v200_v30  ;;  %v183_v44 = vld [vmem:[%s5714_s6 + $0x268] sm:$0xff] }
  0x29   :  { %728 = vmatpush.bf16.msra.mxu1 %v524_v5  ;;  %v232_v37 = vld [vmem:[%s5714_s6 + $0x3f0] sm:$0xff]  ;;  %v233_v38 = vld [vmem:[%s5714_s6 + $0x3f8] sm:$0xff]  ;;  %v569_v42 = vpack.c.bf16 %v217_v34, %v216_v33  ;;  %v198_v45 = vld [vmem:[%s5714_s6 + $0x2e0] sm:$0xff]  ;;  %v552_v52 = vpack.c.bf16 %v183_v44, %v182_v43 }
  0x2a   :  { %741 = vmatpush.bf16.msra.mxu2 %v532_v6  ;;  %v577_v46 = vpack.c.bf16 %v233_v38, %v232_v37  ;;  %v199_v47 = vld [vmem:[%s5714_s6 + $0x2e8] sm:$0xff]  ;;  %v214_v48 = vld [vmem:[%s5714_s6 + $0x360] sm:$0xff]  ;;  %v180_v53 = vld [vmem:[%s5714_s6 + $0x250] sm:$0xff] }
  0x2b   :  { %754 = vmatpush.bf16.msra.mxu3 %v540_v10  ;;  %v215_v49 = vld [vmem:[%s5714_s6 + $0x368] sm:$0xff]  ;;  %v230_v50 = vld [vmem:[%s5714_s6 + $0x3e0] sm:$0xff]  ;;  %v560_v54 = vpack.c.bf16 %v199_v47, %v198_v45  ;;  %v181_v56 = vld [vmem:[%s5714_s6 + $0x258] sm:$0xff] }
  0x2c   :  { %716 = vmatpush.bf16.msra.mxu0 %v515_v16  ;;  %v231_v51 = vld [vmem:[%s5714_s6 + $0x3e8] sm:$0xff]  ;;  %v568_v55 = vpack.c.bf16 %v215_v49, %v214_v48  ;;  %v196_v57 = vld [vmem:[%s5714_s6 + $0x2d0] sm:$0xff]  ;;  %v197_v58 = vld [vmem:[%s5714_s6 + $0x2d8] sm:$0xff]  ;;  %v551_v0 = vpack.c.bf16 %v181_v56, %v180_v53 }
  0x2d   :  { %729 = vmatpush.bf16.msra.mxu1 %v523_v19  ;;  %v576_v59 = vpack.c.bf16 %v231_v51, %v230_v50  ;;  %v212_v60 = vld [vmem:[%s5714_s6 + $0x350] sm:$0xff]  ;;  %v213_v61 = vld [vmem:[%s5714_s6 + $0x358] sm:$0xff]  ;;  %v559_v1 = vpack.c.bf16 %v197_v58, %v196_v57  ;;  %v178_v2 = vld [vmem:[%s5714_s6 + $0x240] sm:$0xff] }
  0x2e   :  { %742 = vmatpush.bf16.msra.mxu2 %v531_v20  ;;  %v228_v62 = vld [vmem:[%s5714_s6 + $0x3d0] sm:$0xff]  ;;  %v229_v63 = vld [vmem:[%s5714_s6 + $0x3d8] sm:$0xff]  ;;  %v82_v4 = vld [vmem:[%s5715_s5] sm:$0xff]  ;;  %v567_v5 = vpack.c.bf16 %v213_v61, %v212_v60 }
  0x2f   :  { %755 = vmatpush.bf16.msra.mxu3 %v539_v24  ;;  %v84_v3 = vld [vmem:[%s5715_s5 + $0x10] sm:$0xff]  ;;  %v179_v6 = vld [vmem:[%s5714_s6 + $0x248] sm:$0xff]  ;;  %v194_v7 = vld [vmem:[%s5714_s6 + $0x2c0] sm:$0xff]  ;;  %v490_v9 = vpack.c.bf16 %v82_v4, %v82_v4  ;;  %v575_v11 = vpack.c.bf16 %v229_v63, %v228_v62 }
  0x30   :  { %717 = vmatpush.bf16.msra.mxu0 %v514_v31  ;;  %v492_v8 = vpack.c.bf16 %v84_v3, %v84_v3  ;;  %v85_v10 = vld [vmem:[%s5715_s5 + $0x18] sm:$0xff]  ;;  %v195_v12 = vld [vmem:[%s5714_s6 + $0x2c8] sm:$0xff]  ;;  %v210_v13 = vld [vmem:[%s5714_s6 + $0x340] sm:$0xff]  ;;  %v550_v18 = vpack.c.bf16 %v179_v6, %v178_v2 }
  0x31   :  { %730 = vmatpush.bf16.msra.mxu1 %v522_v35  ;;  %v211_v14 = vld [vmem:[%s5714_s6 + $0x348] sm:$0xff]  ;;  %v493_v15 = vpack.c.bf16 %v85_v10, %v85_v10  ;;  %v226_v16 = vld [vmem:[%s5714_s6 + $0x3c0] sm:$0xff]  ;;  %v558_v20 = vpack.c.bf16 %v195_v12, %v194_v7  ;;  %v176_v22 = vld [vmem:[%s5714_s6 + $0x230] sm:$0xff] }
  0x32   :  { %743 = vmatpush.bf16.msra.mxu2 %v530_v36  ;;  %v227_v17 = vld [vmem:[%s5714_s6 + $0x3c8] sm:$0xff]  ;;  %v566_v21 = vpack.c.bf16 %v211_v14, %v210_v13  ;;  %v177_v23 = vld [vmem:[%s5714_s6 + $0x238] sm:$0xff]  ;;  %v192_v24 = vld [vmem:[%s5714_s6 + $0x2b0] sm:$0xff] }
  0x33   :  { %756 = vmatpush.bf16.msra.mxu3 %v538_v39  ;;  %718 = vmatmul.bf16.vlgmr.msra.gmra.mxu0 %v490_v9  ;;  %v83_v19 = vld [vmem:[%s5715_s5 + $0x8] sm:$0xff]  ;;  %v574_v26 = vpack.c.bf16 %v227_v17, %v226_v16  ;;  %v193_v27 = vld [vmem:[%s5714_s6 + $0x2b8] sm:$0xff]  ;;  %v208_v28 = vld [vmem:[%s5714_s6 + $0x330] sm:$0xff]  ;;  %v549_v32 = vpack.c.bf16 %v177_v23, %v176_v22 }
  0x34   :  { %762 = vmatpush.bf16.msrb.mxu0 %v553_v40  ;;  %v491_v25 = vpack.c.bf16 %v83_v19, %v83_v19  ;;  %v209_v29 = vld [vmem:[%s5714_s6 + $0x338] sm:$0xff]  ;;  %v224_v30 = vld [vmem:[%s5714_s6 + $0x3b0] sm:$0xff]  ;;  %v557_v33 = vpack.c.bf16 %v193_v27, %v192_v24  ;;  %v174_v35 = vld [vmem:[%s5714_s6 + $0x220] sm:$0xff] }
  0x35   :  { %775 = vmatpush.bf16.msrb.mxu1 %v561_v41  ;;  %744 = vmatmul.bf16.vlgmr.msra.gmra.mxu2 %v492_v8  ;;  %v225_v31 = vld [vmem:[%s5714_s6 + $0x3b8] sm:$0xff]  ;;  %v565_v34 = vpack.c.bf16 %v209_v29, %v208_v28  ;;  %v175_v36 = vld [vmem:[%s5714_s6 + $0x228] sm:$0xff]  ;;  %v190_v37 = vld [vmem:[%s5714_s6 + $0x2a0] sm:$0xff] }
  0x36   :  { %788 = vmatpush.bf16.msrb.mxu2 %v569_v42  ;;  %757 = vmatmul.bf16.vlgmr.msra.gmra.mxu3 %v493_v15  ;;  %v573_v38 = vpack.c.bf16 %v225_v31, %v224_v30  ;;  %v191_v39 = vld [vmem:[%s5714_s6 + $0x2a8] sm:$0xff]  ;;  %v206_v40 = vld [vmem:[%s5714_s6 + $0x320] sm:$0xff]  ;;  %v548_v44 = vpack.c.bf16 %v175_v36, %v174_v35  ;;  %v172_v47 = vld [vmem:[%s5714_s6 + $0x210] sm:$0xff] }
  0x37   :  { %801 = vmatpush.bf16.msrb.mxu3 %v577_v46  ;;  %731 = vmatmul.bf16.vlgmr.msra.gmra.mxu1 %v491_v25  ;;  %v207_v41 = vld [vmem:[%s5714_s6 + $0x328] sm:$0xff]  ;;  %v222_v42 = vld [vmem:[%s5714_s6 + $0x3a0] sm:$0xff]  ;;  %v556_v45 = vpack.c.bf16 %v191_v39, %v190_v37  ;;  %v173_v48 = vld [vmem:[%s5714_s6 + $0x218] sm:$0xff] }
  0x38   :  { %763 = vmatpush.bf16.msrb.mxu0 %v552_v52  ;;  %v223_v43 = vld [vmem:[%s5714_s6 + $0x3a8] sm:$0xff]  ;;  %v564_v46 = vpack.c.bf16 %v207_v41, %v206_v40  ;;  %v188_v49 = vld [vmem:[%s5714_s6 + $0x290] sm:$0xff]  ;;  %v189_v51 = vld [vmem:[%s5714_s6 + $0x298] sm:$0xff]  ;;  %v547_v56 = vpack.c.bf16 %v173_v48, %v172_v47 }
  0x39   :  { %776 = vmatpush.bf16.msrb.mxu1 %v560_v54  ;;  %v572_v50 = vpack.c.bf16 %v223_v43, %v222_v42  ;;  %v204_v52 = vld [vmem:[%s5714_s6 + $0x310] sm:$0xff]  ;;  %v205_v53 = vld [vmem:[%s5714_s6 + $0x318] sm:$0xff]  ;;  %v170_v57 = vld [vmem:[%s5714_s6 + $0x200] sm:$0xff] }
  0x3a   :  { %789 = vmatpush.bf16.msrb.mxu2 %v568_v55  ;;  %v220_v54 = vld [vmem:[%s5714_s6 + $0x390] sm:$0xff]  ;;  %v221_v55 = vld [vmem:[%s5714_s6 + $0x398] sm:$0xff]  ;;  %v171_v58 = vld [vmem:[%s5714_s6 + $0x208] sm:$0xff]  ;;  %v563_v60 = vpack.c.bf16 %v205_v53, %v204_v52 }
  0x3b   :  { %802 = vmatpush.bf16.msrb.mxu3 %v576_v59  ;;  %v555_v59 = vpack.c.bf16 %v189_v51, %v188_v49  ;;  %v186_v61 = vld [vmem:[%s5714_s6 + $0x280] sm:$0xff]  ;;  %v187_v62 = vld [vmem:[%s5714_s6 + $0x288] sm:$0xff]  ;;  %v248_v4 = vld [vmem:[%s5714_s6 + $0x470] sm:$0xff]  ;;  %v546_v7 = vpack.c.bf16 %v171_v58, %v170_v57 }
  0x3c   :  { %764 = vmatpush.bf16.msrb.mxu0 %v551_v0  ;;  %v202_v63 = vld [vmem:[%s5714_s6 + $0x300] sm:$0xff]  ;;  %v571_v0 = vpack.c.bf16 %v221_v55, %v220_v54  ;;  %v219_v3 = vld [vmem:[%s5714_s6 + $0x388] sm:$0xff]  ;;  %v264_v6 = vld [vmem:[%s5714_s6 + $0x4f0] sm:$0xff] }
  0x3d   :  { %777 = vmatpush.bf16.msrb.mxu1 %v559_v1  ;;  %v203_v1 = vld [vmem:[%s5714_s6 + $0x308] sm:$0xff]  ;;  %v218_v2 = vld [vmem:[%s5714_s6 + $0x380] sm:$0xff]  ;;  %v265_v8 = vld [vmem:[%s5714_s6 + $0x4f8] sm:$0xff] }
  0x3e   :  { %790 = vmatpush.bf16.msrb.mxu2 %v567_v5  ;;  %v249_v5 = vld [vmem:[%s5714_s6 + $0x478] sm:$0xff]  ;;  %v280_v9 = vld [vmem:[%s5714_s6 + $0x570] sm:$0xff]  ;;  %v562_v12 = vpack.c.bf16 %v203_v1, %v202_v63  ;;  %v570_v16 = vpack.c.bf16 %v219_v3, %v218_v2  ;;  %v86_v19 = vld [vmem:[%s5715_s5 + $0x20] sm:$0xff] }
  0x3f   :  { %803 = vmatpush.bf16.msrb.mxu3 %v575_v11  ;;  %v281_v10 = vld [vmem:[%s5714_s6 + $0x578] sm:$0xff]  ;;  %v554_v11 = vpack.c.bf16 %v187_v62, %v186_v61  ;;  %v296_v13 = vld [vmem:[%s5714_s6 + $0x5f0] sm:$0xff]  ;;  %v585_v17 = vpack.c.bf16 %v249_v5, %v248_v4  ;;  %v247_v23 = vld [vmem:[%s5714_s6 + $0x468] sm:$0xff] }
  0x40   :  { %765 = vmatpush.bf16.msrb.mxu0 %v550_v18  ;;  %v297_v14 = vld [vmem:[%s5714_s6 + $0x5f8] sm:$0xff]  ;;  %v88_v15 = vld [vmem:[%s5715_s5 + $0x30] sm:$0xff]  ;;  %v246_v18 = vld [vmem:[%s5714_s6 + $0x460] sm:$0xff]  ;;  %v601_v22 = vpack.c.bf16 %v281_v10, %v280_v9 }
  0x41   :  { %778 = vmatpush.bf16.msrb.mxu1 %v558_v20  ;;  %v89_v20 = vld [vmem:[%s5715_s5 + $0x38] sm:$0xff]  ;;  %v262_v24 = vld [vmem:[%s5714_s6 + $0x4e0] sm:$0xff]  ;;  %v87_v25 = vld [vmem:[%s5715_s5 + $0x28] sm:$0xff]  ;;  %v496_v30 = vpack.c.bf16 %v88_v15, %v88_v15  ;;  %v584_v35 = vpack.c.bf16 %v247_v23, %v246_v18 }
  0x42   :  { %791 = vmatpush.bf16.msrb.mxu2 %v566_v21  ;;  %v593_v21 = vpack.c.bf16 %v265_v8, %v264_v6  ;;  %v263_v27 = vld [vmem:[%s5714_s6 + $0x4e8] sm:$0xff]  ;;  %v278_v28 = vld [vmem:[%s5714_s6 + $0x560] sm:$0xff]  ;;  %v495_v36 = vpack.c.bf16 %v87_v25, %v87_v25  ;;  %v244_v39 = vld [vmem:[%s5714_s6 + $0x450] sm:$0xff] }
  0x43   :  { %804 = vmatpush.bf16.msrb.mxu3 %v574_v26  ;;  %v609_v26 = vpack.c.bf16 %v297_v14, %v296_v13  ;;  %v279_v29 = vld [vmem:[%s5714_s6 + $0x568] sm:$0xff]  ;;  %v294_v31 = vld [vmem:[%s5714_s6 + $0x5e0] sm:$0xff]  ;;  %v592_v37 = vpack.c.bf16 %v263_v27, %v262_v24  ;;  %v245_v40 = vld [vmem:[%s5714_s6 + $0x458] sm:$0xff] }
  0x44   :  { %766 = vmatpush.bf16.msrb.mxu0 %v549_v32  ;;  %v295_v32 = vld [vmem:[%s5714_s6 + $0x5e8] sm:$0xff]  ;;  %v260_v41 = vld [vmem:[%s5714_s6 + $0x4d0] sm:$0xff]  ;;  %v261_v43 = vld [vmem:[%s5714_s6 + $0x4d8] sm:$0xff]  ;;  %v583_v48 = vpack.c.bf16 %v245_v40, %v244_v39 }
  0x45   :  { %779 = vmatpush.bf16.msrb.mxu1 %v557_v33  ;;  %v494_v33 = vpack.c.bf16 %v86_v19, %v86_v19  ;;  %v608_v42 = vpack.c.bf16 %v295_v32, %v294_v31  ;;  %v293_v47 = vld [vmem:[%s5714_s6 + $0x5d8] sm:$0xff]  ;;  %v591_v49 = vpack.c.bf16 %v261_v43, %v260_v41  ;;  %v242_v51 = vld [vmem:[%s5714_s6 + $0x440] sm:$0xff]  ;;  %v243_v52 = vld [vmem:[%s5714_s6 + $0x448] sm:$0xff] }
  0x46   :  { %792 = vmatpush.bf16.msrb.mxu2 %v565_v34  ;;  %v497_v34 = vpack.c.bf16 %v89_v20, %v89_v20  ;;  %v258_v53 = vld [vmem:[%s5714_s6 + $0x4c0] sm:$0xff]  ;;  %v259_v55 = vld [vmem:[%s5714_s6 + $0x4c8] sm:$0xff]  ;;  %v240_v63 = vld [vmem:[%s5714_s6 + $0x430] sm:$0xff] }
  0x47   :  { %805 = vmatpush.bf16.msrb.mxu3 %v573_v38  ;;  %v600_v38 = vpack.c.bf16 %v279_v29, %v278_v28  ;;  %v275_v57 = vld [vmem:[%s5714_s6 + $0x548] sm:$0xff]  ;;  %v290_v58 = vld [vmem:[%s5714_s6 + $0x5c0] sm:$0xff]  ;;  %v590_v61 = vpack.c.bf16 %v259_v55, %v258_v53  ;;  %v256_v1 = vld [vmem:[%s5714_s6 + $0x4b0] sm:$0xff] }
  0x48   :  { %767 = vmatpush.bf16.msrb.mxu0 %v548_v44  ;;  %v276_v44 = vld [vmem:[%s5714_s6 + $0x550] sm:$0xff]  ;;  %v257_v3 = vld [vmem:[%s5714_s6 + $0x4b8] sm:$0xff]  ;;  %v254_v13 = vld [vmem:[%s5714_s6 + $0x4a0] sm:$0xff] }
  0x49   :  { %780 = vmatpush.bf16.msrb.mxu1 %v556_v45  ;;  %v277_v45 = vld [vmem:[%s5714_s6 + $0x558] sm:$0xff]  ;;  %v272_v4 = vld [vmem:[%s5714_s6 + $0x530] sm:$0xff]  ;;  %v589_v9 = vpack.c.bf16 %v257_v3, %v256_v1  ;;  %v255_v15 = vld [vmem:[%s5714_s6 + $0x4a8] sm:$0xff] }
  0x4a   :  { %793 = vmatpush.bf16.msrb.mxu2 %v564_v46  ;;  %v292_v46 = vld [vmem:[%s5714_s6 + $0x5d0] sm:$0xff]  ;;  %v273_v5 = vld [vmem:[%s5714_s6 + $0x538] sm:$0xff]  ;;  %v286_v18 = vld [vmem:[%s5714_s6 + $0x5a0] sm:$0xff] }
  0x4b   :  { %806 = vmatpush.bf16.msrb.mxu3 %v572_v50  ;;  %v599_v50 = vpack.c.bf16 %v277_v45, %v276_v44  ;;  %v607_v54 = vpack.c.bf16 %v293_v47, %v292_v46  ;;  %v288_v6 = vld [vmem:[%s5714_s6 + $0x5b0] sm:$0xff]  ;;  %v597_v10 = vpack.c.bf16 %v273_v5, %v272_v4  ;;  %v287_v19 = vld [vmem:[%s5714_s6 + $0x5a8] sm:$0xff]  ;;  %v237_v24 = vld [vmem:[%s5714_s6 + $0x418] sm:$0xff] }
  0x4c   :  { %768 = vmatpush.bf16.msrb.mxu0 %v547_v56  ;;  %v274_v56 = vld [vmem:[%s5714_s6 + $0x540] sm:$0xff]  ;;  %v236_v23 = vld [vmem:[%s5714_s6 + $0x410] sm:$0xff]  ;;  %v253_v27 = vld [vmem:[%s5714_s6 + $0x498] sm:$0xff] }
  0x4d   :  { %781 = vmatpush.bf16.msrb.mxu1 %v555_v59  ;;  %v291_v59 = vld [vmem:[%s5714_s6 + $0x5c8] sm:$0xff]  ;;  %v598_v62 = vpack.c.bf16 %v275_v57, %v274_v56  ;;  %v252_v25 = vld [vmem:[%s5714_s6 + $0x490] sm:$0xff]  ;;  %v269_v29 = vld [vmem:[%s5714_s6 + $0x518] sm:$0xff] }
  0x4e   :  { %794 = vmatpush.bf16.msrb.mxu2 %v563_v60  ;;  %v582_v60 = vpack.c.bf16 %v243_v52, %v242_v51  ;;  %v606_v2 = vpack.c.bf16 %v291_v59, %v290_v58  ;;  %v268_v28 = vld [vmem:[%s5714_s6 + $0x510] sm:$0xff]  ;;  %v285_v31 = vld [vmem:[%s5714_s6 + $0x598] sm:$0xff]  ;;  %v234_v32 = vld [vmem:[%s5714_s6 + $0x400] sm:$0xff] }
  0x4f   :  { %807 = vmatpush.bf16.msrb.mxu3 %v571_v0  ;;  %v241_v0 = vld [vmem:[%s5714_s6 + $0x438] sm:$0xff]  ;;  %v266_v39 = vld [vmem:[%s5714_s6 + $0x500] sm:$0xff]  ;;  %v267_v40 = vld [vmem:[%s5714_s6 + $0x508] sm:$0xff] }
  0x50   :  { %769 = vmatpush.bf16.msrb.mxu0 %v546_v7  ;;  %v289_v7 = vld [vmem:[%s5714_s6 + $0x5b8] sm:$0xff]  ;;  %v581_v8 = vpack.c.bf16 %v241_v0, %v240_v63  ;;  %v282_v41 = vld [vmem:[%s5714_s6 + $0x580] sm:$0xff]  ;;  %v283_v43 = vld [vmem:[%s5714_s6 + $0x588] sm:$0xff]  ;;  %v594_v52 = vpack.c.bf16 %v267_v40, %v266_v39 }
  0x51   :  { %782 = vmatpush.bf16.msrb.mxu1 %v554_v11  ;;  %v238_v11 = vld [vmem:[%s5714_s6 + $0x420] sm:$0xff]  ;;  %v605_v14 = vpack.c.bf16 %v289_v7, %v288_v6  ;;  %v312_v44 = vld [vmem:[%s5714_s6 + $0x670] sm:$0xff]  ;;  %v313_v45 = vld [vmem:[%s5714_s6 + $0x678] sm:$0xff]  ;;  %v602_v56 = vpack.c.bf16 %v283_v43, %v282_v41 }
  0x52   :  { %795 = vmatpush.bf16.msrb.mxu2 %v562_v12  ;;  %v239_v12 = vld [vmem:[%s5714_s6 + $0x428] sm:$0xff]  ;;  %v328_v46 = vld [vmem:[%s5714_s6 + $0x6f0] sm:$0xff]  ;;  %v329_v47 = vld [vmem:[%s5714_s6 + $0x6f8] sm:$0xff]  ;;  %v617_v57 = vpack.c.bf16 %v313_v45, %v312_v44 }
  0x53   :  { %808 = vmatpush.bf16.msrb.mxu3 %v570_v16  ;;  %770 = vmatmul.bf16.vlgmr.msrb.gmra.mxu0 %v494_v33  ;;  %v270_v16 = vld [vmem:[%s5714_s6 + $0x520] sm:$0xff]  ;;  %v580_v20 = vpack.c.bf16 %v239_v12, %v238_v11  ;;  %v579_v33 = vpack.c.bf16 %v237_v24, %v236_v23  ;;  %v360_v53 = vld [vmem:[%s5714_s6 + $0x7f0] sm:$0xff]  ;;  %v91_v59 = vld [vmem:[%s5715_s5 + $0x48] sm:$0xff] }
  0x54   :  { %814 = vmatpush.bf16.msra.mxu0 %v585_v17  ;;  %783 = vmatmul.bf16.vlgmr.msrb.gmra.mxu1 %v495_v36  ;;  %v271_v17 = vld [vmem:[%s5714_s6 + $0x528] sm:$0xff]  ;;  %v90_v55 = vld [vmem:[%s5715_s5 + $0x40] sm:$0xff]  ;;  %v92_v58 = vld [vmem:[%s5715_s5 + $0x50] sm:$0xff] }
  0x55   :  { %827 = vmatpush.bf16.msra.mxu1 %v593_v21  ;;  %796 = vmatmul.bf16.vlgmr.msrb.gmra.mxu2 %v496_v30  ;;  %v588_v21 = vpack.c.bf16 %v255_v15, %v254_v13  ;;  %v284_v30 = vld [vmem:[%s5714_s6 + $0x590] sm:$0xff]  ;;  %v251_v36 = vld [vmem:[%s5714_s6 + $0x488] sm:$0xff]  ;;  %v310_v63 = vld [vmem:[%s5714_s6 + $0x660] sm:$0xff]  ;;  %v498_v3 = vpack.c.bf16 %v90_v55, %v90_v55  ;;  %v500_v7 = vpack.c.bf16 %v92_v58, %v92_v58 }
  0x56   :  { %840 = vmatpush.bf16.msra.mxu2 %v601_v22  ;;  %809 = vmatmul.bf16.vlgmr.msrb.gmra.mxu3 %v497_v34  ;;  %v596_v22 = vpack.c.bf16 %v271_v17, %v270_v16  ;;  %v235_v34 = vld [vmem:[%s5714_s6 + $0x408] sm:$0xff]  ;;  %v326_v1 = vld [vmem:[%s5714_s6 + $0x6e0] sm:$0xff]  ;;  %v308_v15 = vld [vmem:[%s5714_s6 + $0x650] sm:$0xff] }
  0x57   :  { %853 = vmatpush.bf16.msra.mxu3 %v609_v26  ;;  %v604_v26 = vpack.c.bf16 %v287_v19, %v286_v18  ;;  %v311_v0 = vld [vmem:[%s5714_s6 + $0x668] sm:$0xff]  ;;  %v342_v5 = vld [vmem:[%s5714_s6 + $0x760] sm:$0xff]  ;;  %v309_v16 = vld [vmem:[%s5714_s6 + $0x658] sm:$0xff] }
  0x58   :  { %815 = vmatpush.bf16.msra.mxu0 %v584_v35  ;;  %v250_v35 = vld [vmem:[%s5714_s6 + $0x480] sm:$0xff]  ;;  %v327_v4 = vld [vmem:[%s5714_s6 + $0x6e8] sm:$0xff]  ;;  %v616_v12 = vpack.c.bf16 %v311_v0, %v310_v63  ;;  %v324_v17 = vld [vmem:[%s5714_s6 + $0x6d0] sm:$0xff]  ;;  %v615_v24 = vpack.c.bf16 %v309_v16, %v308_v15 }
  0x59   :  { %828 = vmatpush.bf16.msra.mxu1 %v592_v37  ;;  %v587_v37 = vpack.c.bf16 %v253_v27, %v252_v25  ;;  %v586_v51 = vpack.c.bf16 %v251_v36, %v250_v35  ;;  %v343_v6 = vld [vmem:[%s5714_s6 + $0x768] sm:$0xff]  ;;  %v624_v13 = vpack.c.bf16 %v327_v4, %v326_v1  ;;  %v325_v19 = vld [vmem:[%s5714_s6 + $0x6d8] sm:$0xff]  ;;  %v306_v25 = vld [vmem:[%s5714_s6 + $0x640] sm:$0xff] }
  0x5a   :  { %841 = vmatpush.bf16.msra.mxu2 %v600_v38  ;;  %v595_v38 = vpack.c.bf16 %v269_v29, %v268_v28  ;;  %v357_v23 = vld [vmem:[%s5714_s6 + $0x7d8] sm:$0xff]  ;;  %v623_v27 = vpack.c.bf16 %v325_v19, %v324_v17  ;;  %v322_v29 = vld [vmem:[%s5714_s6 + $0x6c0] sm:$0xff]  ;;  %v355_v35 = vld [vmem:[%s5714_s6 + $0x7c8] sm:$0xff] }
  0x5b   :  { %854 = vmatpush.bf16.msra.mxu3 %v608_v42  ;;  %v603_v42 = vpack.c.bf16 %v285_v31, %v284_v30  ;;  %v323_v30 = vld [vmem:[%s5714_s6 + $0x6c8] sm:$0xff]  ;;  %v338_v31 = vld [vmem:[%s5714_s6 + $0x740] sm:$0xff]  ;;  %v320_v41 = vld [vmem:[%s5714_s6 + $0x6b0] sm:$0xff] }
  0x5c   :  { %816 = vmatpush.bf16.msra.mxu0 %v583_v48  ;;  %v578_v48 = vpack.c.bf16 %v235_v34, %v234_v32  ;;  %v354_v34 = vld [vmem:[%s5714_s6 + $0x7c0] sm:$0xff]  ;;  %v622_v39 = vpack.c.bf16 %v323_v30, %v322_v29  ;;  %v336_v43 = vld [vmem:[%s5714_s6 + $0x730] sm:$0xff]  ;;  %v337_v45 = vld [vmem:[%s5714_s6 + $0x738] sm:$0xff] }
  0x5d   :  { %829 = vmatpush.bf16.msra.mxu1 %v591_v49  ;;  %v344_v49 = vld [vmem:[%s5714_s6 + $0x770] sm:$0xff]  ;;  %v638_v44 = vpack.c.bf16 %v355_v35, %v354_v34  ;;  %v334_v55 = vld [vmem:[%s5714_s6 + $0x720] sm:$0xff]  ;;  %v425_v30 = vld [vmem:[%s5714_s6 + $0x9f8] sm:$0xff] }
  0x5e   :  { %842 = vmatpush.bf16.msra.mxu2 %v599_v50  ;;  %v345_v50 = vld [vmem:[%s5714_s6 + $0x778] sm:$0xff]  ;;  %v350_v58 = vld [vmem:[%s5714_s6 + $0x7a0] sm:$0xff]  ;;  %v316_v1 = vld [vmem:[%s5714_s6 + $0x690] sm:$0xff] }
  0x5f   :  { %855 = vmatpush.bf16.msra.mxu3 %v607_v54  ;;  %v361_v54 = vld [vmem:[%s5714_s6 + $0x7f8] sm:$0xff]  ;;  %v346_v17 = vld [vmem:[%s5714_s6 + $0x780] sm:$0xff]  ;;  %v376_v19 = vld [vmem:[%s5714_s6 + $0x870] sm:$0xff] }
  0x60   :  { %817 = vmatpush.bf16.msra.mxu0 %v582_v60  ;;  %v93_v60 = vld [vmem:[%s5715_s5 + $0x58] sm:$0xff]  ;;  %v424_v29 = vld [vmem:[%s5714_s6 + $0x9f0] sm:$0xff]  ;;  %v95_v35 = vld [vmem:[%s5715_s5 + $0x68] sm:$0xff] }
  0x61   :  { %830 = vmatpush.bf16.msra.mxu1 %v590_v61  ;;  %v625_v61 = vpack.c.bf16 %v329_v47, %v328_v46  ;;  %v501_v11 = vpack.c.bf16 %v93_v60, %v93_v60  ;;  %v352_v46 = vld [vmem:[%s5714_s6 + $0x7b0] sm:$0xff]  ;;  %v353_v47 = vld [vmem:[%s5714_s6 + $0x7b8] sm:$0xff] }
  0x62   :  { %843 = vmatpush.bf16.msra.mxu2 %v598_v62  ;;  %v633_v62 = vpack.c.bf16 %v345_v50, %v344_v49  ;;  %v302_v49 = vld [vmem:[%s5714_s6 + $0x620] sm:$0xff]  ;;  %v303_v50 = vld [vmem:[%s5714_s6 + $0x628] sm:$0xff]  ;;  %v96_v34 = vld [vmem:[%s5715_s5 + $0x70] sm:$0xff] }
  0x63   :  { %856 = vmatpush.bf16.msra.mxu3 %v606_v2  ;;  %v641_v2 = vpack.c.bf16 %v361_v54, %v360_v53  ;;  %v318_v53 = vld [vmem:[%s5714_s6 + $0x6a0] sm:$0xff]  ;;  %v319_v54 = vld [vmem:[%s5714_s6 + $0x6a8] sm:$0xff]  ;;  %v612_v60 = vpack.c.bf16 %v303_v50, %v302_v49 }
  0x64   :  { %818 = vmatpush.bf16.msra.mxu0 %v581_v8  ;;  %v499_v8 = vpack.c.bf16 %v91_v59, %v91_v59  ;;  %v351_v59 = vld [vmem:[%s5714_s6 + $0x7a8] sm:$0xff]  ;;  %v620_v63 = vpack.c.bf16 %v319_v54, %v318_v53  ;;  %v422_v49 = vld [vmem:[%s5714_s6 + $0x9e0] sm:$0xff] }
  0x65   :  { %831 = vmatpush.bf16.msra.mxu1 %v589_v9  ;;  %v358_v9 = vld [vmem:[%s5714_s6 + $0x7e0] sm:$0xff]  ;;  %v636_v4 = vpack.c.bf16 %v351_v59, %v350_v58  ;;  %v423_v50 = vld [vmem:[%s5714_s6 + $0x9e8] sm:$0xff]  ;;  %v389_v59 = vld [vmem:[%s5714_s6 + $0x8d8] sm:$0xff] }
  0x66   :  { %844 = vmatpush.bf16.msra.mxu2 %v597_v10  ;;  %v359_v10 = vld [vmem:[%s5714_s6 + $0x7e8] sm:$0xff]  ;;  %v672_v58 = vpack.c.bf16 %v423_v50, %v422_v49 }
  0x67   :  { %857 = vmatpush.bf16.msra.mxu3 %v605_v14  ;;  %v632_v14 = vpack.c.bf16 %v343_v6, %v342_v5  ;;  %v640_v18 = vpack.c.bf16 %v359_v10, %v358_v9  ;;  %v333_v5 = vld [vmem:[%s5714_s6 + $0x718] sm:$0xff]  ;;  %v348_v6 = vld [vmem:[%s5714_s6 + $0x790] sm:$0xff]  ;;  %v299_v9 = vld [vmem:[%s5714_s6 + $0x608] sm:$0xff] }
  0x68   :  { %819 = vmatpush.bf16.msra.mxu0 %v580_v20  ;;  %v340_v20 = vld [vmem:[%s5714_s6 + $0x750] sm:$0xff] }
  0x69   :  { %832 = vmatpush.bf16.msra.mxu1 %v588_v21  ;;  %v341_v21 = vld [vmem:[%s5714_s6 + $0x758] sm:$0xff] }
  0x6a   :  { %845 = vmatpush.bf16.msra.mxu2 %v596_v22  ;;  %v356_v22 = vld [vmem:[%s5714_s6 + $0x7d0] sm:$0xff]  ;;  %v631_v28 = vpack.c.bf16 %v341_v21, %v340_v20  ;;  %v377_v21 = vld [vmem:[%s5714_s6 + $0x878] sm:$0xff] }
  0x6b   :  { %858 = vmatpush.bf16.msra.mxu3 %v604_v26  ;;  %v307_v26 = vld [vmem:[%s5714_s6 + $0x648] sm:$0xff]  ;;  %v639_v32 = vpack.c.bf16 %v357_v23, %v356_v22  ;;  %v392_v22 = vld [vmem:[%s5714_s6 + $0x8f0] sm:$0xff]  ;;  %v393_v23 = vld [vmem:[%s5714_s6 + $0x8f8] sm:$0xff] }
  0x6c   :  { %820 = vmatpush.bf16.msra.mxu0 %v579_v33  ;;  %v339_v33 = vld [vmem:[%s5714_s6 + $0x748] sm:$0xff]  ;;  %v614_v36 = vpack.c.bf16 %v307_v26, %v306_v25  ;;  %v408_v25 = vld [vmem:[%s5714_s6 + $0x970] sm:$0xff]  ;;  %v409_v26 = vld [vmem:[%s5714_s6 + $0x978] sm:$0xff] }
  0x6d   :  { %833 = vmatpush.bf16.msra.mxu1 %v587_v37  ;;  %v304_v37 = vld [vmem:[%s5714_s6 + $0x630] sm:$0xff]  ;;  %v630_v40 = vpack.c.bf16 %v339_v33, %v338_v31  ;;  %v94_v31 = vld [vmem:[%s5715_s5 + $0x60] sm:$0xff]  ;;  %v649_v33 = vpack.c.bf16 %v377_v21, %v376_v19  ;;  %v401_v21 = vld [vmem:[%s5714_s6 + $0x938] sm:$0xff] }
  0x6e   :  { %846 = vmatpush.bf16.msra.mxu2 %v595_v38  ;;  %v305_v38 = vld [vmem:[%s5714_s6 + $0x638] sm:$0xff]  ;;  %v400_v19 = vld [vmem:[%s5714_s6 + $0x930] sm:$0xff] }
  0x6f   :  { %859 = vmatpush.bf16.msra.mxu3 %v603_v42  ;;  %v321_v42 = vld [vmem:[%s5714_s6 + $0x6b8] sm:$0xff] }
  0x70   :  { %821 = vmatpush.bf16.msra.mxu0 %v578_v48  ;;  %v613_v48 = vpack.c.bf16 %v305_v38, %v304_v37  ;;  %v657_v37 = vpack.c.bf16 %v393_v23, %v392_v22  ;;  %v665_v38 = vpack.c.bf16 %v409_v26, %v408_v25  ;;  %v416_v22 = vld [vmem:[%s5714_s6 + $0x9b0] sm:$0xff]  ;;  %v417_v23 = vld [vmem:[%s5714_s6 + $0x9b8] sm:$0xff]  ;;  %v366_v25 = vld [vmem:[%s5714_s6 + $0x820] sm:$0xff] }
  0x71   :  { %834 = vmatpush.bf16.msra.mxu1 %v586_v51  ;;  %v621_v51 = vpack.c.bf16 %v321_v42, %v320_v41  ;;  %v390_v41 = vld [vmem:[%s5714_s6 + $0x8e0] sm:$0xff]  ;;  %v673_v42 = vpack.c.bf16 %v425_v30, %v424_v29  ;;  %v367_v26 = vld [vmem:[%s5714_s6 + $0x828] sm:$0xff] }
  0x72   :  { %847 = vmatpush.bf16.msra.mxu2 %v594_v52  ;;  %v629_v52 = vpack.c.bf16 %v337_v45, %v336_v43  ;;  %v502_v43 = vpack.c.bf16 %v94_v31, %v94_v31  ;;  %v406_v45 = vld [vmem:[%s5714_s6 + $0x960] sm:$0xff]  ;;  %v383_v30 = vld [vmem:[%s5714_s6 + $0x8a8] sm:$0xff] }
  0x73   :  { %860 = vmatpush.bf16.msra.mxu3 %v602_v56  ;;  %822 = vmatmul.bf16.vlgmr.msra.gmra.mxu0 %v498_v3  ;;  %v637_v56 = vpack.c.bf16 %v353_v47, %v352_v46  ;;  %v332_v3 = vld [vmem:[%s5714_s6 + $0x710] sm:$0xff]  ;;  %v407_v46 = vld [vmem:[%s5714_s6 + $0x968] sm:$0xff]  ;;  %v504_v47 = vpack.c.bf16 %v96_v34, %v96_v34  ;;  %v382_v29 = vld [vmem:[%s5714_s6 + $0x8a0] sm:$0xff] }
  0x74   :  { %866 = vmatpush.bf16.msrb.mxu0 %v617_v57  ;;  %835 = vmatmul.bf16.vlgmr.msra.gmra.mxu1 %v499_v8  ;;  %v335_v57 = vld [vmem:[%s5714_s6 + $0x728] sm:$0xff]  ;;  %v298_v8 = vld [vmem:[%s5714_s6 + $0x600] sm:$0xff]  ;;  %v627_v16 = vpack.c.bf16 %v333_v5, %v332_v3  ;;  %v664_v54 = vpack.c.bf16 %v407_v46, %v406_v45  ;;  %v397_v45 = vld [vmem:[%s5714_s6 + $0x918] sm:$0xff] }
  0x75   :  { %879 = vmatpush.bf16.msrb.mxu1 %v625_v61  ;;  %848 = vmatmul.bf16.vlgmr.msra.gmra.mxu2 %v500_v7  ;;  %v300_v61 = vld [vmem:[%s5714_s6 + $0x610] sm:$0xff]  ;;  %v628_v0 = vpack.c.bf16 %v335_v57, %v334_v55  ;;  %v349_v7 = vld [vmem:[%s5714_s6 + $0x798] sm:$0xff]  ;;  %v386_v5 = vld [vmem:[%s5714_s6 + $0x8c0] sm:$0xff] }
  0x76   :  { %892 = vmatpush.bf16.msrb.mxu2 %v633_v62  ;;  %861 = vmatmul.bf16.vlgmr.msra.gmra.mxu3 %v501_v11  ;;  %v301_v62 = vld [vmem:[%s5714_s6 + $0x618] sm:$0xff]  ;;  %v314_v11 = vld [vmem:[%s5714_s6 + $0x680] sm:$0xff]  ;;  %v635_v20 = vpack.c.bf16 %v349_v7, %v348_v6  ;;  %v372_v55 = vld [vmem:[%s5714_s6 + $0x850] sm:$0xff] }
  0x77   :  { %905 = vmatpush.bf16.msrb.mxu3 %v641_v2  ;;  %v317_v2 = vld [vmem:[%s5714_s6 + $0x698] sm:$0xff]  ;;  %v611_v10 = vpack.c.bf16 %v301_v62, %v300_v61  ;;  %v388_v57 = vld [vmem:[%s5714_s6 + $0x8d0] sm:$0xff]  ;;  %v387_v6 = vld [vmem:[%s5714_s6 + $0x8c8] sm:$0xff] }
  0x78   :  { %867 = vmatpush.bf16.msrb.mxu0 %v616_v12  ;;  %v315_v12 = vld [vmem:[%s5714_s6 + $0x688] sm:$0xff]  ;;  %v619_v15 = vpack.c.bf16 %v317_v2, %v316_v1  ;;  %v405_v61 = vld [vmem:[%s5714_s6 + $0x958] sm:$0xff]  ;;  %v420_v62 = vld [vmem:[%s5714_s6 + $0x9d0] sm:$0xff]  ;;  %v655_v3 = vpack.c.bf16 %v389_v59, %v388_v57 }
  0x79   :  { %880 = vmatpush.bf16.msrb.mxu1 %v624_v13  ;;  %v330_v13 = vld [vmem:[%s5714_s6 + $0x700] sm:$0xff]  ;;  %v371_v2 = vld [vmem:[%s5714_s6 + $0x848] sm:$0xff]  ;;  %v412_v46 = vld [vmem:[%s5714_s6 + $0x990] sm:$0xff] }
  0x7a   :  { %893 = vmatpush.bf16.msrb.mxu2 %v632_v14  ;;  %v331_v14 = vld [vmem:[%s5714_s6 + $0x708] sm:$0xff]  ;;  %v370_v1 = vld [vmem:[%s5714_s6 + $0x840] sm:$0xff] }
  0x7b   :  { %906 = vmatpush.bf16.msrb.mxu3 %v640_v18  ;;  %v347_v18 = vld [vmem:[%s5714_s6 + $0x788] sm:$0xff]  ;;  %v402_v7 = vld [vmem:[%s5714_s6 + $0x940] sm:$0xff] }
  0x7c   :  { %868 = vmatpush.bf16.msrb.mxu0 %v615_v24  ;;  %v610_v24 = vpack.c.bf16 %v299_v9, %v298_v8  ;;  %v403_v9 = vld [vmem:[%s5714_s6 + $0x948] sm:$0xff]  ;;  %v398_v31 = vld [vmem:[%s5714_s6 + $0x920] sm:$0xff] }
  0x7d   :  { %881 = vmatpush.bf16.msrb.mxu1 %v623_v27  ;;  %v618_v27 = vpack.c.bf16 %v315_v12, %v314_v11  ;;  %v419_v11 = vld [vmem:[%s5714_s6 + $0x9c8] sm:$0xff]  ;;  %v646_v12 = vpack.c.bf16 %v371_v2, %v370_v1  ;;  %v414_v34 = vld [vmem:[%s5714_s6 + $0x9a0] sm:$0xff] }
  0x7e   :  { %894 = vmatpush.bf16.msrb.mxu2 %v631_v28  ;;  %v626_v28 = vpack.c.bf16 %v331_v14, %v330_v13  ;;  %v368_v13 = vld [vmem:[%s5714_s6 + $0x830] sm:$0xff]  ;;  %v369_v14 = vld [vmem:[%s5714_s6 + $0x838] sm:$0xff] }
  0x7f   :  { %907 = vmatpush.bf16.msrb.mxu3 %v639_v32  ;;  %v634_v32 = vpack.c.bf16 %v347_v18, %v346_v17  ;;  %v384_v17 = vld [vmem:[%s5714_s6 + $0x8b0] sm:$0xff]  ;;  %v385_v18 = vld [vmem:[%s5714_s6 + $0x8b8] sm:$0xff] }
  0x80   :  { %869 = vmatpush.bf16.msrb.mxu0 %v614_v36  ;;  %v97_v36 = vld [vmem:[%s5715_s5 + $0x78] sm:$0xff] }
  0x81   :  { %882 = vmatpush.bf16.msrb.mxu1 %v622_v39  ;;  %v374_v39 = vld [vmem:[%s5714_s6 + $0x860] sm:$0xff] }
  0x82   :  { %895 = vmatpush.bf16.msrb.mxu2 %v630_v40  ;;  %v375_v40 = vld [vmem:[%s5714_s6 + $0x868] sm:$0xff] }
  0x83   :  { %908 = vmatpush.bf16.msrb.mxu3 %v638_v44  ;;  %v391_v44 = vld [vmem:[%s5714_s6 + $0x8e8] sm:$0xff] }
  0x84   :  { %870 = vmatpush.bf16.msrb.mxu0 %v613_v48  ;;  %v503_v48 = vpack.c.bf16 %v95_v35, %v95_v35  ;;  %v656_v53 = vpack.c.bf16 %v391_v44, %v390_v41  ;;  %v415_v35 = vld [vmem:[%s5714_s6 + $0x9a8] sm:$0xff]  ;;  %v380_v41 = vld [vmem:[%s5714_s6 + $0x890] sm:$0xff] }
  0x85   :  { %883 = vmatpush.bf16.msrb.mxu1 %v621_v51  ;;  %v505_v51 = vpack.c.bf16 %v97_v36, %v97_v36  ;;  %v644_v36 = vpack.c.bf16 %v367_v26, %v366_v25  ;;  %v668_v44 = vpack.c.bf16 %v415_v35, %v414_v34 }
  0x86   :  { %896 = vmatpush.bf16.msrb.mxu2 %v629_v52  ;;  %v648_v52 = vpack.c.bf16 %v375_v40, %v374_v39  ;;  %v652_v39 = vpack.c.bf16 %v383_v30, %v382_v29 }
  0x87   :  { %909 = vmatpush.bf16.msrb.mxu3 %v637_v56  ;;  %v373_v56 = vld [vmem:[%s5714_s6 + $0x858] sm:$0xff] }
  0x88   :  { %871 = vmatpush.bf16.msrb.mxu0 %v612_v60  ;;  %v404_v60 = vld [vmem:[%s5714_s6 + $0x950] sm:$0xff] }
  0x89   :  { %884 = vmatpush.bf16.msrb.mxu1 %v620_v63  ;;  %v421_v63 = vld [vmem:[%s5714_s6 + $0x9d8] sm:$0xff] }
  0x8a   :  { %897 = vmatpush.bf16.msrb.mxu2 %v628_v0  ;;  %v647_v0 = vpack.c.bf16 %v373_v56, %v372_v55  ;;  %v671_v8 = vpack.c.bf16 %v421_v63, %v420_v62 }
  0x8b   :  { %910 = vmatpush.bf16.msrb.mxu3 %v636_v4  ;;  %v663_v4 = vpack.c.bf16 %v405_v61, %v404_v60 }
  0x8c   :  { %872 = vmatpush.bf16.msrb.mxu0 %v611_v10  ;;  %v418_v10 = vld [vmem:[%s5714_s6 + $0x9c0] sm:$0xff] }
  0x8d   :  { %885 = vmatpush.bf16.msrb.mxu1 %v619_v15  ;;  %v654_v15 = vpack.c.bf16 %v387_v6, %v386_v5 }
  0x8e   :  { %898 = vmatpush.bf16.msrb.mxu2 %v627_v16  ;;  %v662_v16 = vpack.c.bf16 %v403_v9, %v402_v7 }
  0x8f   :  { %911 = vmatpush.bf16.msrb.mxu3 %v635_v20  ;;  %v670_v20 = vpack.c.bf16 %v419_v11, %v418_v10 }
  0x90   :  { %873 = vmatpush.bf16.msrb.mxu0 %v610_v24  ;;  %v645_v24 = vpack.c.bf16 %v369_v14, %v368_v13 }
  0x91   :  { %886 = vmatpush.bf16.msrb.mxu1 %v618_v27  ;;  %v653_v27 = vpack.c.bf16 %v385_v18, %v384_v17 }
  0x92   :  { %899 = vmatpush.bf16.msrb.mxu2 %v626_v28  ;;  %v661_v28 = vpack.c.bf16 %v401_v21, %v400_v19 }
  0x93   :  { %912 = vmatpush.bf16.msrb.mxu3 %v634_v32  ;;  %874 = vmatmul.bf16.vlgmr.msrb.gmra.mxu0 %v502_v43  ;;  %v669_v32 = vpack.c.bf16 %v417_v23, %v416_v22  ;;  %v396_v43 = vld [vmem:[%s5714_s6 + $0x910] sm:$0xff] }
  0x94   :  { %918 = vmatpush.bf16.msra.mxu0 %v649_v33  ;;  %887 = vmatmul.bf16.vlgmr.msrb.gmra.mxu1 %v503_v48  ;;  %v399_v33 = vld [vmem:[%s5714_s6 + $0x928] sm:$0xff] }
  0x95   :  { %931 = vmatpush.bf16.msra.mxu1 %v657_v37  ;;  %900 = vmatmul.bf16.vlgmr.msrb.gmra.mxu2 %v504_v47  ;;  %v364_v37 = vld [vmem:[%s5714_s6 + $0x810] sm:$0xff]  ;;  %v660_v40 = vpack.c.bf16 %v399_v33, %v398_v31  ;;  %v413_v47 = vld [vmem:[%s5714_s6 + $0x998] sm:$0xff] }
  0x96   :  { %944 = vmatpush.bf16.msra.mxu2 %v665_v38  ;;  %913 = vmatmul.bf16.vlgmr.msrb.gmra.mxu3 %v505_v51  ;;  %v365_v38 = vld [vmem:[%s5714_s6 + $0x818] sm:$0xff] }
  0x97   :  { %957 = vmatpush.bf16.msra.mxu3 %v673_v42  ;;  %v381_v42 = vld [vmem:[%s5714_s6 + $0x898] sm:$0xff] }
  0x98   :  { %919 = vmatpush.bf16.msra.mxu0 %v648_v52 }
  0x99   :  { %932 = vmatpush.bf16.msra.mxu1 %v656_v53 }
  0x9a   :  { %945 = vmatpush.bf16.msra.mxu2 %v664_v54 }
  0x9b   :  { %958 = vmatpush.bf16.msra.mxu3 %v672_v58 }
  0x9c   :  { %920 = vmatpush.bf16.msra.mxu0 %v647_v0 }
  0x9d   :  { %933 = vmatpush.bf16.msra.mxu1 %v655_v3 }
  0x9e   :  { %946 = vmatpush.bf16.msra.mxu2 %v663_v4 }
  0x9f   :  { %959 = vmatpush.bf16.msra.mxu3 %v671_v8 }
  0xa0   :  { %921 = vmatpush.bf16.msra.mxu0 %v646_v12 }
  0xa1   :  { %934 = vmatpush.bf16.msra.mxu1 %v654_v15 }
  0xa2   :  { %947 = vmatpush.bf16.msra.mxu2 %v662_v16 }
  0xa3   :  { %960 = vmatpush.bf16.msra.mxu3 %v670_v20 }
  0xa4   :  { %922 = vmatpush.bf16.msra.mxu0 %v645_v24 }
  0xa5   :  { %935 = vmatpush.bf16.msra.mxu1 %v653_v27 }
  0xa6   :  { %948 = vmatpush.bf16.msra.mxu2 %v661_v28 }
  0xa7   :  { %961 = vmatpush.bf16.msra.mxu3 %v669_v32 }
  0xa8   :  { %30 = vsyncpa [#allocation3], 0  ;;  %923 = vmatpush.bf16.msra.mxu0 %v644_v36  ;;  %v643_v48 = vpack.c.bf16 %v365_v38, %v364_v37  ;;  %v362_v49 = vld [vmem:[%s5714_s6 + $0x800] sm:$0xff]  ;;  %v363_v50 = vld [vmem:[%s5714_s6 + $0x808] sm:$0xff]  ;;  %v651_v51 = vpack.c.bf16 %v381_v42, %v380_v41  ;;  %v659_v52 = vpack.c.bf16 %v397_v45, %v396_v43  ;;  %v667_v56 = vpack.c.bf16 %v413_v47, %v412_v46  ;;  %s5716_s0 = sld [smem:[#allocation7_spill]] }
  0xa9   :  { %936 = vmatpush.bf16.msra.mxu1 %v652_v39  ;;  %v378_v53 = vld [vmem:[%s5714_s6 + $0x880] sm:$0xff]  ;;  %v379_v54 = vld [vmem:[%s5714_s6 + $0x888] sm:$0xff]  ;;  %v440_v60 = vld [vmem:[%s5714_s6 + $0xa70] sm:$0xff]  ;;  %v642_v63 = vpack.c.bf16 %v363_v50, %v362_v49  ;;  %vm1032_vm0 = vcmask 1043456   ;;  %s5717_s2 = sld [smem:[#allocation8_spill]]  ;;  %vm1028_vm1 = vcmask 64512  }
  0xaa   :  { %949 = vmatpush.bf16.msra.mxu2 %v660_v40  ;;  %v394_v55 = vld [vmem:[%s5714_s6 + $0x900] sm:$0xff]  ;;  %v395_v57 = vld [vmem:[%s5714_s6 + $0x908] sm:$0xff]  ;;  %v441_v61 = vld [vmem:[%s5714_s6 + $0xa78] sm:$0xff]  ;;  %v650_v3 = vpack.c.bf16 %v379_v54, %v378_v53  ;;  %s5718_s1 = sld [smem:[#allocation9_spill]]  ;;  %vm1054_vm2 = vcmask 261120   ;;  %vm1058_vm3 = vcmask 254976  }
  0xab   :  { %962 = vmatpush.bf16.msra.mxu3 %v668_v44  ;;  %v410_v58 = vld [vmem:[%s5714_s6 + $0x980] sm:$0xff]  ;;  %v411_v59 = vld [vmem:[%s5714_s6 + $0x988] sm:$0xff]  ;;  %v456_v62 = vld [vmem:[%s5714_s6 + $0xaf0] sm:$0xff]  ;;  %v658_v4 = vpack.c.bf16 %v395_v57, %v394_v55  ;;  %v681_v9 = vpack.c.bf16 %v441_v61, %v440_v60  ;;  %s5719_s9 = sld [smem:[#allocation14_spill]]  ;;  %vm1248_vm11 = vcmask 1044480   ;;  %vm1219_vm12 = vcmask 80896  }
  0xac   :  { %924 = vmatpush.bf16.msra.mxu0 %v643_v48  ;;  %v457_v0 = vld [vmem:[%s5714_s6 + $0xaf8] sm:$0xff]  ;;  %v472_v1 = vld [vmem:[%s5714_s6 + $0xb70] sm:$0xff]  ;;  %v98_v7 = vld [vmem:[%s5715_s5 + $0x80] sm:$0xff]  ;;  %v666_v8 = vpack.c.bf16 %v411_v59, %v410_v58  ;;  %s5720_s4 = sld [smem:[#allocation12_spill]]  ;;  %vm1223_vm13 = vcmask 74752  }
  0xad   :  { %v473_v2 = vld [vmem:[%s5714_s6 + $0xb78] sm:$0xff]  ;;  %937 = vmatpush.bf16.msra.mxu1 %v651_v51  ;;  %v488_v5 = vld [vmem:[%s5714_s6 + $0xbf0] sm:$0xff]  ;;  %v99_v11 = vld [vmem:[%s5715_s5 + $0x88] sm:$0xff]  ;;  %v689_v13 = vpack.c.bf16 %v457_v0, %v456_v62  ;;  %v506_v19 = vpack.c.bf16 %v98_v7, %v98_v7  ;;  %s5722_s26 = sld [smem:[#allocation10_spill]] }
  0xae   :  { %950 = vmatpush.bf16.msra.mxu2 %v659_v52  ;;  %v489_v6 = vld [vmem:[%s5714_s6 + $0xbf8] sm:$0xff]  ;;  %v100_v10 = vld [vmem:[%s5715_s5 + $0x90] sm:$0xff]  ;;  %v697_v14 = vpack.c.bf16 %v473_v2, %v472_v1  ;;  %v438_v15 = vld [vmem:[%s5714_s6 + $0xa60] sm:$0xff]  ;;  %v507_v24 = vpack.c.bf16 %v99_v11, %v99_v11  ;;  %s5723_s28 = sld [smem:[#allocation11_spill]] }
  0xaf   :  { %963 = vmatpush.bf16.msra.mxu3 %v667_v56  ;;  %v101_v12 = vld [vmem:[%s5715_s5 + $0x98] sm:$0xff]  ;;  %v439_v16 = vld [vmem:[%s5714_s6 + $0xa68] sm:$0xff]  ;;  %v454_v17 = vld [vmem:[%s5714_s6 + $0xae0] sm:$0xff]  ;;  %v705_v18 = vpack.c.bf16 %v489_v6, %v488_v5  ;;  %v508_v23 = vpack.c.bf16 %v100_v10, %v100_v10 }
  0xb0   :  { %925 = vmatpush.bf16.msra.mxu0 %v642_v63  ;;  %v455_v20 = vld [vmem:[%s5714_s6 + $0xae8] sm:$0xff]  ;;  %v470_v21 = vld [vmem:[%s5714_s6 + $0xb60] sm:$0xff]  ;;  %v509_v27 = vpack.c.bf16 %v101_v12, %v101_v12  ;;  %v680_v28 = vpack.c.bf16 %v439_v16, %v438_v15  ;;  %v436_v31 = vld [vmem:[%s5714_s6 + $0xa50] sm:$0xff]  ;;  %v719_v2 = vpop.f32.mrf.mxu0 }
  0xb1   :  { %v471_v22 = vld [vmem:[%s5714_s6 + $0xb68] sm:$0xff]  ;;  %938 = vmatpush.bf16.msra.mxu1 %v650_v3  ;;  %v486_v25 = vld [vmem:[%s5714_s6 + $0xbe0] sm:$0xff]  ;;  %v688_v29 = vpack.c.bf16 %v455_v20, %v454_v17  ;;  %v437_v32 = vld [vmem:[%s5714_s6 + $0xa58] sm:$0xff] }
  0xb2   :  { %951 = vmatpush.bf16.msra.mxu2 %v658_v4  ;;  %v487_v26 = vld [vmem:[%s5714_s6 + $0xbe8] sm:$0xff]  ;;  %v696_v30 = vpack.c.bf16 %v471_v22, %v470_v21  ;;  %v452_v33 = vld [vmem:[%s5714_s6 + $0xad0] sm:$0xff]  ;;  %v453_v35 = vld [vmem:[%s5714_s6 + $0xad8] sm:$0xff]  ;;  %v679_v40 = vpack.c.bf16 %v437_v32, %v436_v31 }
  0xb3   :  { %964 = vmatpush.bf16.msra.mxu3 %v666_v8  ;;  %926 = vmatmul.bf16.vlgmr.msra.gmra.mxu0 %v506_v19  ;;  %v704_v34 = vpack.c.bf16 %v487_v26, %v486_v25  ;;  %v468_v36 = vld [vmem:[%s5714_s6 + $0xb50] sm:$0xff]  ;;  %v469_v37 = vld [vmem:[%s5714_s6 + $0xb58] sm:$0xff]  ;;  %v687_v41 = vpack.c.bf16 %v453_v35, %v452_v33  ;;  %v434_v43 = vld [vmem:[%s5714_s6 + $0xa40] sm:$0xff] }
  0xb4   :  { %970 = vmatpush.bf16.msrb.mxu0 %v681_v9  ;;  %939 = vmatmul.bf16.vlgmr.msra.gmra.mxu1 %v507_v24  ;;  %v484_v38 = vld [vmem:[%s5714_s6 + $0xbd0] sm:$0xff]  ;;  %v485_v39 = vld [vmem:[%s5714_s6 + $0xbd8] sm:$0xff]  ;;  %v695_v42 = vpack.c.bf16 %v469_v37, %v468_v36  ;;  %v435_v44 = vld [vmem:[%s5714_s6 + $0xa48] sm:$0xff]  ;;  %v732_v16 = vpop.f32.mrf.mxu1 }
  0xb5   :  { %983 = vmatpush.bf16.msrb.mxu1 %v689_v13  ;;  %952 = vmatmul.bf16.vlgmr.msra.gmra.mxu2 %v508_v23  ;;  %v450_v45 = vld [vmem:[%s5714_s6 + $0xac0] sm:$0xff]  ;;  %v703_v46 = vpack.c.bf16 %v485_v39, %v484_v38  ;;  %v451_v47 = vld [vmem:[%s5714_s6 + $0xac8] sm:$0xff]  ;;  %v678_v52 = vpack.c.bf16 %v435_v44, %v434_v43  ;;  %v432_v53 = vld [vmem:[%s5714_s6 + $0xa30] sm:$0xff] }
  0xb6   :  { %996 = vmatpush.bf16.msrb.mxu2 %v697_v14  ;;  %965 = vmatmul.bf16.vlgmr.msra.gmra.mxu3 %v509_v27  ;;  %v466_v48 = vld [vmem:[%s5714_s6 + $0xb40] sm:$0xff]  ;;  %v467_v49 = vld [vmem:[%s5714_s6 + $0xb48] sm:$0xff]  ;;  %v686_v54 = vpack.c.bf16 %v451_v47, %v450_v45  ;;  %v433_v56 = vld [vmem:[%s5714_s6 + $0xa38] sm:$0xff] }
  0xb7   :  { %1009 = vmatpush.bf16.msrb.mxu3 %v705_v18  ;;  %v482_v50 = vld [vmem:[%s5714_s6 + $0xbc0] sm:$0xff]  ;;  %v483_v51 = vld [vmem:[%s5714_s6 + $0xbc8] sm:$0xff]  ;;  %v694_v55 = vpack.c.bf16 %v467_v49, %v466_v48  ;;  %v448_v57 = vld [vmem:[%s5714_s6 + $0xab0] sm:$0xff]  ;;  %v677_v1 = vpack.c.bf16 %v433_v56, %v432_v53 }
  0xb8   :  { %971 = vmatpush.bf16.msrb.mxu0 %v680_v28  ;;  %v3276_v58 = vld [vmem:[%s5716_s0] ss:$0 sm:$0xff]  ;;  %v702_v59 = vpack.c.bf16 %v483_v51, %v482_v50  ;;  %v449_v60 = vld [vmem:[%s5714_s6 + $0xab8] sm:$0xff]  ;;  %v464_v61 = vld [vmem:[%s5714_s6 + $0xb30] sm:$0xff]  ;;  %v745_v27 = vpop.f32.mrf.mxu2  ;;  %v721_v33 = vpop.f32.mrf.mxu0  ;;  %s5721_s0 = sld [smem:[#allocation13_spill]] }
  0xb9   :  { %984 = vmatpush.bf16.msrb.mxu1 %v688_v29  ;;  %v465_v62 = vld [vmem:[%s5714_s6 + $0xb38] sm:$0xff]  ;;  %v480_v63 = vld [vmem:[%s5714_s6 + $0xbb0] sm:$0xff]  ;;  %v685_v3 = vpack.c.bf16 %v449_v60, %v448_v57  ;;  %v430_v5 = vld [vmem:[%s5714_s6 + $0xa20] sm:$0xff]  ;;  %v720_v8 = vadd.f32 %v3276_v58, %v719_v2  ;;  %v758_v31 = vpop.f32.mrf.mxu3 }
  0xba   :  { %997 = vmatpush.bf16.msrb.mxu2 %v696_v30  ;;  %v481_v0 = vld [vmem:[%s5714_s6 + $0xbb8] sm:$0xff]  ;;  %v693_v4 = vpack.c.bf16 %v465_v62, %v464_v61  ;;  %v431_v6 = vld [vmem:[%s5714_s6 + $0xa28] sm:$0xff]  ;;  %v446_v7 = vld [vmem:[%s5714_s6 + $0xaa0] sm:$0xff] }
  0xbb   :  { %1010 = vmatpush.bf16.msrb.mxu3 %v704_v34  ;;  %v701_v9 = vpack.c.bf16 %v481_v0, %v480_v63  ;;  %v447_v10 = vld [vmem:[%s5714_s6 + $0xaa8] sm:$0xff]  ;;  %v462_v11 = vld [vmem:[%s5714_s6 + $0xb20] sm:$0xff]  ;;  %v676_v15 = vpack.c.bf16 %v431_v6, %v430_v5  ;;  %v428_v19 = vld [vmem:[%s5714_s6 + $0xa10] sm:$0xff]  ;;  %v733_v22 = vadd.f32 %v732_v16, %v720_v8 }
  0xbc   :  { %972 = vmatpush.bf16.msrb.mxu0 %v679_v40  ;;  %v463_v12 = vld [vmem:[%s5714_s6 + $0xb28] sm:$0xff]  ;;  %v478_v13 = vld [vmem:[%s5714_s6 + $0xba0] sm:$0xff]  ;;  %v684_v17 = vpack.c.bf16 %v447_v10, %v446_v7  ;;  %v429_v20 = vld [vmem:[%s5714_s6 + $0xa18] sm:$0xff]  ;;  %v734_v48 = vpop.f32.mrf.mxu1 }
  0xbd   :  { %985 = vmatpush.bf16.msrb.mxu1 %v687_v41  ;;  %v479_v14 = vld [vmem:[%s5714_s6 + $0xba8] sm:$0xff]  ;;  %v692_v18 = vpack.c.bf16 %v463_v12, %v462_v11  ;;  %v444_v21 = vld [vmem:[%s5714_s6 + $0xa90] sm:$0xff]  ;;  %v445_v24 = vld [vmem:[%s5714_s6 + $0xa98] sm:$0xff]  ;;  %v746_v30 = vadd.f32 %v745_v27, %v733_v22  ;;  %v675_v32 = vpack.c.bf16 %v429_v20, %v428_v19 }
  0xbe   :  { %998 = vmatpush.bf16.msrb.mxu2 %v695_v42  ;;  %v700_v23 = vpack.c.bf16 %v479_v14, %v478_v13  ;;  %v460_v25 = vld [vmem:[%s5714_s6 + $0xb10] sm:$0xff]  ;;  %v461_v26 = vld [vmem:[%s5714_s6 + $0xb18] sm:$0xff]  ;;  %v683_v34 = vpack.c.bf16 %v445_v24, %v444_v21  ;;  %v426_v36 = vld [vmem:[%s5714_s6 + $0xa00] sm:$0xff] }
  0xbf   :  { %1011 = vmatpush.bf16.msrb.mxu3 %v703_v46  ;;  %v476_v28 = vld [vmem:[%s5714_s6 + $0xb90] sm:$0xff]  ;;  %v477_v29 = vld [vmem:[%s5714_s6 + $0xb98] sm:$0xff]  ;;  %v691_v35 = vpack.c.bf16 %v461_v26, %v460_v25  ;;  %v427_v37 = vld [vmem:[%s5714_s6 + $0xa08] sm:$0xff]  ;;  %v759_v39 = vadd.f32 %v758_v31, %v746_v30 }
  0xc0   :  { %973 = vmatpush.bf16.msrb.mxu0 %v678_v52  ;;  %v442_v38 = vld [vmem:[%s5714_s6 + $0xa80] sm:$0xff]  ;;  %v699_v40 = vpack.c.bf16 %v477_v29, %v476_v28  ;;  %v443_v41 = vld [vmem:[%s5714_s6 + $0xa88] sm:$0xff]  ;;  %v674_v46 = vpack.c.bf16 %v427_v37, %v426_v36  ;;  %v104_v52 = vld [vmem:[%s5715_s5 + $0xb0] sm:$0xff] }
  0xc1   :  { %986 = vmatpush.bf16.msrb.mxu1 %v686_v54  ;;  %v458_v42 = vld [vmem:[%s5714_s6 + $0xb00] sm:$0xff]  ;;  %v459_v43 = vld [vmem:[%s5714_s6 + $0xb08] sm:$0xff]  ;;  %v682_v49 = vpack.c.bf16 %v443_v41, %v442_v38  ;;  %v105_v54 = vld [vmem:[%s5715_s5 + $0xb8] sm:$0xff]  ;;  %v760_v57 = vpop.f32.mrf.mxu3 }
  0xc2   :  { %999 = vmatpush.bf16.msrb.mxu2 %v694_v55  ;;  %v474_v44 = vld [vmem:[%s5714_s6 + $0xb80] sm:$0xff]  ;;  %v475_v45 = vld [vmem:[%s5714_s6 + $0xb88] sm:$0xff]  ;;  %v690_v50 = vpack.c.bf16 %v459_v43, %v458_v42  ;;  %v747_v55 = vpop.f32.mrf.mxu2  ;;  %v513_v60 = vpack.c.bf16 %v105_v54, %v105_v54 }
  0xc3   :  { %1012 = vmatpush.bf16.msrb.mxu3 %v702_v59  ;;  %v102_v47 = vld [vmem:[%s5715_s5 + $0xa0] sm:$0xff]  ;;  %v103_v51 = vld [vmem:[%s5715_s5 + $0xa8] sm:$0xff]  ;;  %v698_v53 = vpack.c.bf16 %v475_v45, %v474_v44  ;;  %v512_v59 = vpack.c.bf16 %v104_v52, %v104_v52  ;;  %s3438_s5 = smov [#allocation2]  }
  0xc4   :  { %974 = vmatpush.bf16.msrb.mxu0 %v677_v1  ;;  %v510_v56 = vpack.c.bf16 %v102_v47, %v102_v47  ;;  %v511_v58 = vpack.c.bf16 %v103_v51, %v103_v51  ;;  %v1022_v55 = vld [vmem:[%s5717_s2] sm:$0xff] }
  0xc5   :  { %987 = vmatpush.bf16.msrb.mxu1 %v685_v3 }
  0xc6   :  { %1000 = vmatpush.bf16.msrb.mxu2 %v693_v4 }
  0xc7   :  { %1013 = vmatpush.bf16.msrb.mxu3 %v701_v9 }
  0xc8   :  { %975 = vmatpush.bf16.msrb.mxu0 %v676_v15 }
  0xc9   :  { %988 = vmatpush.bf16.msrb.mxu1 %v684_v17 }
  0xca   :  { %1001 = vmatpush.bf16.msrb.mxu2 %v692_v18 }
  0xcb   :  { %1014 = vmatpush.bf16.msrb.mxu3 %v700_v23 }
  0xcc   :  { %976 = vmatpush.bf16.msrb.mxu0 %v675_v32 }
  0xcd   :  { %989 = vmatpush.bf16.msrb.mxu1 %v683_v34 }
  0xce   :  { %1002 = vmatpush.bf16.msrb.mxu2 %v691_v35 }
  0xcf   :  { %1015 = vmatpush.bf16.msrb.mxu3 %v699_v40 }
  0xd0   :  { %977 = vmatpush.bf16.msrb.mxu0 %v674_v46  ;;  %v771_v61 = vpop.f32.mrf.mxu0 }
  0xd1   :  { %990 = vmatpush.bf16.msrb.mxu1 %v682_v49  ;;  %v772_v62 = vadd.f32 %v771_v61, %v759_v39  ;;  %v784_v63 = vpop.f32.mrf.mxu1 }
  0xd2   :  { %1003 = vmatpush.bf16.msrb.mxu2 %v690_v50 }
  0xd3   :  { %1016 = vmatpush.bf16.msrb.mxu3 %v698_v53  ;;  %978 = vmatmul.bf16.vlgmr.msrb.gmra.mxu0 %v510_v56  ;;  %v785_v0 = vadd.f32 %v784_v63, %v772_v62  ;;  %v1023_v56 = vld [vmem:[%s5717_s2 + $0x8] sm:$0x3]  ;;  %v1026_v62 = vld [vmem:[%s5718_s1] sm:$0xff] }
  0xd4   :  { %991 = vmatmul.bf16.vlgmr.msrb.gmra.mxu1 %v511_v58 }
  0xd5   :  { %1004 = vmatmul.bf16.vlgmr.msrb.gmra.mxu2 %v512_v59  ;;  %v1024_v59 = vpack.c.bf16 %v1023_v56, %v1022_v55  ;;  %v3097_v55 = vld [vmem:[%s5681_s11 + $0x28] sm:$0xff] }
  0xd6   :  { %1017 = vmatmul.bf16.vlgmr.msrb.gmra.mxu3 %v513_v60 }
  0xd8   :  { %v797_v1 = vpop.f32.mrf.mxu2  ;;  %v773_v5 = vpop.f32.mrf.mxu0 }
  0xd9   :  { %v798_v2 = vadd.f32 %v797_v1, %v785_v0  ;;  %v810_v3 = vpop.f32.mrf.mxu3  ;;  %v786_v6 = vpop.f32.mrf.mxu1 }
  0xda   :  { %v3437_v6 = vmov 32.0  }
  0xdb   :  { %v811_v4 = vadd.f32 %v810_v3, %v798_v2  ;;  %v1027_v2 = vld [vmem:[%s5718_s1 + $0x8] sm:$0x3]  ;;  %3317 = vrcp.f32 %v3437_v6 }
  0xe0   :  { %v799_v7 = vpop.f32.mrf.mxu2 }
  0xe1   :  { %v812_v8 = vpop.f32.mrf.mxu3  ;;  %v3318_v7 = vpop.eup %3317 }
  0xe2   :  { %v1063_v8 = vmul.f32 32.0, %v3318_v7  ;;  %vm1067_vm4 = vweird.f32 %v3318_v7 }
  0xf0   :  { %v823_v9 = vpop.f32.mrf.mxu0 }
  0xf1   :  { %v824_v10 = vadd.f32 %v823_v9, %v811_v4  ;;  %v836_v11 = vpop.f32.mrf.mxu1  ;;  %v1064_v9 = vsub.f32 1.0, %v1063_v8 }
  0xf3   :  { %v837_v12 = vadd.f32 %v836_v11, %v824_v10  ;;  %v1065_v10 = vmul.f32 %v3318_v7, %v1064_v9  ;;  %v3277_v9 = vld [vmem:[%s5720_s4] ss:$0 sm:$0xff] }
  0xf5   :  { %v1066_v11 = vadd.f32 %v3318_v7, %v1065_v10 }
  0xf8   :  { %v849_v13 = vpop.f32.mrf.mxu2  ;;  %v825_v16 = vpop.f32.mrf.mxu0 }
  0xf9   :  { %v850_v14 = vadd.f32 %v849_v13, %v837_v12  ;;  %v862_v15 = vpop.f32.mrf.mxu3  ;;  %v838_v17 = vpop.f32.mrf.mxu1  ;;  %v4818_v12 = vsel %vm1067_vm4, %v3318_v7, %v1066_v11 }
  0xfb   :  { %v863_v18 = vadd.f32 %v862_v15, %v850_v14 }
 0x100   :  { %v851_v19 = vpop.f32.mrf.mxu2 }
 0x101   :  { %v864_v20 = vpop.f32.mrf.mxu3 }
 0x110   :  { %v875_v21 = vpop.f32.mrf.mxu0 }
 0x111   :  { %v888_v22 = vpop.f32.mrf.mxu1  ;;  %v876_v31 = vadd.f32 %v875_v21, %v863_v18 }
 0x113   :  { %v889_v36 = vadd.f32 %v888_v22, %v876_v31 }
 0x118   :  { %v901_v23 = vpop.f32.mrf.mxu2  ;;  %v877_v25 = vpop.f32.mrf.mxu0 }
 0x119   :  { %v914_v24 = vpop.f32.mrf.mxu3  ;;  %v890_v26 = vpop.f32.mrf.mxu1  ;;  %v902_v37 = vadd.f32 %v901_v23, %v889_v36  ;;  %v1119_v23 = vld [vmem:[%s5719_s9 + $0x10] sm:$0xff]  ;;  %v1145_v36 = vld [vmem:[%s5681_s11] sm:$0xff] }
 0x11a   :  { %v1147_v25 = vld [vmem:[%s5681_s11 + $0x10] sm:$0xff] }
 0x11b   :  { %v915_v40 = vadd.f32 %v914_v24, %v902_v37  ;;  %v1120_v24 = vld [vmem:[%s5719_s9 + $0x18] sm:$0xff] }
 0x11c   :  { %v1123_v26 = vpack.c.bf16 %v1120_v24, %v1119_v23  ;;  %v3280_v24 = vld [vmem:[%s5682_s12] ss:$0 sm:$0xff] }
 0x11e   :  { %1137 = vmatpush.bf16.msra.mxu1 %v1123_v26 }
 0x120   :  { %v903_v27 = vpop.f32.mrf.mxu2 }
 0x121   :  { %v916_v28 = vpop.f32.mrf.mxu3  ;;  %v1148_v27 = vld [vmem:[%s5681_s11 + $0x18] sm:$0xff] }
 0x122   :  { %v1171_v28 = vld [vmem:[%s5683_s13 + $0x10] sm:$0xff]  ;;  %v1150_v31 = vpack.c.bf16 %v1148_v27, %v1147_v25  ;;  %v3281_v25 = vld [vmem:[%s5684_s14] ss:$0 sm:$0xff] }
 0x123   :  { %v3104_v27 = vld [vmem:[%s5683_s13 + $0x30] sm:$0xff] }
 0x124   :  { %1161 = vmatpush.bf16.msra.mxu2 %v1150_v31 }
 0x130   :  { %v927_v29 = vpop.f32.mrf.mxu0 }
 0x131   :  { %v940_v30 = vpop.f32.mrf.mxu1  ;;  %v928_v41 = vadd.f32 %v927_v29, %v915_v40  ;;  %v1172_v29 = vld [vmem:[%s5683_s13 + $0x18] sm:$0xff]  ;;  %v1169_v40 = vld [vmem:[%s5683_s13] sm:$0xff] }
 0x133   :  { %v941_v42 = vadd.f32 %v940_v30, %v928_v41  ;;  %v1170_v41 = vld [vmem:[%s5683_s13 + $0x8] sm:$0xff] }
 0x138   :  { %v953_v32 = vpop.f32.mrf.mxu2  ;;  %v929_v34 = vpop.f32.mrf.mxu0 }
 0x139   :  { %v966_v33 = vpop.f32.mrf.mxu3  ;;  %v942_v35 = vpop.f32.mrf.mxu1  ;;  %v954_v43 = vadd.f32 %v953_v32, %v941_v42  ;;  %v1174_v32 = vpack.c.bf16 %v1172_v29, %v1171_v28  ;;  %v1117_v34 = vld [vmem:[%s5719_s9] sm:$0xff]  ;;  %v3105_v28 = vld [vmem:[%s5683_s13 + $0x38] sm:$0xff] }
 0x13a   :  { %v1118_v35 = vld [vmem:[%s5719_s9 + $0x8] sm:$0xff] }
 0x13b   :  { %v967_v44 = vadd.f32 %v966_v33, %v954_v43  ;;  %1185 = vmatpush.bf16.msra.mxu3 %v1174_v32  ;;  %v1173_v43 = vpack.c.bf16 %v1170_v41, %v1169_v40  ;;  %v3279_v40 = vld [vmem:[%s5680_s10] ss:$0 sm:$0xff] }
 0x13f   :  { %1186 = vmatpush.bf16.msra.mxu3 %v1173_v43 }
 0x140   :  { %v955_v38 = vpop.f32.mrf.mxu2 }
 0x141   :  { %v968_v39 = vpop.f32.mrf.mxu3  ;;  %v1122_v38 = vpack.c.bf16 %v1118_v35, %v1117_v34  ;;  %v1327_v35 = vpack.c.bf16 %v3105_v28, %v3104_v27 }
 0x142   :  { %v1146_v39 = vld [vmem:[%s5681_s11 + $0x8] sm:$0xff] }
 0x143   :  { %v1149_v42 = vpack.c.bf16 %v1146_v39, %v1145_v36  ;;  %1138 = vmatpush.bf16.msra.mxu1 %v1122_v38  ;;  %v3102_v38 = vld [vmem:[%s5683_s13 + $0x20] sm:$0xff]  ;;  %v3103_v39 = vld [vmem:[%s5683_s13 + $0x28] sm:$0xff] }
 0x145   :  { %1162 = vmatpush.bf16.msra.mxu2 %v1149_v42 }
 0x150   :  { %v979_v45 = vpop.f32.mrf.mxu0 }
 0x151   :  { %v992_v46 = vpop.f32.mrf.mxu1  ;;  %v980_v47 = vadd.f32 %v979_v45, %v967_v44  ;;  %v3092_v45 = vld [vmem:[%s5719_s9 + $0x30] sm:$0xff] }
 0x153   :  { %v993_v48 = vadd.f32 %v992_v46, %v980_v47  ;;  %v3093_v46 = vld [vmem:[%s5719_s9 + $0x38] sm:$0xff]  ;;  %v3098_v47 = vld [vmem:[%s5681_s11 + $0x30] sm:$0xff] }
 0x158   :  { %v1005_v49 = vpop.f32.mrf.mxu2  ;;  %v981_v52 = vpop.f32.mrf.mxu0 }
 0x159   :  { %v1006_v50 = vadd.f32 %v1005_v49, %v993_v48  ;;  %v1018_v51 = vpop.f32.mrf.mxu3  ;;  %v994_v53 = vpop.f32.mrf.mxu1  ;;  %v1275_v49 = vpack.c.bf16 %v3093_v46, %v3092_v45  ;;  %v3091_v52 = vld [vmem:[%s5719_s9 + $0x28] sm:$0xff] }
 0x15b   :  { %v1019_v54 = vadd.f32 %v1018_v51, %v1006_v50  ;;  %v3099_v50 = vld [vmem:[%s5681_s11 + $0x38] sm:$0xff]  ;;  %v3090_v51 = vld [vmem:[%s5719_s9 + $0x20] sm:$0xff]  ;;  %1287 = vmatpush.bf16.msrb.mxu2 %v1275_v49 }
 0x15c   :  { %v1301_v53 = vpack.c.bf16 %v3099_v50, %v3098_v47 }
 0x15d   :  { %v1025_v57 = vpack.c.bf16 %v1019_v54, %v1019_v54  ;;  %v3096_v54 = vld [vmem:[%s5681_s11 + $0x20] sm:$0xff] }
 0x15e   :  { %1313 = vmatpush.bf16.msrb.mxu3 %v1301_v53 }
 0x15f   :  { %v1034_v58 = vsel %vm1032_vm0, %v1025_v57, 0 }
 0x160   :  { %v1007_v60 = vpop.f32.mrf.mxu2  ;;  %1043 = vmatpush.bf16.msra.mxu0 %v1034_v58  ;;  %v1274_v58 = vpack.c.bf16 %v3091_v52, %v3090_v51 }
 0x161   :  { %v1020_v61 = vpop.f32.mrf.mxu3  ;;  %v1300_v60 = vpack.c.bf16 %v3097_v55, %v3096_v54  ;;  %v4949_v55 = vld [vmem:[%s5722_s26] sm:$0xff] }
 0x162   :  { %1288 = vmatpush.bf16.msrb.mxu2 %v1274_v58 }
 0x163   :  { %3084 = vmatmul.msk.bf16.vlgmr.msra.gmra.mxu0 %vm1028_vm1, %v1024_v59  ;;  %1314 = vmatpush.bf16.msrb.mxu3 %v1300_v60  ;;  %v4956_v60 = vld [vmem:[%s5722_s26 + $0x8] sm:$0x3] }
 0x1e0   :  { %v1045_v63 = vpop.f32.mrf.mxu0 }
 0x1e1   :  { %v4807_v0 = vadd.f32 %v1045_v63, %v1026_v62 }
 0x1e3   :  { %v1055_v1 = vsel %vm1054_vm2, %v4807_v0, 0.0 }
 0x1e4   :  { %1056 = vadd.xlane.f32.xlu0 %v1055_v1 }
 0x1e8   :  { %v1047_v3 = vpop.f32.mrf.mxu0 }
 0x1e9   :  { %v4814_v4 = vadd.f32 %v1047_v3, %v1027_v2 }
 0x1eb   :  { %v1059_v5 = vsel %vm1058_vm3, %v4814_v4, 0.0 }
 0x1ec   :  { %1060 = vadd.xlane.f32.xlu0 %v1059_v5 }
 0x257   :  { %v1057_v13 = vpop.xlane.xlu0 %1056 }
 0x258   :  { %v1069_v14 = vmul.f32 %v4818_v12, %v1057_v13 }
 0x25a   :  { %v4822_v15 = vsub.f32 %v4807_v0, %v1069_v14  ;;  %v3278_v14 = vld [vmem:[%s5721_s0] ss:$0 sm:$0xff] }
 0x25c   :  { %v1073_v16 = vmul.f32 %v4822_v15, %v4822_v15 }
 0x25e   :  { %v1075_v17 = vsel %vm1054_vm2, %v1073_v16, 0.0 }
 0x25f   :  { %1076 = vadd.xlane.f32.xlu1 %v1075_v17  ;;  %v1061_v18 = vpop.xlane.xlu0 %1060 }
 0x260   :  { %v1070_v19 = vmul.f32 %v4818_v12, %v1061_v18 }
 0x262   :  { %v4829_v20 = vsub.f32 %v4814_v4, %v1070_v19 }
 0x264   :  { %v1074_v21 = vmul.f32 %v4829_v20, %v4829_v20 }
 0x266   :  { %v1078_v22 = vsel %vm1058_vm3, %v1074_v21, 0.0 }
 0x267   :  { %1079 = vadd.xlane.f32.xlu1 %v1078_v22 }
 0x2d2   :  { %v1077_v30 = vpop.xlane.xlu1 %1076 }
 0x2d3   :  { %v1081_v33 = vmul.f32 %v1077_v30, %v4818_v12 }
 0x2d5   :  { %v1083_v37 = vadd.f32 1e-06, %v1081_v33 }
 0x2d7   :  { %3319 = vrsqrt.f32 %v1083_v37  ;;  %vm1091_vm6 = vweird.f32 %v1083_v37 }
 0x2da   :  { %v1080_v44 = vpop.xlane.xlu1 %1079 }
 0x2db   :  { %v1082_v48 = vmul.f32 %v1080_v44, %v4818_v12  ;;  %v1326_v44 = vpack.c.bf16 %v3103_v39, %v3102_v38 }
 0x2dd   :  { %v3320_v56 = vpop.eup %3319  ;;  %v1084_v57 = vadd.f32 1e-06, %v1082_v48  ;;  %v3283_v48 = vld [vmem:[%s5682_s12 + $0x1] ss:$0 sm:$0xff] }
 0x2de   :  { %v1086_v59 = vmul.f32 %v3320_v56, %v1083_v37  ;;  %vm1092_vm5 = vweird.f32 %v3320_v56 }
 0x2df   :  { %3321 = vrsqrt.f32 %v1084_v57  ;;  %vm1093_vm7 = vmor %vm1091_vm6, %vm1092_vm5  ;;  %vm1101_vm9 = vweird.f32 %v1084_v57 }
 0x2e0   :  { %v1087_v61 = vmul.f32 %v3320_v56, %v1086_v59 }
 0x2e2   :  { %v1088_v62 = vmul.f32 0.5, %v1087_v61 }
 0x2e4   :  { %v1089_v63 = vsub.f32 1.5, %v1088_v62 }
 0x2e5   :  { %v3322_v1 = vpop.eup %3321 }
 0x2e6   :  { %v1090_v2 = vmul.f32 %v3320_v56, %v1089_v63  ;;  %v1096_v3 = vmul.f32 %v3322_v1, %v1084_v57  ;;  %vm1102_vm8 = vweird.f32 %v3322_v1 }
 0x2e7   :  { %vm1103_vm10 = vmor %vm1101_vm9, %vm1102_vm8 }
 0x2e8   :  { %v1097_v5 = vmul.f32 %v3322_v1, %v1096_v3  ;;  %v1094_v6 = vsel %vm1093_vm7, %v3320_v56, %v1090_v2  ;;  %v3284_v2 = vld [vmem:[%s5684_s14 + $0x1] ss:$0 sm:$0xff] }
 0x2e9   :  { %v1105_v10 = vmul.f32 %v1094_v6, %v4822_v15 }
 0x2ea   :  { %v1098_v7 = vmul.f32 0.5, %v1097_v5 }
 0x2eb   :  { %v1110_v16 = vmul.f32 %v3277_v9, %v1105_v10 }
 0x2ec   :  { %v1099_v8 = vsub.f32 1.5, %v1098_v7 }
 0x2ed   :  { %v1115_v19 = vadd.f32 %v3278_v14, %v1110_v16 }
 0x2ee   :  { %v1100_v11 = vmul.f32 %v3322_v1, %v1099_v8 }
 0x2f0   :  { %v1104_v13 = vsel %vm1103_vm10, %v3322_v1, %v1100_v11 }
 0x2f1   :  { %v1106_v17 = vmul.f32 %v1104_v13, %v4829_v20 }
 0x2f3   :  { %v1111_v18 = vmul.f32 %v3277_v9, %v1106_v17 }
 0x2f5   :  { %v1116_v21 = vadd.f32 %v3278_v14, %v1111_v18 }
 0x2f7   :  { %v4904_v22 = vpack.c.bf16 %v1116_v21, %v1115_v19 }
 0x2f9   :  { %3085 = vmatmul.msk.bf16.vlgmr.msra.gmra.mxu1 %vm1054_vm2, %v4904_v22  ;;  %3086 = vmatmul.msk.bf16.vlgmr.msra.gmra.mxu2 %vm1054_vm2, %v4904_v22 }
 0x2fa   :  { %3087 = vmatmul.msk.bf16.vlgmr.msra.gmra.mxu3 %vm1054_vm2, %v4904_v22 }
 0x309   :  { %3095 = vmatmul.msk.bf16.vlgmr.msrb.gmra.mxu2 %vm1054_vm2, %v4904_v22 }
 0x30a   :  { %3101 = vmatmul.msk.bf16.vlgmr.msrb.gmra.mxu3 %vm1054_vm2, %v4904_v22 }
 0x376   :  { %v1140_v23 = vpop.f32.mrf.mxu1 }
 0x377   :  { %v1141_v45 = vadd.f32 %v3279_v40, %v1140_v23 }
 0x37c   :  { %v1164_v15 = vpop.f32.mrf.mxu2 }
 0x37d   :  { %v1188_v20 = vpop.f32.mrf.mxu3  ;;  %v1165_v29 = vadd.f32 %v3280_v24, %v1164_v15 }
 0x37e   :  { %v1189_v32 = vadd.f32 %v3281_v25, %v1188_v20  ;;  %v1142_v36 = vpop.f32.mrf.mxu1 }
 0x37f   :  { %v1143_v43 = vadd.f32 %v3279_v40, %v1142_v36  ;;  %v3282_v36 = vld [vmem:[%s5680_s10 + $0x1] ss:$0 sm:$0xff] }
 0x380   :  { %v1266_v40 = vld [vmem:[%s5685_s15] sm:$0xff] }
 0x381   :  { %v1193_v47 = vpack.c.bf16 %v1143_v43, %v1141_v45 }
 0x384   :  { %v1166_v26 = vpop.f32.mrf.mxu2 }
 0x385   :  { %v1167_v30 = vadd.f32 %v3280_v24, %v1166_v26  ;;  %v1190_v31 = vpop.f32.mrf.mxu3  ;;  %v3115_v24 = vld [vmem:[%s5719_s9 + $0x50] sm:$0xff] }
 0x386   :  { %v1191_v33 = vadd.f32 %v3281_v25, %v1190_v31  ;;  %v3116_v25 = vld [vmem:[%s5719_s9 + $0x58] sm:$0xff] }
 0x387   :  { %v1194_v34 = vpack.c.bf16 %v1167_v30, %v1165_v29  ;;  %v1467_v30 = vpack.c.bf16 %v3116_v25, %v3115_v24  ;;  %v3125_v25 = vld [vmem:[%s5683_s13 + $0x40] sm:$0xff] }
 0x388   :  { %v1244_v37 = vpack.c.bf16 %v1191_v33, %v1189_v32  ;;  %v3113_v32 = vld [vmem:[%s5719_s9 + $0x40] sm:$0xff]  ;;  %v3114_v33 = vld [vmem:[%s5719_s9 + $0x48] sm:$0xff] }
 0x389   :  { %v1199_v41 = vsel %vm1028_vm1, %v1194_v34, 0  ;;  %v1466_v34 = vpack.c.bf16 %v3114_v33, %v3113_v32 }
 0x38a   :  { %1208 = vmatpush.bf16.xpose.msrb.mxu0 %v1199_v41  ;;  %v1250_v42 = vsel %vm1248_vm11, %v1244_v37, 0  ;;  %v1268_v41 = vpack.c.bf16 %v1266_v40, %v1266_v40 }
 0x38b   :  { %1259 = vmatpush.bf16.msrb.mxu1 %v1250_v42 }
 0x38c   :  { %v1290_v29 = vpop.f32.mrf.mxu2  ;;  %v1445_v42 = vsel %vm1032_vm0, %v1268_v41, 0  ;;  %v3143_v41 = vld [vmem:[%s5681_s11 + $0x70] sm:$0xff] }
 0x38d   :  { %v1316_v46 = vpop.f32.mrf.mxu3  ;;  %v1291_v38 = vadd.f32 %v3282_v36, %v1290_v29  ;;  %v3137_v29 = vld [vmem:[%s5719_s9 + $0x70] sm:$0xff] }
 0x38e   :  { %v1317_v50 = vadd.f32 %v3283_v48, %v1316_v46 }
 0x391   :  { %3088 = vmatmul.msk.bf16.vlgmr.msrb.gmra.mxu0 %vm1028_vm1, %v1193_v47 }
 0x392   :  { %1339 = vmatpush.bf16.msra.mxu0 %v1327_v35 }
 0x394   :  { %v1292_v35 = vpop.f32.mrf.mxu2 }
 0x395   :  { %v1318_v49 = vpop.f32.mrf.mxu3  ;;  %v1293_v37 = vadd.f32 %v3282_v36, %v1292_v35  ;;  %v3136_v35 = vld [vmem:[%s5719_s9 + $0x68] sm:$0xff] }
 0x396   :  { %1340 = vmatpush.bf16.msra.mxu0 %v1326_v44  ;;  %v1319_v51 = vadd.f32 %v3283_v48, %v1318_v49 }
 0x397   :  { %v1347_v39 = vpack.c.bf16 %v1293_v37, %v1291_v38 }
 0x398   :  { %v1348_v52 = vpack.c.bf16 %v1319_v51, %v1317_v50 }
 0x39a   :  { %v1353_v53 = vsel %vm1028_vm1, %v1348_v52, 0  ;;  %1454 = vmatpush.bf16.msrb.mxu0 %v1445_v42  ;;  %v3144_v42 = vld [vmem:[%s5681_s11 + $0x78] sm:$0xff] }
 0x39b   :  { %1362 = vmatpush.bf16.xpose.msra.mxu1 %v1353_v53 }
 0x3a1   :  { %3107 = vmatmul.msk.bf16.vlgmr.msra.gmra.mxu0 %vm1054_vm2, %v4904_v22 }
 0x40e   :  { %v1210_v54 = vpop.f32.mrf.mxu0 }
 0x40f   :  { %v1215_v56 = vmul.f32 0.35355338, %v1210_v54 }
 0x411   :  { %v1217_v57 = vadd.f32 %v1215_v56, %v4949_v55 }
 0x413   :  { %v1220_v58 = vsel %vm1219_vm12, %v1217_v57, -inf }
 0x414   :  { %1221 = vmax.xlane.f32.xlu2 %v1220_v58 }
 0x416   :  { %v1212_v59 = vpop.f32.mrf.mxu0 }
 0x417   :  { %v1216_v61 = vmul.f32 0.35355338, %v1212_v59 }
 0x419   :  { %v1218_v62 = vadd.f32 %v1216_v61, %v4956_v60 }
 0x41b   :  { %v1224_v63 = vsel %vm1223_vm13, %v1218_v62, -inf }
 0x41c   :  { %1225 = vmax.xlane.f32.xlu2 %v1224_v63 }
 0x41e   :  { %v1342_v1 = vpop.f32.mrf.mxu0 }
 0x41f   :  { %v1343_v5 = vadd.f32 %v3284_v2, %v1342_v1 }
 0x426   :  { %v1344_v3 = vpop.f32.mrf.mxu0 }
 0x427   :  { %v1345_v6 = vadd.f32 %v3284_v2, %v1344_v3  ;;  %v3121_v3 = vld [vmem:[%s5681_s11 + $0x50] sm:$0xff] }
 0x429   :  { %v1396_v7 = vpack.c.bf16 %v1345_v6, %v1343_v5  ;;  %v3122_v5 = vld [vmem:[%s5681_s11 + $0x58] sm:$0xff]  ;;  %v3119_v6 = vld [vmem:[%s5681_s11 + $0x40] sm:$0xff] }
 0x42b   :  { %v1401_v8 = vsel %vm1248_vm11, %v1396_v7, 0  ;;  %v1493_v7 = vpack.c.bf16 %v3122_v5, %v3121_v3 }
 0x42c   :  { %1410 = vmatpush.bf16.msra.mxu2 %v1401_v8  ;;  %v3120_v8 = vld [vmem:[%s5681_s11 + $0x48] sm:$0xff] }
 0x430   :  { %1505 = vmatpush.bf16.msrb.mxu2 %v1493_v7 }
 0x487   :  { %v1222_v9 = vpop.xlane.xlu2 %1221 }
 0x488   :  { %v1227_v10 = vsub.f32 %v1217_v57, %v1222_v9  ;;  %v1492_v9 = vpack.c.bf16 %v3120_v8, %v3119_v6  ;;  %v3287_v6 = vld [vmem:[%s5684_s14 + $0x2] ss:$0 sm:$0xff] }
 0x48a   :  { %v1229_v11 = vmul.f32 1.442695, %v1227_v10  ;;  %1506 = vmatpush.bf16.msrb.mxu2 %v1492_v9 }
 0x48c   :  { %3323 = vpow2.f32 %v1229_v11 }
 0x48f   :  { %v1226_v13 = vpop.xlane.xlu2 %1225 }
 0x490   :  { %v1228_v14 = vsub.f32 %v1218_v62, %v1226_v13 }
 0x492   :  { %v3324_v16 = vpop.eup %3323  ;;  %v1231_v17 = vmul.f32 1.442695, %v1228_v14 }
 0x493   :  { %v1233_v18 = vsel %vm1219_vm12, %v3324_v16, 0.0 }
 0x494   :  { %3325 = vpow2.f32 %v1231_v17  ;;  %1234 = vadd.xlane.f32.xlu0 %v1233_v18 }
 0x49a   :  { %v3326_v19 = vpop.eup %3325 }
 0x49b   :  { %v1236_v21 = vsel %vm1223_vm13, %v3326_v19, 0.0 }
 0x49c   :  { %1237 = vadd.xlane.f32.xlu1 %v1236_v21 }
 0x507   :  { %v1235_v15 = vpop.xlane.xlu0 %1234 }
 0x508   :  { %3327 = vrcp.f32 %v1235_v15 }
 0x50e   :  { %v3328_v23 = vpop.eup %3327 }
 0x50f   :  { %v1238_v20 = vpop.xlane.xlu1 %1237  ;;  %v1241_v27 = vmul.f32 %v3328_v23, %v3324_v16  ;;  %v3128_v23 = vld [vmem:[%s5683_s13 + $0x58] sm:$0xff] }
 0x510   :  { %3329 = vrcp.f32 %v1238_v20  ;;  %v3127_v20 = vld [vmem:[%s5683_s13 + $0x50] sm:$0xff] }
 0x511   :  { %v1519_v24 = vpack.c.bf16 %v3128_v23, %v3127_v20  ;;  %v3289_v20 = vld [vmem:[%s5682_s12 + $0x3] ss:$0 sm:$0xff] }
 0x516   :  { %v3330_v26 = vpop.eup %3329 }
 0x517   :  { %v1242_v28 = vmul.f32 %v3330_v26, %v3326_v19  ;;  %v3110_v19 = vld [vmem:[%s5685_s15 + $0x8] sm:$0xff] }
 0x518   :  { %v1420_v21 = vpack.c.bf16 %v3110_v19, %v3110_v19  ;;  %v3126_v26 = vld [vmem:[%s5683_s13 + $0x48] sm:$0xff] }
 0x519   :  { %v1243_v31 = vpack.c.bf16 %v1242_v28, %v1241_v27  ;;  %v1518_v27 = vpack.c.bf16 %v3126_v26, %v3125_v25 }
 0x51a   :  { %v1425_v15 = vsel %vm1032_vm0, %v1420_v21, 0 }
 0x51b   :  { %3089 = vmatmul.msk.bf16.vlgmr.msrb.gmra.mxu1 %vm1219_vm12, %v1243_v31  ;;  %1434 = vmatpush.bf16.msra.mxu3 %v1425_v15 }
 0x51c   :  { %1479 = vmatpush.bf16.msrb.mxu1 %v1467_v30  ;;  %v3138_v30 = vld [vmem:[%s5719_s9 + $0x78] sm:$0xff] }
 0x51d   :  { %v1641_v32 = vpack.c.bf16 %v3138_v30, %v3137_v29 }
 0x51f   :  { %1531 = vmatpush.bf16.msrb.mxu3 %v1519_v24 }
 0x520   :  { %1480 = vmatpush.bf16.msrb.mxu1 %v1466_v34  ;;  %v3135_v34 = vld [vmem:[%s5719_s9 + $0x60] sm:$0xff] }
 0x521   :  { %v1640_v36 = vpack.c.bf16 %v3136_v35, %v3135_v34 }
 0x523   :  { %1532 = vmatpush.bf16.msrb.mxu3 %v1518_v27 }
 0x52b   :  { %3108 = vmatmul.msk.bf16.vlgmr.msra.gmra.mxu1 %vm1028_vm1, %v1347_v39  ;;  %v3286_v39 = vld [vmem:[%s5682_s12 + $0x2] ss:$0 sm:$0xff] }
 0x53b   :  { %3118 = vmatmul.msk.bf16.vlgmr.msrb.gmra.mxu1 %vm1054_vm2, %v4904_v22 }
 0x598   :  { %v1261_v43 = vpop.f32.mrf.mxu1 }
 0x5a0   :  { %v1263_v44 = vpop.f32.mrf.mxu1 }
 0x5a1   :  { %v1267_v45 = vpack.c.bf16 %v1263_v44, %v1261_v43 }
 0x5a3   :  { %3112 = vmatmul.msk.bf16.vlgmr.msrb.gmra.mxu0 %vm1028_vm1, %v1267_v45 }
 0x5a8   :  { %v1364_v46 = vpop.f32.mrf.mxu1 }
 0x5a9   :  { %v1369_v47 = vmul.f32 0.35355338, %v1364_v46  ;;  %v1667_v46 = vpack.c.bf16 %v3144_v42, %v3143_v41  ;;  %v3148_v42 = vld [vmem:[%s5683_s13 + $0x68] sm:$0xff] }
 0x5ab   :  { %v1371_v48 = vadd.f32 %v1369_v47, %v4949_v55 }
 0x5ad   :  { %v1373_v49 = vsel %vm1219_vm12, %v1371_v48, -inf }
 0x5ae   :  { %1374 = vmax.xlane.f32.xlu2 %v1373_v49  ;;  %v3142_v49 = vld [vmem:[%s5681_s11 + $0x68] sm:$0xff] }
 0x5b0   :  { %v1366_v50 = vpop.f32.mrf.mxu1 }
 0x5b1   :  { %v1370_v51 = vmul.f32 0.35355338, %v1366_v50  ;;  %v3285_v50 = vld [vmem:[%s5680_s10 + $0x2] ss:$0 sm:$0xff] }
 0x5b3   :  { %v1372_v52 = vadd.f32 %v1370_v51, %v4956_v60 }
 0x5b5   :  { %v1376_v53 = vsel %vm1223_vm13, %v1372_v52, -inf }
 0x5b6   :  { %1377 = vmax.xlane.f32.xlu0 %v1376_v53 }
 0x5b8   :  { %v1482_v38 = vpop.f32.mrf.mxu1 }
 0x5c0   :  { %v1484_v47 = vpop.f32.mrf.mxu1 }
 0x621   :  { %v1375_v54 = vpop.xlane.xlu2 %1374 }
 0x622   :  { %v1379_v56 = vsub.f32 %v1371_v48, %v1375_v54  ;;  %v3141_v48 = vld [vmem:[%s5681_s11 + $0x60] sm:$0xff]  ;;  %v1483_v54 = vadd.f32 %v3285_v50, %v1482_v38  ;;  %v3149_v38 = vld [vmem:[%s5683_s13 + $0x70] sm:$0xff] }
 0x623   :  { %v1666_v53 = vpack.c.bf16 %v3142_v49, %v3141_v48 }
 0x624   :  { %v1381_v57 = vmul.f32 1.442695, %v1379_v56 }
 0x626   :  { %3331 = vpow2.f32 %v1381_v57  ;;  %v5066_v57 = vpop.f32.mrf.mxu0 }
 0x629   :  { %v1378_v58 = vpop.xlane.xlu0 %1377 }
 0x62a   :  { %v1380_v59 = vsub.f32 %v1372_v52, %v1378_v58  ;;  %v1485_v52 = vadd.f32 %v3285_v50, %v1484_v47 }
 0x62c   :  { %v3332_v61 = vpop.eup %3331  ;;  %v1383_v62 = vmul.f32 1.442695, %v1380_v59  ;;  %v1539_v56 = vpack.c.bf16 %v1485_v52, %v1483_v54 }
 0x62d   :  { %v1385_v63 = vsel %vm1219_vm12, %v3332_v61, 0.0 }
 0x62e   :  { %3333 = vpow2.f32 %v1383_v62  ;;  %1386 = vadd.xlane.f32.xlu1 %v1385_v63  ;;  %v1458_v59 = vpop.f32.mrf.mxu0  ;;  %v3133_v63 = vld [vmem:[%s5685_s15 + $0x10] sm:$0xff] }
 0x634   :  { %v3334_v1 = vpop.eup %3333 }
 0x635   :  { %v1388_v2 = vsel %vm1223_vm13, %v3334_v1, 0.0 }
 0x636   :  { %1389 = vadd.xlane.f32.xlu2 %v1388_v2 }
 0x6a1   :  { %v1387_v10 = vpop.xlane.xlu1 %1386 }
 0x6a2   :  { %3335 = vrcp.f32 %v1387_v10 }
 0x6a8   :  { %v3336_v13 = vpop.eup %3335 }
 0x6a9   :  { %v1390_v11 = vpop.xlane.xlu2 %1389  ;;  %v1393_v16 = vmul.f32 %v3336_v13, %v3332_v61 }
 0x6aa   :  { %3337 = vrcp.f32 %v1390_v11 }
 0x6b0   :  { %v3338_v14 = vpop.eup %3337 }
 0x6b1   :  { %v1394_v17 = vmul.f32 %v3338_v14, %v3334_v1  ;;  %v1612_v1 = vpack.c.bf16 %v3133_v63, %v3133_v63 }
 0x6b3   :  { %v1395_v18 = vpack.c.bf16 %v1394_v17, %v1393_v16  ;;  %v1617_v3 = vsel %vm1032_vm0, %v1612_v1, 0  ;;  %v3290_v1 = vld [vmem:[%s5684_s14 + $0x3] ss:$0 sm:$0xff] }
 0x6b5   :  { %3109 = vmatmul.msk.bf16.vlgmr.msra.gmra.mxu2 %vm1219_vm12, %v1395_v18 }
 0x6b6   :  { %1626 = vmatpush.bf16.msra.mxu2 %v1617_v3 }
 0x6c5   :  { %3124 = vmatmul.msk.bf16.vlgmr.msrb.gmra.mxu2 %vm1054_vm2, %v4904_v22 }
 0x738   :  { %v1412_v28 = vpop.f32.mrf.mxu2 }
 0x740   :  { %v1414_v31 = vpop.f32.mrf.mxu2 }
 0x741   :  { %v1419_v33 = vpack.c.bf16 %v1414_v31, %v1412_v28 }
 0x743   :  { %3111 = vmatmul.msk.bf16.vlgmr.msra.gmra.mxu3 %vm1028_vm1, %v1419_v33 }
 0x744   :  { %1653 = vmatpush.bf16.msra.mxu3 %v1641_v32 }
 0x748   :  { %v1508_v37 = vpop.f32.mrf.mxu2  ;;  %1654 = vmatpush.bf16.msra.mxu3 %v1640_v36 }
 0x749   :  { %v1509_v43 = vadd.f32 %v3286_v39, %v1508_v37 }
 0x750   :  { %v1510_v40 = vpop.f32.mrf.mxu2 }
 0x751   :  { %v1511_v44 = vadd.f32 %v3286_v39, %v1510_v40  ;;  %v3150_v39 = vld [vmem:[%s5683_s13 + $0x78] sm:$0xff]  ;;  %v3147_v40 = vld [vmem:[%s5683_s13 + $0x60] sm:$0xff] }
 0x752   :  { %v1693_v41 = vpack.c.bf16 %v3150_v39, %v3149_v38 }
 0x753   :  { %v1540_v45 = vpack.c.bf16 %v1511_v44, %v1509_v43  ;;  %3130 = vmatmul.msk.bf16.vlgmr.msrb.gmra.mxu3 %vm1054_vm2, %v4904_v22  ;;  %v1692_v43 = vpack.c.bf16 %v3148_v42, %v3147_v40 }
 0x755   :  { %v1545_v51 = vsel %vm1028_vm1, %v1540_v45, 0 }
 0x756   :  { %1554 = vmatpush.bf16.xpose.msra.mxu0 %v1545_v51 }
 0x75d   :  { %3131 = vmatmul.msk.bf16.vlgmr.msra.gmra.mxu0 %vm1028_vm1, %v1539_v56 }
 0x75e   :  { %1679 = vmatpush.bf16.msrb.mxu0 %v1667_v46 }
 0x762   :  { %1680 = vmatpush.bf16.msrb.mxu0 %v1666_v53 }
 0x763   :  { %3140 = vmatmul.msk.bf16.vlgmr.msra.gmra.mxu3 %vm1054_vm2, %v4904_v22 }
 0x76d   :  { %3146 = vmatmul.msk.bf16.vlgmr.msrb.gmra.mxu0 %vm1054_vm2, %v4904_v22 }
 0x7c6   :  { %v5068_v58 = vpop.f32.mrf.mxu3 }
 0x7ce   :  { %v1438_v61 = vpop.f32.mrf.mxu3 }
 0x7cf   :  { %v5070_v62 = vadd.f32 %v1458_v59, %v1438_v61  ;;  %v3288_v61 = vld [vmem:[%s5680_s10 + $0x3] ss:$0 sm:$0xff] }
 0x7d6   :  { %v1534_v2 = vpop.f32.mrf.mxu3 }
 0x7d7   :  { %v1535_v10 = vadd.f32 %v3287_v6, %v1534_v2 }
 0x7da   :  { %v1556_v5 = vpop.f32.mrf.mxu0 }
 0x7db   :  { %v1561_v7 = vmul.f32 0.35355338, %v1556_v5 }
 0x7dd   :  { %v1563_v8 = vadd.f32 %v1561_v7, %v4949_v55 }
 0x7de   :  { %v1536_v9 = vpop.f32.mrf.mxu3 }
 0x7df   :  { %v1537_v11 = vadd.f32 %v3287_v6, %v1536_v9  ;;  %v1565_v13 = vsel %vm1219_vm12, %v1563_v8, -inf  ;;  %v1457_v9 = vadd.f32 %v5066_v57, %v5068_v58 }
 0x7e0   :  { %1566 = vmax.xlane.f32.xlu0 %v1565_v13 }
 0x7e1   :  { %v1588_v14 = vpack.c.bf16 %v1537_v11, %v1535_v10 }
 0x7e2   :  { %v1558_v16 = vpop.f32.mrf.mxu0 }
 0x7e3   :  { %v1562_v17 = vmul.f32 0.35355338, %v1558_v16  ;;  %v1593_v18 = vsel %vm1248_vm11, %v1588_v14, 0 }
 0x7e4   :  { %1602 = vmatpush.bf16.msra.mxu1 %v1593_v18 }
 0x7e5   :  { %v1564_v19 = vadd.f32 %v1562_v17, %v4956_v60 }
 0x7e6   :  { %v1656_v52 = vpop.f32.mrf.mxu3 }
 0x7e7   :  { %v1568_v21 = vsel %vm1223_vm13, %v1564_v19, -inf  ;;  %v1657_v2 = vadd.f32 %v3288_v61, %v1656_v52 }
 0x7e8   :  { %1569 = vmax.xlane.f32.xlu1 %v1568_v21  ;;  %1705 = vmatpush.bf16.msrb.mxu1 %v1693_v41 }
 0x7ea   :  { %v1682_v15 = vpop.f32.mrf.mxu0 }
 0x7eb   :  { %v1683_v24 = vadd.f32 %v3289_v20, %v1682_v15 }
 0x7ec   :  { %1706 = vmatpush.bf16.msrb.mxu1 %v1692_v43 }
 0x7ee   :  { %v1658_v59 = vpop.f32.mrf.mxu3 }
 0x7ef   :  { %v1659_v63 = vadd.f32 %v3288_v61, %v1658_v59 }
 0x7f2   :  { %v1684_v23 = vpop.f32.mrf.mxu0 }
 0x7f3   :  { %v1685_v25 = vadd.f32 %v3289_v20, %v1684_v23 }
 0x7f5   :  { %v1714_v26 = vpack.c.bf16 %v1685_v25, %v1683_v24 }
 0x7f7   :  { %v1719_v27 = vsel %vm1028_vm1, %v1714_v26, 0 }
 0x7f8   :  { %1728 = vmatpush.bf16.xpose.msrb.mxu2 %v1719_v27 }
 0x853   :  { %v1567_v28 = vpop.xlane.xlu0 %1566 }
 0x854   :  { %v1571_v29 = vsub.f32 %v1563_v8, %v1567_v28 }
 0x856   :  { %v1573_v30 = vmul.f32 1.442695, %v1571_v29 }
 0x858   :  { %3339 = vpow2.f32 %v1573_v30 }
 0x85b   :  { %v1570_v31 = vpop.xlane.xlu1 %1569 }
 0x85c   :  { %v1572_v32 = vsub.f32 %v1564_v19, %v1570_v31 }
 0x85e   :  { %v3340_v33 = vpop.eup %3339  ;;  %v1575_v34 = vmul.f32 1.442695, %v1572_v32 }
 0x85f   :  { %v1577_v35 = vsel %vm1219_vm12, %v3340_v33, 0.0 }
 0x860   :  { %3341 = vpow2.f32 %v1575_v34  ;;  %1578 = vadd.xlane.f32.xlu2 %v1577_v35 }
 0x866   :  { %v3342_v36 = vpop.eup %3341 }
 0x867   :  { %v1580_v37 = vsel %vm1223_vm13, %v3342_v36, 0.0 }
 0x868   :  { %1581 = vadd.xlane.f32.xlu0 %v1580_v37 }
 0x8d3   :  { %v1579_v44 = vpop.xlane.xlu2 %1578 }
 0x8d4   :  { %3343 = vrcp.f32 %v1579_v44  ;;  %v3291_v44 = vld [vmem:[%s5686_s16] ss:$0 sm:$0xff] }
 0x8da   :  { %v3344_v46 = vpop.eup %3343 }
 0x8db   :  { %v1582_v45 = vpop.xlane.xlu0 %1581  ;;  %v1585_v48 = vmul.f32 %v3344_v46, %v3340_v33 }
 0x8dc   :  { %3345 = vrcp.f32 %v1582_v45 }
 0x8e2   :  { %v3346_v47 = vpop.eup %3345 }
 0x8e3   :  { %v1586_v49 = vmul.f32 %v3346_v47, %v3342_v36  ;;  %v3155_v36 = vld [vmem:[%s5685_s15 + $0x18] sm:$0xff] }
 0x8e4   :  { %v1786_v37 = vpack.c.bf16 %v3155_v36, %v3155_v36 }
 0x8e5   :  { %v1587_v50 = vpack.c.bf16 %v1586_v49, %v1585_v48 }
 0x8e6   :  { %v1791_v38 = vsel %vm1032_vm0, %v1786_v37, 0 }
 0x8e7   :  { %3132 = vmatmul.msk.bf16.vlgmr.msra.gmra.mxu1 %vm1219_vm12, %v1587_v50  ;;  %1800 = vmatpush.bf16.msra.mxu0 %v1791_v38 }
 0x8f7   :  { %3152 = vmatmul.msk.bf16.vlgmr.msrb.gmra.mxu1 %vm1054_vm2, %v4904_v22  ;;  %v1713_v22 = vpack.c.bf16 %v1659_v63, %v1657_v2 }
 0x964   :  { %v1604_v51 = vpop.f32.mrf.mxu1 }
 0x96c   :  { %v1606_v53 = vpop.f32.mrf.mxu1 }
 0x96d   :  { %v1611_v54 = vpack.c.bf16 %v1606_v53, %v1604_v51 }
 0x96f   :  { %3134 = vmatmul.msk.bf16.vlgmr.msra.gmra.mxu2 %vm1028_vm1, %v1611_v54 }
 0x974   :  { %v1708_v56 = vpop.f32.mrf.mxu1 }
 0x975   :  { %v1709_v5 = vadd.f32 %v3290_v1, %v1708_v56 }
 0x97c   :  { %v1710_v3 = vpop.f32.mrf.mxu1 }
 0x97d   :  { %v1711_v6 = vadd.f32 %v3290_v1, %v1710_v3  ;;  %v1875_v3 = vld [vmem:[%s5689_s19 + $0x10] sm:$0xff] }
 0x97f   :  { %v1762_v7 = vpack.c.bf16 %v1711_v6, %v1709_v5  ;;  %3153 = vmatmul.msk.bf16.vlgmr.msrb.gmra.mxu2 %vm1028_vm1, %v1713_v22  ;;  %v1876_v22 = vld [vmem:[%s5689_s19 + $0x18] sm:$0xff] }
 0x980   :  { %v1879_v5 = vpack.c.bf16 %v1876_v22, %v1875_v3 }
 0x981   :  { %v1767_v8 = vsel %vm1248_vm11, %v1762_v7, 0 }
 0x982   :  { %1776 = vmatpush.bf16.msrb.mxu3 %v1767_v8  ;;  %1893 = vmatpush.bf16.msra.mxu1 %v1879_v5  ;;  %v1873_v8 = vld [vmem:[%s5689_s19] sm:$0xff] }
 0x983   :  { %v1993_v5 = vld [vmem:[%s5691_s21 + $0x20] sm:$0xff] }
 0x9f2   :  { %v1628_v10 = vpop.f32.mrf.mxu2 }
 0x9f3   :  { %v1633_v11 = vadd.f32 %v1628_v10, %v1457_v9  ;;  %v1874_v9 = vld [vmem:[%s5689_s19 + $0x8] sm:$0xff] }
 0x9fa   :  { %v1630_v13 = vpop.f32.mrf.mxu2 }
 0x9fb   :  { %v1634_v14 = vadd.f32 %v1630_v13, %v5070_v62 }
 0xa02   :  { %v1730_v16 = vpop.f32.mrf.mxu2 }
 0xa03   :  { %v1735_v17 = vmul.f32 0.35355338, %v1730_v16 }
 0xa05   :  { %v1737_v18 = vadd.f32 %v1735_v17, %v4949_v55 }
 0xa07   :  { %v1739_v19 = vsel %vm1219_vm12, %v1737_v18, -inf }
 0xa08   :  { %1740 = vmax.xlane.f32.xlu1 %v1739_v19 }
 0xa0a   :  { %v1732_v21 = vpop.f32.mrf.mxu2 }
 0xa0b   :  { %v1736_v15 = vmul.f32 0.35355338, %v1732_v21 }
 0xa0d   :  { %v1738_v20 = vadd.f32 %v1736_v15, %v4956_v60 }
 0xa0f   :  { %v1742_v23 = vsel %vm1223_vm13, %v1738_v20, -inf }
 0xa10   :  { %1743 = vmax.xlane.f32.xlu2 %v1742_v23 }
 0xa7b   :  { %v1741_v57 = vpop.xlane.xlu1 %1740 }
 0xa7c   :  { %v1745_v58 = vsub.f32 %v1737_v18, %v1741_v57 }
 0xa7e   :  { %v1747_v24 = vmul.f32 1.442695, %v1745_v58 }
 0xa80   :  { %3347 = vpow2.f32 %v1747_v24 }
 0xa83   :  { %v1744_v25 = vpop.xlane.xlu2 %1743 }
 0xa84   :  { %v1746_v62 = vsub.f32 %v1738_v20, %v1744_v25 }
 0xa86   :  { %v3348_v26 = vpop.eup %3347  ;;  %v1749_v27 = vmul.f32 1.442695, %v1746_v62 }
 0xa87   :  { %v1751_v55 = vsel %vm1219_vm12, %v3348_v26, 0.0 }
 0xa88   :  { %3349 = vpow2.f32 %v1749_v27  ;;  %1752 = vadd.xlane.f32.xlu0 %v1751_v55 }
 0xa8e   :  { %v3350_v28 = vpop.eup %3349 }
 0xa8f   :  { %v1754_v29 = vsel %vm1223_vm13, %v3350_v28, 0.0 }
 0xa90   :  { %1755 = vadd.xlane.f32.xlu1 %v1754_v29  ;;  %v3293_v29 = vld [vmem:[%s5688_s18] ss:$0 sm:$0xff] }
 0xafb   :  { %v1753_v60 = vpop.xlane.xlu0 %1752 }
 0xafc   :  { %3351 = vrcp.f32 %v1753_v60 }
 0xb02   :  { %v3352_v31 = vpop.eup %3351 }
 0xb03   :  { %v1756_v30 = vpop.xlane.xlu1 %1755  ;;  %v1759_v33 = vmul.f32 %v3352_v31, %v3348_v26  ;;  %v3292_v26 = vld [vmem:[%s5687_s17] ss:$0 sm:$0xff] }
 0xb04   :  { %3353 = vrcp.f32 %v1756_v30 }
 0xb0a   :  { %v3354_v32 = vpop.eup %3353 }
 0xb0b   :  { %v1760_v34 = vmul.f32 %v3354_v32, %v3350_v28 }
 0xb0d   :  { %v1761_v35 = vpack.c.bf16 %v1760_v34, %v1759_v33 }
 0xb0f   :  { %3154 = vmatmul.msk.bf16.vlgmr.msrb.gmra.mxu3 %vm1219_vm12, %v1761_v35  ;;  %v3294_v35 = vld [vmem:[%s5690_s20] ss:$0 sm:$0xff] }
 0xb92   :  { %v1778_v39 = vpop.f32.mrf.mxu3 }
 0xb9a   :  { %v1780_v40 = vpop.f32.mrf.mxu3 }
 0xb9b   :  { %v1785_v41 = vpack.c.bf16 %v1780_v40, %v1778_v39 }
 0xb9d   :  { %3156 = vmatmul.msk.bf16.vlgmr.msra.gmra.mxu0 %vm1028_vm1, %v1785_v41 }
 0xc1a   :  { %v1802_v42 = vpop.f32.mrf.mxu0 }
 0xc1b   :  { %v1807_v43 = vadd.f32 %v1802_v42, %v1633_v11  ;;  %v1878_v11 = vpack.c.bf16 %v1874_v9, %v1873_v8 }
 0xc1d   :  { %v1809_v45 = vadd.f32 %v1807_v43, %v4807_v0  ;;  %1894 = vmatpush.bf16.msra.mxu1 %v1878_v11 }
 0xc1f   :  { %v5133_v46 = vadd.f32 %v3291_v44, %v1809_v45 }
 0xc21   :  { %v1819_v47 = vsel %vm1054_vm2, %v5133_v46, 0.0 }
 0xc22   :  { %v1804_v48 = vpop.f32.mrf.mxu0  ;;  %1820 = vadd.xlane.f32.xlu2 %v1819_v47 }
 0xc23   :  { %v1808_v49 = vadd.f32 %v1804_v48, %v1634_v14 }
 0xc25   :  { %v1810_v50 = vadd.f32 %v1808_v49, %v4814_v4 }
 0xc27   :  { %v5138_v51 = vadd.f32 %v3291_v44, %v1810_v50 }
 0xc29   :  { %v1822_v52 = vsel %vm1058_vm3, %v5138_v51, 0.0 }
 0xc2a   :  { %1823 = vadd.xlane.f32.xlu0 %v1822_v52 }
 0xc95   :  { %v1821_v53 = vpop.xlane.xlu2 %1820 }
 0xc96   :  { %v1825_v54 = vmul.f32 %v1821_v53, %v4818_v12 }
 0xc98   :  { %v1827_v0 = vsub.f32 %v5133_v46, %v1825_v54 }
 0xc9a   :  { %v1829_v56 = vmul.f32 %v1827_v0, %v1827_v0 }
 0xc9c   :  { %v1831_v59 = vsel %vm1054_vm2, %v1829_v56, 0.0  ;;  %v1996_v56 = vld [vmem:[%s5691_s21 + $0x38] sm:$0xff] }
 0xc9d   :  { %v1824_v61 = vpop.xlane.xlu0 %1823  ;;  %1832 = vadd.xlane.f32.xlu1 %v1831_v59 }
 0xc9e   :  { %v1826_v63 = vmul.f32 %v1824_v61, %v4818_v12 }
 0xca0   :  { %v1828_v4 = vsub.f32 %v5138_v51, %v1826_v63 }
 0xca2   :  { %v1830_v1 = vmul.f32 %v1828_v4, %v1828_v4 }
 0xca4   :  { %v1834_v2 = vsel %vm1058_vm3, %v1830_v1, 0.0 }
 0xca5   :  { %1835 = vadd.xlane.f32.xlu2 %v1834_v2 }
 0xd10   :  { %v1833_v6 = vpop.xlane.xlu1 %1832 }
 0xd11   :  { %v1837_v7 = vmul.f32 %v1833_v6, %v4818_v12  ;;  %v1994_v6 = vld [vmem:[%s5691_s21 + $0x28] sm:$0xff] }
 0xd12   :  { %v2000_v8 = vpack.c.bf16 %v1994_v6, %v1993_v5 }
 0xd13   :  { %v1839_v10 = vadd.f32 1e-06, %v1837_v7 }
 0xd15   :  { %3355 = vrsqrt.f32 %v1839_v10  ;;  %vm1847_vm15 = vweird.f32 %v1839_v10 }
 0xd18   :  { %v1836_v13 = vpop.xlane.xlu2 %1835 }
 0xd19   :  { %v1838_v14 = vmul.f32 %v1836_v13, %v4818_v12 }
 0xd1b   :  { %v3356_v16 = vpop.eup %3355  ;;  %v1840_v17 = vadd.f32 1e-06, %v1838_v14 }
 0xd1c   :  { %v1842_v18 = vmul.f32 %v3356_v16, %v1839_v10  ;;  %vm1848_vm14 = vweird.f32 %v3356_v16 }
 0xd1d   :  { %3357 = vrsqrt.f32 %v1840_v17  ;;  %vm1849_vm4 = vmor %vm1847_vm15, %vm1848_vm14  ;;  %vm1857_vm6 = vweird.f32 %v1840_v17 }
 0xd1e   :  { %v1843_v19 = vmul.f32 %v3356_v16, %v1842_v18  ;;  %v1992_v18 = vld [vmem:[%s5691_s21 + $0x18] sm:$0xff] }
 0xd20   :  { %v1844_v21 = vmul.f32 0.5, %v1843_v19 }
 0xd22   :  { %v1845_v15 = vsub.f32 1.5, %v1844_v21 }
 0xd23   :  { %v3358_v20 = vpop.eup %3357 }
 0xd24   :  { %v1846_v23 = vmul.f32 %v3356_v16, %v1845_v15  ;;  %v1852_v57 = vmul.f32 %v3358_v20, %v1840_v17  ;;  %vm1858_vm5 = vweird.f32 %v3358_v20  ;;  %v1991_v17 = vld [vmem:[%s5691_s21 + $0x10] sm:$0xff] }
 0xd25   :  { %vm1859_vm7 = vmor %vm1857_vm6, %vm1858_vm5  ;;  %v1999_v21 = vpack.c.bf16 %v1992_v18, %v1991_v17 }
 0xd26   :  { %v1853_v58 = vmul.f32 %v3358_v20, %v1852_v57  ;;  %v1850_v24 = vsel %vm1849_vm4, %v3356_v16, %v1846_v23 }
 0xd27   :  { %v1861_v27 = vmul.f32 %v1850_v24, %v1827_v0  ;;  %v1995_v0 = vld [vmem:[%s5691_s21 + $0x30] sm:$0xff]  ;;  %v1989_v24 = vld [vmem:[%s5691_s21] sm:$0xff] }
 0xd28   :  { %v1854_v25 = vmul.f32 0.5, %v1853_v58  ;;  %v2001_v61 = vpack.c.bf16 %v1996_v56, %v1995_v0 }
 0xd29   :  { %v1866_v60 = vmul.f32 %v3292_v26, %v1861_v27 }
 0xd2a   :  { %v1855_v62 = vsub.f32 1.5, %v1854_v25  ;;  %2010 = vmatpush.bf16.msra.mxu2 %v2001_v61  ;;  %v1990_v25 = vld [vmem:[%s5691_s21 + $0x8] sm:$0xff] }
 0xd2b   :  { %v1871_v32 = vadd.f32 %v3293_v29, %v1866_v60 }
 0xd2c   :  { %v1856_v55 = vmul.f32 %v3358_v20, %v1855_v62 }
 0xd2e   :  { %v1860_v28 = vsel %vm1859_vm7, %v3358_v20, %v1856_v55  ;;  %2011 = vmatpush.bf16.msra.mxu2 %v2000_v8  ;;  %vm2002_vm7 = vcmask 523264  }
 0xd2f   :  { %v1862_v30 = vmul.f32 %v1860_v28, %v1828_v4 }
 0xd31   :  { %v1867_v31 = vmul.f32 %v3292_v26, %v1862_v30  ;;  %v1998_v26 = vpack.c.bf16 %v1990_v25, %v1989_v24 }
 0xd32   :  { %2012 = vmatpush.bf16.msra.mxu2 %v1999_v21 }
 0xd33   :  { %v1872_v33 = vadd.f32 %v3293_v29, %v1867_v31 }
 0xd35   :  { %v1877_v34 = vpack.c.bf16 %v1872_v33, %v1871_v32 }
 0xd36   :  { %2013 = vmatpush.bf16.msra.mxu2 %v1998_v26 }
 0xd37   :  { %3157 = vmatmul.msk.bf16.vlgmr.msra.gmra.mxu1 %vm1054_vm2, %v1877_v34 }
 0xdb4   :  { %v1896_v36 = vpop.f32.mrf.mxu1 }
 0xdb5   :  { %v5172_v37 = vadd.f32 %v3294_v35, %v1896_v36 }
 0xdb7   :  { %v5175_v38 = vmul.f32 0.70710677, %v5172_v37 }
 0xdb9   :  { %v1905_v39 = vmul.f32 %v5175_v38, %v5175_v38 }
 0xdbb   :  { %v1906_v40 = vmin.f32 %v1905_v39, 16.0 }
 0xdbc   :  { %v1898_v41 = vpop.f32.mrf.mxu1 }
 0xdbd   :  { %v1907_v42 = vmul.f32 2.1237322e-06, %v1906_v40  ;;  %v1918_v43 = vmul.f32 3.8918573e-05, %v1906_v40  ;;  %v5179_v44 = vadd.f32 %v3294_v35, %v1898_v41 }
 0xdbf   :  { %v1908_v45 = vadd.f32 0.00028619796, %v1907_v42  ;;  %v1919_v47 = vadd.f32 0.001143296, %v1918_v43  ;;  %v5182_v48 = vmul.f32 0.70710677, %v5179_v44 }
 0xdc1   :  { %v1920_v49 = vmul.f32 %v1919_v47, %v1906_v40  ;;  %v1945_v50 = vmul.f32 %v5182_v48, %v5182_v48  ;;  %v1909_v52 = vmul.f32 %v1908_v45, %v1906_v40 }
 0xdc3   :  { %v1921_v53 = vadd.f32 0.014752088, %v1920_v49  ;;  %v5186_v54 = vmin.f32 %v1945_v50, 16.0  ;;  %v1910_v1 = vadd.f32 0.0036580483, %v1909_v52 }
 0xdc5   :  { %v1922_v59 = vmul.f32 %v1921_v53, %v1906_v40  ;;  %v1947_v63 = vmul.f32 2.1237322e-06, %v5186_v54  ;;  %v1958_v4 = vmul.f32 3.8918573e-05, %v5186_v54  ;;  %v1911_v11 = vmul.f32 %v1910_v1, %v1906_v40 }
 0xdc7   :  { %v1923_v2 = vadd.f32 0.112945676, %v1922_v59  ;;  %v1948_v3 = vadd.f32 0.00028619796, %v1947_v63  ;;  %v1959_v22 = vadd.f32 0.001143296, %v1958_v4 }
 0xdc8   :  { %v1912_v20 = vadd.f32 0.05243302, %v1911_v11 }
 0xdc9   :  { %v1924_v7 = vmul.f32 %v1923_v2, %v1906_v40  ;;  %v1949_v9 = vmul.f32 %v1948_v3, %v5186_v54  ;;  %v1960_v10 = vmul.f32 %v1959_v22, %v5186_v54 }
 0xdca   :  { %v1913_v27 = vmul.f32 %v1912_v20, %v1906_v40 }
 0xdcb   :  { %v1925_v13 = vadd.f32 0.4994258, %v1924_v7  ;;  %v1950_v14 = vadd.f32 0.0036580483, %v1949_v9  ;;  %v1961_v16 = vadd.f32 0.014752088, %v1960_v10 }
 0xdcc   :  { %v1914_v30 = vadd.f32 0.18741608, %v1913_v27  ;;  %v1901_v9 = vmul.f32 0.5, %v5172_v37  ;;  %v1902_v10 = vmul.f32 0.5, %v5179_v44 }
 0xdcd   :  { %v1926_v19 = vmul.f32 %v1925_v13, %v1906_v40  ;;  %v1962_v15 = vmul.f32 %v1961_v16, %v5186_v54  ;;  %v1951_v57 = vmul.f32 %v1950_v14, %v5186_v54 }
 0xdce   :  { %v1915_v35 = vmul.f32 %v1914_v30, %v1906_v40  ;;  %v3172_v30 = vld [vmem:[%s5681_s11 + $0x98] sm:$0xff] }
 0xdcf   :  { %v1927_v23 = vadd.f32 1.0, %v1926_v19  ;;  %v1963_v58 = vadd.f32 0.112945676, %v1962_v15  ;;  %v1952_v55 = vadd.f32 0.05243302, %v1951_v57 }
 0xdd0   :  { %v1916_v45 = vadd.f32 1.1283791, %v1915_v35 }
 0xdd1   :  { %3359 = vrcp.f32 %v1927_v23  ;;  %v1964_v62 = vmul.f32 %v1963_v58, %v5186_v54  ;;  %v1953_v32 = vmul.f32 %v1952_v55, %v5186_v54  ;;  %v1939_v39 = vand.u32 2147483648, %v1927_v23  ;;  %v3165_v55 = vld [vmem:[%s5719_s9 + $0x90] sm:$0xff] }
 0xdd2   :  { %v1937_v42 = vand.u32 2147483647, %v1927_v23  ;;  %vm1933_vm9 = vweird.f32 %v1927_v23  ;;  %v1917_v56 = vmul.f32 %v1916_v45, %v5175_v38 }
 0xdd3   :  { %v1965_v28 = vadd.f32 0.4994258, %v1964_v62  ;;  %v1954_v41 = vadd.f32 0.18741608, %v1953_v32  ;;  %v1940_v50 = vor.u32 1.1754944e-38, %v1939_v39  ;;  %v3178_v32 = vld [vmem:[%s5683_s13 + $0x98] sm:$0xff] }
 0xdd4   :  { %vm1938_vm14 = vcmp.eq.f32.partialorder %v1937_v42, 8.507059e+37  ;;  %v3163_v39 = vld [vmem:[%s5719_s9 + $0x80] sm:$0xff] }
 0xdd5   :  { %v1966_v29 = vmul.f32 %v1965_v28, %v5186_v54  ;;  %v1955_v52 = vmul.f32 %v1954_v41, %v5186_v54  ;;  %v3166_v28 = vld [vmem:[%s5719_s9 + $0x98] sm:$0xff]  ;;  %v3164_v41 = vld [vmem:[%s5719_s9 + $0x88] sm:$0xff]  ;;  %v3169_v42 = vld [vmem:[%s5681_s11 + $0x80] sm:$0xff] }
 0xdd6   :  { %v2092_v45 = vpack.c.bf16 %v3164_v41, %v3163_v39 }
 0xdd7   :  { %v3360_v60 = vpop.eup %3359  ;;  %v1967_v33 = vadd.f32 1.0, %v1966_v29  ;;  %v1956_v59 = vadd.f32 1.1283791, %v1955_v52  ;;  %v3171_v29 = vld [vmem:[%s5681_s11 + $0x90] sm:$0xff] }
 0xdd8   :  { %v1929_v31 = vmul.f32 %v3360_v60, %v1927_v23  ;;  %vm1934_vm8 = vweird.f32 %v3360_v60 }
 0xdd9   :  { %3361 = vrcp.f32 %v1967_v33  ;;  %vm1935_vm10 = vmor %vm1933_vm9, %vm1934_vm8  ;;  %v1979_v61 = vand.u32 2147483648, %v1967_v33  ;;  %v1977_v1 = vand.u32 2147483647, %v1967_v33  ;;  %vm1973_vm4 = vweird.f32 %v1967_v33 }
 0xdda   :  { %v1930_v34 = vsub.f32 1.0, %v1929_v31  ;;  %v1957_v5 = vmul.f32 %v1956_v59, %v5182_v48  ;;  %v3295_v48 = vld [vmem:[%s5692_s22] ss:$0 sm:$0xff]  ;;  %v3177_v31 = vld [vmem:[%s5683_s13 + $0x90] sm:$0xff] }
 0xddb   :  { %v1980_v3 = vor.u32 1.1754944e-38, %v1979_v61  ;;  %vm1978_vm6 = vcmp.eq.f32.partialorder %v1977_v1, 8.507059e+37  ;;  %v2148_v35 = vpack.c.bf16 %v3178_v32, %v3177_v31  ;;  %v3192_v59 = vld [vmem:[%s5681_s11 + $0xb0] sm:$0xff]  ;;  %v3184_v1 = vld [vmem:[%s5719_s9 + $0xa0] sm:$0xff]  ;;  %v3199_v31 = vld [vmem:[%s5683_s13 + $0xb8] sm:$0xff] }
 0xddc   :  { %v1931_v36 = vmul.f32 %v3360_v60, %v1930_v34  ;;  %v2122_v34 = vpack.c.bf16 %v3172_v30, %v3171_v29  ;;  %v3198_v30 = vld [vmem:[%s5683_s13 + $0xb0] sm:$0xff] }
 0xddd   :  { %2160 = vmatpush.bf16.msrb.mxu1 %v2148_v35  ;;  %v2300_v41 = vpack.c.bf16 %v3199_v31, %v3198_v30 }
 0xdde   :  { %v1932_v43 = vadd.f32 %v3360_v60, %v1931_v36  ;;  %2134 = vmatpush.bf16.msrb.mxu0 %v2122_v34 }
 0xddf   :  { %v3362_v47 = vpop.eup %3361 }
 0xde0   :  { %v1936_v49 = vsel %vm1935_vm10, %v3360_v60, %v1932_v43  ;;  %v1969_v53 = vmul.f32 %v3362_v47, %v1967_v33  ;;  %vm1974_vm15 = vweird.f32 %v3362_v47  ;;  %v2093_v60 = vpack.c.bf16 %v3166_v28, %v3165_v55  ;;  %v3298_v55 = vld [vmem:[%s5682_s12 + $0x4] ss:$0 sm:$0xff] }
 0xde1   :  { %v1941_v0 = vsel %vm1938_vm14, %v1940_v50, %v1936_v49  ;;  %vm1975_vm5 = vmor %vm1973_vm4, %vm1974_vm15  ;;  %v3175_v49 = vld [vmem:[%s5683_s13 + $0x80] sm:$0xff]  ;;  %v3176_v50 = vld [vmem:[%s5683_s13 + $0x88] sm:$0xff] }
 0xde2   :  { %v1970_v40 = vsub.f32 1.0, %v1969_v53  ;;  %v1942_v63 = vmul.f32 %v1941_v0, %v1917_v56  ;;  %2108 = vmatpush.bf16.msra.mxu3 %v2093_v60  ;;  %v2147_v53 = vpack.c.bf16 %v3176_v50, %v3175_v49  ;;  %v3186_v56 = vld [vmem:[%s5719_s9 + $0xb0] sm:$0xff]  ;;  %v3299_v28 = vld [vmem:[%s5684_s14 + $0x4] ss:$0 sm:$0xff] }
 0xde4   :  { %v1971_v4 = vmul.f32 %v3362_v47, %v1970_v40  ;;  %v3158_v22 = vclamps-f32 %v1942_v63, 1.0  ;;  %2161 = vmatpush.bf16.msrb.mxu1 %v2147_v53  ;;  %v3187_v40 = vld [vmem:[%s5719_s9 + $0xb8] sm:$0xff] }
 0xde5   :  { %v2248_v63 = vpack.c.bf16 %v3187_v40, %v3186_v56 }
 0xde6   :  { %v1972_v2 = vadd.f32 %v3362_v47, %v1971_v4  ;;  %v1985_v8 = vadd.f32 1.0, %v3158_v22  ;;  %2109 = vmatpush.bf16.msra.mxu3 %v2092_v45  ;;  %v3193_v4 = vld [vmem:[%s5681_s11 + $0xb8] sm:$0xff]  ;;  %v3190_v22 = vld [vmem:[%s5681_s11 + $0xa0] sm:$0xff]  ;;  %v3197_v45 = vld [vmem:[%s5683_s13 + $0xa8] sm:$0xff] }
 0xde8   :  { %v1976_v54 = vsel %vm1975_vm5, %v3362_v47, %v1972_v2  ;;  %v1987_v13 = vmul.f32 %v1985_v8, %v1901_v9  ;;  %v3170_v47 = vld [vmem:[%s5681_s11 + $0x88] sm:$0xff] }
 0xde9   :  { %v1981_v6 = vsel %vm1978_vm6, %v1980_v3, %v1976_v54  ;;  %v2121_v52 = vpack.c.bf16 %v3170_v47, %v3169_v42  ;;  %v3185_v2 = vld [vmem:[%s5719_s9 + $0xa8] sm:$0xff]  ;;  %v2274_v3 = vpack.c.bf16 %v3193_v4, %v3192_v59  ;;  %v3300_v47 = vld [vmem:[%s5680_s10 + $0x4] ss:$0 sm:$0xff] }
 0xdea   :  { %v1982_v7 = vmul.f32 %v1981_v6, %v1957_v5  ;;  %v3191_v5 = vld [vmem:[%s5681_s11 + $0xa8] sm:$0xff] }
 0xdeb   :  { %2135 = vmatpush.bf16.msrb.mxu0 %v2121_v52  ;;  %2286 = vmatpush.bf16.msra.mxu1 %v2274_v3 }
 0xdec   :  { %v3159_v38 = vclamps-f32 %v1982_v7, 1.0  ;;  %v2247_v7 = vpack.c.bf16 %v3185_v2, %v3184_v1 }
 0xdee   :  { %v1986_v11 = vadd.f32 1.0, %v3159_v38  ;;  %v2273_v38 = vpack.c.bf16 %v3191_v5, %v3190_v22 }
 0xdef   :  { %2260 = vmatpush.bf16.msra.mxu0 %v2248_v63 }
 0xdf0   :  { %v1988_v14 = vmul.f32 %v1986_v11, %v1902_v10  ;;  %2287 = vmatpush.bf16.msra.mxu1 %v2273_v38 }
 0xdf2   :  { %v1997_v16 = vpack.c.bf16 %v1988_v14, %v1987_v13 }
 0xdf3   :  { %2261 = vmatpush.bf16.msra.mxu0 %v2247_v7 }
 0xdf4   :  { %3160 = vmatmul.msk.bf16.vlgmr.msra.gmra.mxu2 %vm2002_vm7, %v1997_v16 }
 0xe77   :  { %v2015_v17 = vpop.f32.mrf.mxu2 }
 0xe78   :  { %v2020_v18 = vadd.f32 %v2015_v17, %v5133_v46 }
 0xe7a   :  { %v5231_v19 = vadd.f32 %v3295_v48, %v2020_v18 }
 0xe7c   :  { %v2032_v37 = vsel %vm1054_vm2, %v5231_v19, 0.0 }
 0xe7d   :  { %2033 = vadd.xlane.f32.xlu0 %v2032_v37 }
 0xe7f   :  { %v2017_v44 = vpop.f32.mrf.mxu2 }
 0xe80   :  { %v2021_v21 = vadd.f32 %v2017_v44, %v5138_v51  ;;  %v3296_v44 = vld [vmem:[%s5720_s4 + $0x1] ss:$0 sm:$0xff] }
 0xe82   :  { %v5236_v15 = vadd.f32 %v3295_v48, %v2021_v21 }
 0xe84   :  { %v2035_v20 = vsel %vm1058_vm3, %v5236_v15, 0.0 }
 0xe85   :  { %2036 = vadd.xlane.f32.xlu1 %v2035_v20 }
 0xef0   :  { %v2034_v23 = vpop.xlane.xlu0 %2033 }
 0xef1   :  { %v2038_v57 = vmul.f32 %v2034_v23, %v4818_v12 }
 0xef3   :  { %v5242_v46 = vsub.f32 %v5231_v19, %v2038_v57  ;;  %v3297_v57 = vld [vmem:[%s5721_s0 + $0x1] ss:$0 sm:$0xff] }
 0xef5   :  { %v2042_v58 = vmul.f32 %v5242_v46, %v5242_v46 }
 0xef7   :  { %v2044_v24 = vsel %vm1054_vm2, %v2042_v58, 0.0 }
 0xef8   :  { %2045 = vadd.xlane.f32.xlu2 %v2044_v24  ;;  %v2037_v25 = vpop.xlane.xlu1 %2036 }
 0xef9   :  { %v2039_v51 = vmul.f32 %v2037_v25, %v4818_v12 }
 0xefb   :  { %v5249_v62 = vsub.f32 %v5236_v15, %v2039_v51 }
 0xefd   :  { %v2043_v26 = vmul.f32 %v5249_v62, %v5249_v62 }
 0xeff   :  { %v2047_v27 = vsel %vm1058_vm3, %v2043_v26, 0.0 }
 0xf00   :  { %2048 = vadd.xlane.f32.xlu0 %v2047_v27 }
 0xf6b   :  { %v2046_v33 = vpop.xlane.xlu2 %2045 }
 0xf6c   :  { %v2050_v36 = vmul.f32 %v2046_v33, %v4818_v12 }
 0xf6e   :  { %v2052_v43 = vadd.f32 1e-06, %v2050_v36 }
 0xf70   :  { %3363 = vrsqrt.f32 %v2052_v43  ;;  %vm2060_vm9 = vweird.f32 %v2052_v43 }
 0xf73   :  { %v2049_v0 = vpop.xlane.xlu0 %2048 }
 0xf74   :  { %v2051_v61 = vmul.f32 %v2049_v0, %v4818_v12 }
 0xf76   :  { %v3364_v54 = vpop.eup %3363  ;;  %v2053_v6 = vadd.f32 1e-06, %v2051_v61  ;;  %v3302_v61 = vld [vmem:[%s5682_s12 + $0x5] ss:$0 sm:$0xff] }
 0xf77   :  { %v2055_v8 = vmul.f32 %v3364_v54, %v2052_v43  ;;  %vm2061_vm8 = vweird.f32 %v3364_v54  ;;  %v3196_v43 = vld [vmem:[%s5683_s13 + $0xa0] sm:$0xff] }
 0xf78   :  { %3365 = vrsqrt.f32 %v2053_v6  ;;  %vm2062_vm10 = vmor %vm2060_vm9, %vm2061_vm8  ;;  %vm2070_vm15 = vweird.f32 %v2053_v6  ;;  %v2299_v0 = vpack.c.bf16 %v3197_v45, %v3196_v43 }
 0xf79   :  { %v2056_v9 = vmul.f32 %v3364_v54, %v2055_v8 }
 0xf7b   :  { %v2057_v10 = vmul.f32 0.5, %v2056_v9  ;;  %v5376_v9 = vld [vmem:[%s5722_s26 + $0x8] sm:$0x3] }
 0xf7d   :  { %v2058_v11 = vsub.f32 1.5, %v2057_v10 }
 0xf7e   :  { %v3366_v13 = vpop.eup %3365 }
 0xf7f   :  { %v2059_v14 = vmul.f32 %v3364_v54, %v2058_v11  ;;  %v2065_v16 = vmul.f32 %v3366_v13, %v2053_v6  ;;  %vm2071_vm14 = vweird.f32 %v3366_v13 }
 0xf80   :  { %vm2072_vm4 = vmor %vm2070_vm15, %vm2071_vm14 }
 0xf81   :  { %v2066_v48 = vmul.f32 %v3366_v13, %v2065_v16  ;;  %v2063_v17 = vsel %vm2062_vm10, %v3364_v54, %v2059_v14  ;;  %v5369_v54 = vld [vmem:[%s5722_s26] sm:$0xff] }
 0xf82   :  { %v2074_v21 = vmul.f32 %v2063_v17, %v5242_v46  ;;  %v3303_v14 = vld [vmem:[%s5684_s14 + $0x5] ss:$0 sm:$0xff] }
 0xf83   :  { %v2067_v18 = vmul.f32 0.5, %v2066_v48 }
 0xf84   :  { %v2079_v58 = vmul.f32 %v3296_v44, %v2074_v21 }
 0xf85   :  { %v2068_v37 = vsub.f32 1.5, %v2067_v18 }
 0xf86   :  { %v2084_v51 = vadd.f32 %v3297_v57, %v2079_v58 }
 0xf87   :  { %v2069_v20 = vmul.f32 %v3366_v13, %v2068_v37 }
 0xf89   :  { %v2073_v23 = vsel %vm2072_vm4, %v3366_v13, %v2069_v20 }
 0xf8a   :  { %v2075_v24 = vmul.f32 %v2073_v23, %v5249_v62 }
 0xf8c   :  { %v2080_v25 = vmul.f32 %v3296_v44, %v2075_v24 }
 0xf8e   :  { %v2085_v26 = vadd.f32 %v3297_v57, %v2080_v25 }
 0xf90   :  { %v5324_v27 = vpack.c.bf16 %v2085_v26, %v2084_v51 }
 0xf92   :  { %3168 = vmatmul.msk.bf16.vlgmr.msra.gmra.mxu3 %vm1054_vm2, %v5324_v27  ;;  %3174 = vmatmul.msk.bf16.vlgmr.msrb.gmra.mxu0 %vm1054_vm2, %v5324_v27 }
 0xf93   :  { %3180 = vmatmul.msk.bf16.vlgmr.msrb.gmra.mxu1 %vm1054_vm2, %v5324_v27 }
 0xfa2   :  { %3189 = vmatmul.msk.bf16.vlgmr.msra.gmra.mxu0 %vm1054_vm2, %v5324_v27 }
 0xfa3   :  { %3195 = vmatmul.msk.bf16.vlgmr.msra.gmra.mxu1 %vm1054_vm2, %v5324_v27 }
0x100f   :  { %v2137_v46 = vpop.f32.mrf.mxu0 }
0x1010   :  { %v2163_v62 = vpop.f32.mrf.mxu1  ;;  %v2138_v32 = vadd.f32 %v3298_v55, %v2137_v46 }
0x1011   :  { %v2164_v35 = vadd.f32 %v3299_v28, %v2163_v62 }
0x1015   :  { %v2111_v29 = vpop.f32.mrf.mxu3 }
0x1016   :  { %v2112_v56 = vadd.f32 %v3300_v47, %v2111_v29  ;;  %v3210_v29 = vld [vmem:[%s5719_s9 + $0xd8] sm:$0xff] }
0x1017   :  { %v2139_v60 = vpop.f32.mrf.mxu0 }
0x1018   :  { %v2140_v33 = vadd.f32 %v3298_v55, %v2139_v60  ;;  %v2165_v34 = vpop.f32.mrf.mxu1 }
0x1019   :  { %v2166_v36 = vadd.f32 %v3299_v28, %v2165_v34  ;;  %v3209_v28 = vld [vmem:[%s5719_s9 + $0xd0] sm:$0xff] }
0x101a   :  { %v2169_v39 = vpack.c.bf16 %v2140_v33, %v2138_v32  ;;  %v2440_v33 = vpack.c.bf16 %v3210_v29, %v3209_v28  ;;  %v3219_v29 = vld [vmem:[%s5683_s13 + $0xc0] sm:$0xff] }
0x101b   :  { %v2217_v42 = vpack.c.bf16 %v2166_v36, %v2164_v35  ;;  %v3207_v35 = vld [vmem:[%s5719_s9 + $0xc0] sm:$0xff]  ;;  %v3208_v36 = vld [vmem:[%s5719_s9 + $0xc8] sm:$0xff] }
0x101c   :  { %v2174_v49 = vsel %vm1028_vm1, %v2169_v39, 0  ;;  %v2439_v39 = vpack.c.bf16 %v3208_v36, %v3207_v35 }
0x101d   :  { %v2113_v50 = vpop.f32.mrf.mxu3  ;;  %2183 = vmatpush.bf16.xpose.msrb.mxu2 %v2174_v49  ;;  %v2222_v52 = vsel %vm1248_vm11, %v2217_v42, 0  ;;  %v3301_v42 = vld [vmem:[%s5680_s10 + $0x5] ss:$0 sm:$0xff] }
0x101e   :  { %v2114_v53 = vadd.f32 %v3300_v47, %v2113_v50  ;;  %2231 = vmatpush.bf16.msrb.mxu3 %v2222_v52  ;;  %v3183_v49 = vld [vmem:[%s5685_s15 + $0x20] sm:$0xff] }
0x101f   :  { %v2263_v32 = vpop.f32.mrf.mxu0  ;;  %v2241_v50 = vpack.c.bf16 %v3183_v49, %v3183_v49 }
0x1020   :  { %v2289_v40 = vpop.f32.mrf.mxu1  ;;  %v2168_v59 = vpack.c.bf16 %v2114_v53, %v2112_v56  ;;  %v2264_v45 = vadd.f32 %v3301_v42, %v2263_v32  ;;  %v3231_v32 = vld [vmem:[%s5719_s9 + $0xf0] sm:$0xff] }
0x1021   :  { %v2290_v4 = vadd.f32 %v3302_v61, %v2289_v40  ;;  %v2418_v52 = vsel %vm1032_vm0, %v2241_v50, 0  ;;  %v3237_v50 = vld [vmem:[%s5681_s11 + $0xf0] sm:$0xff] }
0x1024   :  { %3181 = vmatmul.msk.bf16.vlgmr.msrb.gmra.mxu2 %vm1028_vm1, %v2168_v59 }
0x1025   :  { %2312 = vmatpush.bf16.msra.mxu2 %v2300_v41 }
0x1027   :  { %v2265_v41 = vpop.f32.mrf.mxu0 }
0x1028   :  { %v2291_v63 = vpop.f32.mrf.mxu1  ;;  %v2266_v43 = vadd.f32 %v3301_v42, %v2265_v41  ;;  %v3230_v41 = vld [vmem:[%s5719_s9 + $0xe8] sm:$0xff] }
0x1029   :  { %2313 = vmatpush.bf16.msra.mxu2 %v2299_v0  ;;  %v2292_v1 = vadd.f32 %v3302_v61, %v2291_v63 }
0x102a   :  { %v2320_v47 = vpack.c.bf16 %v2266_v43, %v2264_v45 }
0x102b   :  { %v2321_v2 = vpack.c.bf16 %v2292_v1, %v2290_v4 }
0x102d   :  { %v2326_v3 = vsel %vm1028_vm1, %v2321_v2, 0  ;;  %2427 = vmatpush.bf16.msrb.mxu2 %v2418_v52  ;;  %v3238_v52 = vld [vmem:[%s5681_s11 + $0xf8] sm:$0xff] }
0x102e   :  { %2335 = vmatpush.bf16.xpose.msra.mxu3 %v2326_v3 }
0x1034   :  { %3201 = vmatmul.msk.bf16.vlgmr.msra.gmra.mxu2 %vm1054_vm2, %v5324_v27 }
0x10a7   :  { %v2185_v22 = vpop.f32.mrf.mxu2 }
0x10a8   :  { %v2190_v5 = vmul.f32 0.35355338, %v2185_v22 }
0x10aa   :  { %v2192_v6 = vadd.f32 %v5369_v54, %v2190_v5 }
0x10ac   :  { %v2194_v7 = vsel %vm1219_vm12, %v2192_v6, -inf }
0x10ad   :  { %2195 = vmax.xlane.f32.xlu1 %v2194_v7 }
0x10af   :  { %v2187_v8 = vpop.f32.mrf.mxu2 }
0x10b0   :  { %v2191_v38 = vmul.f32 0.35355338, %v2187_v8 }
0x10b2   :  { %v2193_v10 = vadd.f32 %v5376_v9, %v2191_v38 }
0x10b4   :  { %v2197_v11 = vsel %vm1223_vm13, %v2193_v10, -inf }
0x10b5   :  { %2198 = vmax.xlane.f32.xlu2 %v2197_v11 }
0x10b7   :  { %v2315_v13 = vpop.f32.mrf.mxu2 }
0x10b8   :  { %v2316_v48 = vadd.f32 %v3303_v14, %v2315_v13 }
0x10bf   :  { %v2317_v16 = vpop.f32.mrf.mxu2 }
0x10c0   :  { %v2318_v17 = vadd.f32 %v3303_v14, %v2317_v16  ;;  %v3215_v16 = vld [vmem:[%s5681_s11 + $0xd0] sm:$0xff] }
0x10c2   :  { %v2369_v18 = vpack.c.bf16 %v2318_v17, %v2316_v48  ;;  %v3216_v48 = vld [vmem:[%s5681_s11 + $0xd8] sm:$0xff]  ;;  %v3213_v17 = vld [vmem:[%s5681_s11 + $0xc0] sm:$0xff] }
0x10c4   :  { %v2374_v37 = vsel %vm1248_vm11, %v2369_v18, 0  ;;  %v2466_v18 = vpack.c.bf16 %v3216_v48, %v3215_v16 }
0x10c5   :  { %2383 = vmatpush.bf16.msrb.mxu0 %v2374_v37  ;;  %v3214_v37 = vld [vmem:[%s5681_s11 + $0xc8] sm:$0xff] }
0x10c9   :  { %2478 = vmatpush.bf16.msra.mxu0 %v2466_v18 }
0x1120   :  { %v2196_v44 = vpop.xlane.xlu1 %2195 }
0x1121   :  { %v2200_v21 = vsub.f32 %v2192_v6, %v2196_v44  ;;  %v2465_v44 = vpack.c.bf16 %v3214_v37, %v3213_v17  ;;  %v3227_v17 = vld [vmem:[%s5685_s15 + $0x30] sm:$0xff] }
0x1122   :  { %v2585_v37 = vpack.c.bf16 %v3227_v17, %v3227_v17 }
0x1123   :  { %v2202_v20 = vmul.f32 1.442695, %v2200_v21  ;;  %2479 = vmatpush.bf16.msra.mxu0 %v2465_v44 }
0x1125   :  { %3367 = vpow2.f32 %v2202_v20 }
0x1128   :  { %v2199_v23 = vpop.xlane.xlu2 %2198 }
0x1129   :  { %v2201_v57 = vsub.f32 %v2193_v10, %v2199_v23 }
0x112b   :  { %v3368_v58 = vpop.eup %3367  ;;  %v2204_v24 = vmul.f32 1.442695, %v2201_v57 }
0x112c   :  { %v2206_v25 = vsel %vm1219_vm12, %v3368_v58, 0.0 }
0x112d   :  { %3369 = vpow2.f32 %v2204_v24  ;;  %2207 = vadd.xlane.f32.xlu0 %v2206_v25 }
0x1133   :  { %v3370_v51 = vpop.eup %3369 }
0x1134   :  { %v2209_v26 = vsel %vm1223_vm13, %v3370_v51, 0.0 }
0x1135   :  { %2210 = vadd.xlane.f32.xlu1 %v2209_v26 }
0x11a0   :  { %v2208_v46 = vpop.xlane.xlu0 %2207 }
0x11a1   :  { %3371 = vrcp.f32 %v2208_v46 }
0x11a7   :  { %v3372_v55 = vpop.eup %3371 }
0x11a8   :  { %v2211_v62 = vpop.xlane.xlu1 %2210  ;;  %v2214_v30 = vmul.f32 %v3372_v55, %v3368_v58  ;;  %v3222_v55 = vld [vmem:[%s5683_s13 + $0xd8] sm:$0xff] }
0x11a9   :  { %3373 = vrcp.f32 %v2211_v62  ;;  %v3221_v62 = vld [vmem:[%s5683_s13 + $0xd0] sm:$0xff] }
0x11aa   :  { %v2492_v28 = vpack.c.bf16 %v3222_v55, %v3221_v62  ;;  %v3308_v62 = vld [vmem:[%s5682_s12 + $0x7] ss:$0 sm:$0xff] }
0x11af   :  { %v3374_v60 = vpop.eup %3373 }
0x11b0   :  { %v2215_v31 = vmul.f32 %v3374_v60, %v3370_v51  ;;  %v3204_v51 = vld [vmem:[%s5685_s15 + $0x28] sm:$0xff] }
0x11b1   :  { %v2393_v26 = vpack.c.bf16 %v3204_v51, %v3204_v51  ;;  %v3220_v60 = vld [vmem:[%s5683_s13 + $0xc8] sm:$0xff] }
0x11b2   :  { %v2216_v34 = vpack.c.bf16 %v2215_v31, %v2214_v30  ;;  %v2491_v30 = vpack.c.bf16 %v3220_v60, %v3219_v29 }
0x11b3   :  { %v2398_v46 = vsel %vm1032_vm0, %v2393_v26, 0 }
0x11b4   :  { %3182 = vmatmul.msk.bf16.vlgmr.msrb.gmra.mxu3 %vm1219_vm12, %v2216_v34  ;;  %2407 = vmatpush.bf16.msrb.mxu1 %v2398_v46 }
0x11b5   :  { %2452 = vmatpush.bf16.msrb.mxu3 %v2440_v33  ;;  %v3232_v33 = vld [vmem:[%s5719_s9 + $0xf8] sm:$0xff] }
0x11b6   :  { %v2614_v35 = vpack.c.bf16 %v3232_v33, %v3231_v32 }
0x11b8   :  { %2504 = vmatpush.bf16.msra.mxu1 %v2492_v28 }
0x11b9   :  { %2453 = vmatpush.bf16.msrb.mxu3 %v2439_v39  ;;  %v3229_v39 = vld [vmem:[%s5719_s9 + $0xe0] sm:$0xff]  ;;  %s3073_s9 = sshll.u32 %s3438_s5, 4  ;;  %s3074_s9 = int_to_ptr.vmem [resolvable:$true] %s3073_s9 }
0x11ba   :  { %v2613_v42 = vpack.c.bf16 %v3230_v41, %v3229_v39 }
0x11bc   :  { %2505 = vmatpush.bf16.msra.mxu1 %v2491_v30 }
0x11c4   :  { %3202 = vmatmul.msk.bf16.vlgmr.msra.gmra.mxu3 %vm1028_vm1, %v2320_v47  ;;  %v3305_v47 = vld [vmem:[%s5682_s12 + $0x6] ss:$0 sm:$0xff] }
0x11d4   :  { %3212 = vmatmul.msk.bf16.vlgmr.msrb.gmra.mxu3 %vm1054_vm2, %v5324_v27 }
0x1237   :  { %v2233_v53 = vpop.f32.mrf.mxu3 }
0x123f   :  { %v2235_v0 = vpop.f32.mrf.mxu3 }
0x1240   :  { %v2240_v56 = vpack.c.bf16 %v2235_v0, %v2233_v53 }
0x1242   :  { %3206 = vmatmul.msk.bf16.vlgmr.msrb.gmra.mxu2 %vm1028_vm1, %v2240_v56 }
0x1247   :  { %v2337_v40 = vpop.f32.mrf.mxu3 }
0x1248   :  { %v2342_v59 = vmul.f32 0.35355338, %v2337_v40  ;;  %v2640_v40 = vpack.c.bf16 %v3238_v52, %v3237_v50  ;;  %v3242_v52 = vld [vmem:[%s5683_s13 + $0xe8] sm:$0xff] }
0x124a   :  { %v2344_v61 = vadd.f32 %v5369_v54, %v2342_v59 }
0x124c   :  { %v2346_v63 = vsel %vm1219_vm12, %v2344_v61, -inf }
0x124d   :  { %2347 = vmax.xlane.f32.xlu2 %v2346_v63  ;;  %v3236_v63 = vld [vmem:[%s5681_s11 + $0xe8] sm:$0xff] }
0x124f   :  { %v2339_v4 = vpop.f32.mrf.mxu3 }
0x1250   :  { %v2343_v1 = vmul.f32 0.35355338, %v2339_v4  ;;  %v3304_v4 = vld [vmem:[%s5680_s10 + $0x6] ss:$0 sm:$0xff] }
0x1252   :  { %v2345_v2 = vadd.f32 %v5376_v9, %v2343_v1 }
0x1254   :  { %v2349_v3 = vsel %vm1223_vm13, %v2345_v2, -inf }
0x1255   :  { %2350 = vmax.xlane.f32.xlu0 %v2349_v3 }
0x1257   :  { %v2455_v45 = vpop.f32.mrf.mxu3 }
0x125f   :  { %v2457_v59 = vpop.f32.mrf.mxu3 }
0x12c0   :  { %v2348_v22 = vpop.xlane.xlu2 %2347 }
0x12c1   :  { %v2352_v5 = vsub.f32 %v2344_v61, %v2348_v22  ;;  %v3235_v61 = vld [vmem:[%s5681_s11 + $0xe0] sm:$0xff]  ;;  %v2456_v22 = vadd.f32 %v3304_v4, %v2455_v45  ;;  %v3243_v45 = vld [vmem:[%s5683_s13 + $0xf0] sm:$0xff] }
0x12c2   :  { %v2639_v3 = vpack.c.bf16 %v3236_v63, %v3235_v61 }
0x12c3   :  { %v2354_v6 = vmul.f32 1.442695, %v2352_v5 }
0x12c5   :  { %3375 = vpow2.f32 %v2354_v6  ;;  %v5486_v6 = vpop.f32.mrf.mxu2 }
0x12c8   :  { %v2351_v7 = vpop.xlane.xlu0 %2350 }
0x12c9   :  { %v2353_v8 = vsub.f32 %v2345_v2, %v2351_v7  ;;  %v2458_v2 = vadd.f32 %v3304_v4, %v2457_v59 }
0x12cb   :  { %v3376_v38 = vpop.eup %3375  ;;  %v2356_v10 = vmul.f32 1.442695, %v2353_v8  ;;  %v2512_v5 = vpack.c.bf16 %v2458_v2, %v2456_v22 }
0x12cc   :  { %v2358_v11 = vsel %vm1219_vm12, %v3376_v38, 0.0 }
0x12cd   :  { %3377 = vpow2.f32 %v2356_v10  ;;  %2359 = vadd.xlane.f32.xlu1 %v2358_v11  ;;  %v2431_v8 = vpop.f32.mrf.mxu2 }
0x12d3   :  { %v3378_v13 = vpop.eup %3377 }
0x12d4   :  { %v2361_v14 = vsel %vm1223_vm13, %v3378_v13, 0.0 }
0x12d5   :  { %2362 = vadd.xlane.f32.xlu2 %v2361_v14 }
0x1340   :  { %v2360_v21 = vpop.xlane.xlu1 %2359 }
0x1341   :  { %3379 = vrcp.f32 %v2360_v21  ;;  %v2590_v21 = vsel %vm1032_vm0, %v2585_v37, 0 }
0x1347   :  { %v3380_v23 = vpop.eup %3379 }
0x1348   :  { %v2363_v20 = vpop.xlane.xlu2 %2362  ;;  %v2366_v58 = vmul.f32 %v3380_v23, %v3376_v38 }
0x1349   :  { %3381 = vrcp.f32 %v2363_v20 }
0x134f   :  { %v3382_v57 = vpop.eup %3381 }
0x1350   :  { %v2367_v24 = vmul.f32 %v3382_v57, %v3378_v13  ;;  %v3306_v13 = vld [vmem:[%s5684_s14 + $0x6] ss:$0 sm:$0xff] }
0x1352   :  { %v2368_v25 = vpack.c.bf16 %v2367_v24, %v2366_v58 }
0x1354   :  { %3203 = vmatmul.msk.bf16.vlgmr.msrb.gmra.mxu0 %vm1219_vm12, %v2368_v25 }
0x1355   :  { %2599 = vmatpush.bf16.msrb.mxu0 %v2590_v21 }
0x1364   :  { %3218 = vmatmul.msk.bf16.vlgmr.msra.gmra.mxu0 %vm1054_vm2, %v5324_v27 }
0x13d1   :  { %v2385_v31 = vpop.f32.mrf.mxu0 }
0x13d9   :  { %v2387_v34 = vpop.f32.mrf.mxu0 }
0x13da   :  { %v2392_v36 = vpack.c.bf16 %v2387_v34, %v2385_v31 }
0x13dc   :  { %3205 = vmatmul.msk.bf16.vlgmr.msrb.gmra.mxu1 %vm1028_vm1, %v2392_v36 }
0x13dd   :  { %2626 = vmatpush.bf16.msrb.mxu1 %v2614_v35 }
0x13e1   :  { %v2481_v43 = vpop.f32.mrf.mxu0  ;;  %2627 = vmatpush.bf16.msrb.mxu1 %v2613_v42 }
0x13e2   :  { %v2482_v53 = vadd.f32 %v3305_v47, %v2481_v43 }
0x13e9   :  { %v2483_v49 = vpop.f32.mrf.mxu0 }
0x13ea   :  { %v2484_v0 = vadd.f32 %v3305_v47, %v2483_v49  ;;  %v3244_v47 = vld [vmem:[%s5683_s13 + $0xf8] sm:$0xff]  ;;  %v3241_v49 = vld [vmem:[%s5683_s13 + $0xe0] sm:$0xff] }
0x13eb   :  { %v2666_v50 = vpack.c.bf16 %v3244_v47, %v3243_v45 }
0x13ec   :  { %v2513_v56 = vpack.c.bf16 %v2484_v0, %v2482_v53  ;;  %3224 = vmatmul.msk.bf16.vlgmr.msra.gmra.mxu1 %vm1054_vm2, %v5324_v27  ;;  %v2665_v53 = vpack.c.bf16 %v3242_v52, %v3241_v49 }
0x13ee   :  { %v2518_v1 = vsel %vm1028_vm1, %v2513_v56, 0 }
0x13ef   :  { %2527 = vmatpush.bf16.xpose.msra.mxu2 %v2518_v1 }
0x13f6   :  { %3225 = vmatmul.msk.bf16.vlgmr.msra.gmra.mxu2 %vm1028_vm1, %v2512_v5 }
0x13f7   :  { %2652 = vmatpush.bf16.msrb.mxu2 %v2640_v40 }
0x13fb   :  { %2653 = vmatpush.bf16.msrb.mxu2 %v2639_v3 }
0x13fc   :  { %3234 = vmatmul.msk.bf16.vlgmr.msrb.gmra.mxu1 %vm1054_vm2, %v5324_v27 }
0x1406   :  { %3240 = vmatmul.msk.bf16.vlgmr.msrb.gmra.mxu2 %vm1054_vm2, %v5324_v27 }
0x1459   :  { %v5488_v7 = vpop.f32.mrf.mxu1 }
0x1461   :  { %v2411_v38 = vpop.f32.mrf.mxu1 }
0x1462   :  { %v5490_v10 = vadd.f32 %v2431_v8, %v2411_v38  ;;  %v3307_v38 = vld [vmem:[%s5680_s10 + $0x7] ss:$0 sm:$0xff] }
0x1469   :  { %v2507_v11 = vpop.f32.mrf.mxu1 }
0x146a   :  { %v2508_v16 = vadd.f32 %v3306_v13, %v2507_v11 }
0x1471   :  { %v2509_v14 = vpop.f32.mrf.mxu1 }
0x1472   :  { %v2510_v48 = vadd.f32 %v3306_v13, %v2509_v14  ;;  %v3309_v13 = vld [vmem:[%s5684_s14 + $0x7] ss:$0 sm:$0xff] }
0x1474   :  { %v2561_v18 = vpack.c.bf16 %v2510_v48, %v2508_v16 }
0x1476   :  { %v2566_v44 = vsel %vm1248_vm11, %v2561_v18, 0 }
0x1477   :  { %2575 = vmatpush.bf16.msra.mxu3 %v2566_v44  ;;  %v2430_v44 = vadd.f32 %v5486_v6, %v5488_v7 }
0x1479   :  { %v2529_v20 = vpop.f32.mrf.mxu2  ;;  %v2629_v2 = vpop.f32.mrf.mxu1 }
0x147a   :  { %v2534_v23 = vmul.f32 0.35355338, %v2529_v20  ;;  %v2630_v14 = vadd.f32 %v3307_v38, %v2629_v2 }
0x147b   :  { %2678 = vmatpush.bf16.msrb.mxu3 %v2666_v50 }
0x147c   :  { %v2536_v57 = vadd.f32 %v5369_v54, %v2534_v23 }
0x147e   :  { %v2538_v58 = vsel %vm1219_vm12, %v2536_v57, -inf }
0x147f   :  { %2539 = vmax.xlane.f32.xlu0 %v2538_v58  ;;  %2679 = vmatpush.bf16.msrb.mxu3 %v2665_v53 }
0x1481   :  { %v2531_v24 = vpop.f32.mrf.mxu2  ;;  %v2631_v8 = vpop.f32.mrf.mxu1 }
0x1482   :  { %v2535_v25 = vmul.f32 0.35355338, %v2531_v24  ;;  %v2632_v11 = vadd.f32 %v3307_v38, %v2631_v8 }
0x1484   :  { %v2537_v51 = vadd.f32 %v5376_v9, %v2535_v25 }
0x1486   :  { %v2541_v26 = vsel %vm1223_vm13, %v2537_v51, -inf }
0x1487   :  { %2542 = vmax.xlane.f32.xlu1 %v2541_v26 }
0x1489   :  { %v2655_v46 = vpop.f32.mrf.mxu2 }
0x148a   :  { %v2656_v28 = vadd.f32 %v3308_v62, %v2655_v46 }
0x1491   :  { %v2657_v55 = vpop.f32.mrf.mxu2 }
0x1492   :  { %v2658_v29 = vadd.f32 %v3308_v62, %v2657_v55 }
0x1494   :  { %v2687_v60 = vpack.c.bf16 %v2658_v29, %v2656_v28 }
0x1496   :  { %v2692_v30 = vsel %vm1028_vm1, %v2687_v60, 0 }
0x1497   :  { %2701 = vmatpush.bf16.xpose.msra.mxu0 %v2692_v30 }
0x14f2   :  { %v2540_v31 = vpop.xlane.xlu0 %2539 }
0x14f3   :  { %v2544_v32 = vsub.f32 %v2536_v57, %v2540_v31 }
0x14f5   :  { %v2546_v33 = vmul.f32 1.442695, %v2544_v32 }
0x14f7   :  { %3383 = vpow2.f32 %v2546_v33 }
0x14fa   :  { %v2543_v34 = vpop.xlane.xlu1 %2542 }
0x14fb   :  { %v2545_v35 = vsub.f32 %v2537_v51, %v2543_v34 }
0x14fd   :  { %v3384_v36 = vpop.eup %3383  ;;  %v2548_v39 = vmul.f32 1.442695, %v2545_v35 }
0x14fe   :  { %v2550_v41 = vsel %vm1219_vm12, %v3384_v36, 0.0 }
0x14ff   :  { %3385 = vpow2.f32 %v2548_v39  ;;  %2551 = vadd.xlane.f32.xlu2 %v2550_v41 }
0x1505   :  { %v3386_v42 = vpop.eup %3385 }
0x1506   :  { %v2553_v43 = vsel %vm1223_vm13, %v3386_v42, 0.0 }
0x1507   :  { %2554 = vadd.xlane.f32.xlu0 %v2553_v43 }
0x1572   :  { %v2552_v0 = vpop.xlane.xlu2 %2551 }
0x1573   :  { %3387 = vrcp.f32 %v2552_v0  ;;  %v3310_v0 = vld [vmem:[%s5686_s16 + $0x1] ss:$0 sm:$0xff] }
0x1579   :  { %v3388_v40 = vpop.eup %3387 }
0x157a   :  { %v2555_v56 = vpop.xlane.xlu0 %2554  ;;  %v2558_v61 = vmul.f32 %v3388_v40, %v3384_v36 }
0x157b   :  { %3389 = vrcp.f32 %v2555_v56 }
0x1581   :  { %v3390_v59 = vpop.eup %3389 }
0x1582   :  { %v2559_v63 = vmul.f32 %v3390_v59, %v3386_v42  ;;  %v3249_v42 = vld [vmem:[%s5685_s15 + $0x38] sm:$0xff] }
0x1583   :  { %v2759_v43 = vpack.c.bf16 %v3249_v42, %v3249_v42 }
0x1584   :  { %v2560_v4 = vpack.c.bf16 %v2559_v63, %v2558_v61 }
0x1585   :  { %v2764_v45 = vsel %vm1032_vm0, %v2759_v43, 0 }
0x1586   :  { %3226 = vmatmul.msk.bf16.vlgmr.msra.gmra.mxu3 %vm1219_vm12, %v2560_v4  ;;  %2773 = vmatpush.bf16.msra.mxu2 %v2764_v45 }
0x1596   :  { %3246 = vmatmul.msk.bf16.vlgmr.msrb.gmra.mxu3 %vm1054_vm2, %v5324_v27  ;;  %v2686_v27 = vpack.c.bf16 %v2632_v11, %v2630_v14 }
0x1609   :  { %v2577_v1 = vpop.f32.mrf.mxu3 }
0x1611   :  { %v2579_v3 = vpop.f32.mrf.mxu3 }
0x1612   :  { %v2584_v22 = vpack.c.bf16 %v2579_v3, %v2577_v1 }
0x1614   :  { %3228 = vmatmul.msk.bf16.vlgmr.msrb.gmra.mxu0 %vm1028_vm1, %v2584_v22 }
0x1619   :  { %v2681_v5 = vpop.f32.mrf.mxu3 }
0x161a   :  { %v2682_v48 = vadd.f32 %v3309_v13, %v2681_v5 }
0x1621   :  { %v2683_v16 = vpop.f32.mrf.mxu3 }
0x1622   :  { %v2684_v17 = vadd.f32 %v3309_v13, %v2683_v16  ;;  %v3256_v16 = vld [vmem:[%s5689_s19 + $0x30] sm:$0xff] }
0x1624   :  { %v2735_v18 = vpack.c.bf16 %v2684_v17, %v2682_v48  ;;  %3247 = vmatmul.msk.bf16.vlgmr.msra.gmra.mxu0 %vm1028_vm1, %v2686_v27  ;;  %v3257_v27 = vld [vmem:[%s5689_s19 + $0x38] sm:$0xff] }
0x1625   :  { %v2856_v48 = vpack.c.bf16 %v3257_v27, %v3256_v16 }
0x1626   :  { %v2740_v37 = vsel %vm1248_vm11, %v2735_v18, 0 }
0x1627   :  { %2749 = vmatpush.bf16.msra.mxu1 %v2740_v37  ;;  %2871 = vmatpush.bf16.msra.mxu3 %v2856_v48  ;;  %v3254_v37 = vld [vmem:[%s5689_s19 + $0x20] sm:$0xff] }
0x1628   :  { %v3266_v48 = vld [vmem:[%s5691_s21 + $0x60] sm:$0xff] }
0x1691   :  { %v2601_v21 = vpop.f32.mrf.mxu0 }
0x1692   :  { %v2606_v20 = vadd.f32 %v2601_v21, %v2430_v44  ;;  %v3255_v44 = vld [vmem:[%s5689_s19 + $0x28] sm:$0xff] }
0x1699   :  { %v2603_v23 = vpop.f32.mrf.mxu0 }
0x169a   :  { %v2607_v57 = vadd.f32 %v2603_v23, %v5490_v10 }
0x16a1   :  { %v2703_v58 = vpop.f32.mrf.mxu0 }
0x16a2   :  { %v2708_v24 = vmul.f32 0.35355338, %v2703_v58 }
0x16a4   :  { %v2710_v25 = vadd.f32 %v5369_v54, %v2708_v24 }
0x16a6   :  { %v2712_v51 = vsel %vm1219_vm12, %v2710_v25, -inf }
0x16a7   :  { %2713 = vmax.xlane.f32.xlu1 %v2712_v51 }
0x16a9   :  { %v2705_v26 = vpop.f32.mrf.mxu0 }
0x16aa   :  { %v2709_v46 = vmul.f32 0.35355338, %v2705_v26 }
0x16ac   :  { %v2711_v62 = vadd.f32 %v5376_v9, %v2709_v46 }
0x16ae   :  { %v2715_v55 = vsel %vm1223_vm13, %v2711_v62, -inf }
0x16af   :  { %2716 = vmax.xlane.f32.xlu2 %v2715_v55 }
0x171a   :  { %v2714_v6 = vpop.xlane.xlu1 %2713 }
0x171b   :  { %v2718_v7 = vsub.f32 %v2710_v25, %v2714_v6 }
0x171d   :  { %v2720_v28 = vmul.f32 1.442695, %v2718_v7 }
0x171f   :  { %3391 = vpow2.f32 %v2720_v28 }
0x1722   :  { %v2717_v29 = vpop.xlane.xlu2 %2716 }
0x1723   :  { %v2719_v10 = vsub.f32 %v2711_v62, %v2717_v29 }
0x1725   :  { %v3392_v60 = vpop.eup %3391  ;;  %v2722_v30 = vmul.f32 1.442695, %v2719_v10 }
0x1726   :  { %v2724_v54 = vsel %vm1219_vm12, %v3392_v60, 0.0 }
0x1727   :  { %3393 = vpow2.f32 %v2722_v30  ;;  %2725 = vadd.xlane.f32.xlu0 %v2724_v54 }
0x172d   :  { %v3394_v31 = vpop.eup %3393 }
0x172e   :  { %v2727_v32 = vsel %vm1223_vm13, %v3394_v31, 0.0 }
0x172f   :  { %2728 = vadd.xlane.f32.xlu1 %v2727_v32  ;;  %v3312_v32 = vld [vmem:[%s5688_s18 + $0x1] ss:$0 sm:$0xff]  ;;  %s3075_s18 = sshll.u32 %s5695_s25, 4  ;;  %s3076_s18 = int_to_ptr.hbm [resolvable:$true] %s3075_s18 }
0x179a   :  { %v2726_v9 = vpop.xlane.xlu0 %2725 }
0x179b   :  { %3395 = vrcp.f32 %v2726_v9 }
0x17a1   :  { %v3396_v34 = vpop.eup %3395 }
0x17a2   :  { %v2729_v33 = vpop.xlane.xlu1 %2728  ;;  %v2732_v36 = vmul.f32 %v3396_v34, %v3392_v60  ;;  %v3311_v60 = vld [vmem:[%s5687_s17 + $0x1] ss:$0 sm:$0xff] }
0x17a3   :  { %3397 = vrcp.f32 %v2729_v33 }
0x17a9   :  { %v3398_v35 = vpop.eup %3397 }
0x17aa   :  { %v2733_v39 = vmul.f32 %v3398_v35, %v3394_v31 }
0x17ac   :  { %v2734_v41 = vpack.c.bf16 %v2733_v39, %v2732_v36 }
0x17ae   :  { %3248 = vmatmul.msk.bf16.vlgmr.msra.gmra.mxu1 %vm1219_vm12, %v2734_v41  ;;  %v3313_v41 = vld [vmem:[%s5690_s20 + $0x1] ss:$0 sm:$0xff] }
0x182b   :  { %v2751_v47 = vpop.f32.mrf.mxu1 }
0x1833   :  { %v2753_v49 = vpop.f32.mrf.mxu1 }
0x1834   :  { %v2758_v50 = vpack.c.bf16 %v2753_v49, %v2751_v47 }
0x1836   :  { %3250 = vmatmul.msk.bf16.vlgmr.msra.gmra.mxu2 %vm1028_vm1, %v2758_v50 }
0x18b9   :  { %v2775_v52 = vpop.f32.mrf.mxu2 }
0x18ba   :  { %v2780_v53 = vadd.f32 %v2775_v52, %v2606_v20  ;;  %v2855_v20 = vpack.c.bf16 %v3255_v44, %v3254_v37 }
0x18bc   :  { %v2782_v56 = vadd.f32 %v2780_v53, %v5231_v19  ;;  %2872 = vmatpush.bf16.msra.mxu3 %v2855_v20 }
0x18be   :  { %v5553_v40 = vadd.f32 %v3310_v0, %v2782_v56 }
0x18c0   :  { %v2795_v59 = vsel %vm1054_vm2, %v5553_v40, 0.0 }
0x18c1   :  { %v2777_v61 = vpop.f32.mrf.mxu2  ;;  %2796 = vadd.xlane.f32.xlu2 %v2795_v59 }
0x18c2   :  { %v2781_v63 = vadd.f32 %v2777_v61, %v2607_v57 }
0x18c4   :  { %v2783_v4 = vadd.f32 %v2781_v63, %v5236_v15 }
0x18c6   :  { %v5558_v1 = vadd.f32 %v3310_v0, %v2783_v4 }
0x18c8   :  { %v2798_v2 = vsel %vm1058_vm3, %v5558_v1, 0.0 }
0x18c9   :  { %2799 = vadd.xlane.f32.xlu0 %v2798_v2 }
0x1934   :  { %v2797_v3 = vpop.xlane.xlu2 %2796 }
0x1935   :  { %v2801_v22 = vmul.f32 %v2797_v3, %v4818_v12 }
0x1937   :  { %v2803_v19 = vsub.f32 %v5553_v40, %v2801_v22 }
0x1939   :  { %v2805_v5 = vmul.f32 %v2803_v19, %v2803_v19 }
0x193b   :  { %v2807_v8 = vsel %vm1054_vm2, %v2805_v5, 0.0  ;;  %v3269_v5 = vld [vmem:[%s5691_s21 + $0x78] sm:$0xff] }
0x193c   :  { %v2800_v38 = vpop.xlane.xlu0 %2799  ;;  %2808 = vadd.xlane.f32.xlu1 %v2807_v8 }
0x193d   :  { %v2802_v11 = vmul.f32 %v2800_v38, %v4818_v12 }
0x193f   :  { %v2804_v15 = vsub.f32 %v5558_v1, %v2802_v11 }
0x1941   :  { %v2806_v13 = vmul.f32 %v2804_v15, %v2804_v15 }
0x1943   :  { %v2810_v14 = vsel %vm1058_vm3, %v2806_v13, 0.0 }
0x1944   :  { %2811 = vadd.xlane.f32.xlu2 %v2810_v14 }
0x19af   :  { %v2809_v17 = vpop.xlane.xlu1 %2808 }
0x19b0   :  { %v2813_v18 = vmul.f32 %v2809_v17, %v4818_v12  ;;  %v3267_v17 = vld [vmem:[%s5691_s21 + $0x68] sm:$0xff] }
0x19b1   :  { %v2979_v37 = vpack.c.bf16 %v3267_v17, %v3266_v48 }
0x19b2   :  { %v2815_v21 = vadd.f32 1e-06, %v2813_v18 }
0x19b4   :  { %3399 = vrsqrt.f32 %v2815_v21  ;;  %vm2823_vm1 = vweird.f32 %v2815_v21 }
0x19b7   :  { %v2812_v23 = vpop.xlane.xlu2 %2811 }
0x19b8   :  { %v2814_v57 = vmul.f32 %v2812_v23, %v4818_v12 }
0x19ba   :  { %v3400_v58 = vpop.eup %3399  ;;  %v2816_v24 = vadd.f32 1e-06, %v2814_v57 }
0x19bb   :  { %v2818_v25 = vmul.f32 %v3400_v58, %v2815_v21  ;;  %vm2824_vm0 = vweird.f32 %v3400_v58 }
0x19bc   :  { %3401 = vrsqrt.f32 %v2816_v24  ;;  %vm2825_vm11 = vmor %vm2823_vm1, %vm2824_vm0  ;;  %vm2833_vm5 = vweird.f32 %v2816_v24  ;;  %vm3011_vm1 = vcmask 1041408  }
0x19bd   :  { %v2819_v51 = vmul.f32 %v3400_v58, %v2818_v25  ;;  %v3265_v25 = vld [vmem:[%s5691_s21 + $0x58] sm:$0xff] }
0x19bf   :  { %v2820_v26 = vmul.f32 0.5, %v2819_v51 }
0x19c1   :  { %v2821_v46 = vsub.f32 1.5, %v2820_v26 }
0x19c2   :  { %v3402_v62 = vpop.eup %3401 }
0x19c3   :  { %v2822_v55 = vmul.f32 %v3400_v58, %v2821_v46  ;;  %v2828_v6 = vmul.f32 %v3402_v62, %v2816_v24  ;;  %vm2834_vm13 = vweird.f32 %v3402_v62  ;;  %v3264_v24 = vld [vmem:[%s5691_s21 + $0x50] sm:$0xff] }
0x19c4   :  { %vm2835_vm6 = vmor %vm2833_vm5, %vm2834_vm13  ;;  %v2978_v26 = vpack.c.bf16 %v3265_v25, %v3264_v24 }
0x19c5   :  { %v2829_v7 = vmul.f32 %v3402_v62, %v2828_v6  ;;  %v2826_v28 = vsel %vm2825_vm11, %v3400_v58, %v2822_v55 }
0x19c6   :  { %v2837_v30 = vmul.f32 %v2826_v28, %v2803_v19  ;;  %v3268_v19 = vld [vmem:[%s5691_s21 + $0x70] sm:$0xff]  ;;  %v3262_v28 = vld [vmem:[%s5691_s21 + $0x40] sm:$0xff] }
0x19c7   :  { %v2830_v29 = vmul.f32 0.5, %v2829_v7  ;;  %v2980_v38 = vpack.c.bf16 %v3269_v5, %v3268_v19 }
0x19c8   :  { %v2842_v9 = vmul.f32 %v3311_v60, %v2837_v30 }
0x19c9   :  { %v2831_v10 = vsub.f32 1.5, %v2830_v29  ;;  %2988 = vmatpush.bf16.msrb.mxu0 %v2980_v38  ;;  %v3263_v29 = vld [vmem:[%s5691_s21 + $0x48] sm:$0xff] }
0x19ca   :  { %v2847_v35 = vadd.f32 %v3312_v32, %v2842_v9 }
0x19cb   :  { %v2832_v54 = vmul.f32 %v3402_v62, %v2831_v10 }
0x19cd   :  { %v2836_v31 = vsel %vm2835_vm6, %v3402_v62, %v2832_v54  ;;  %2989 = vmatpush.bf16.msrb.mxu0 %v2979_v37 }
0x19ce   :  { %v2838_v33 = vmul.f32 %v2836_v31, %v2804_v15 }
0x19d0   :  { %v2843_v34 = vmul.f32 %v3311_v60, %v2838_v33  ;;  %v2977_v60 = vpack.c.bf16 %v3263_v29, %v3262_v28 }
0x19d1   :  { %2990 = vmatpush.bf16.msrb.mxu0 %v2978_v26 }
0x19d2   :  { %v2848_v36 = vadd.f32 %v3312_v32, %v2843_v34 }
0x19d4   :  { %v2854_v39 = vpack.c.bf16 %v2848_v36, %v2847_v35 }
0x19d5   :  { %2991 = vmatpush.bf16.msrb.mxu0 %v2977_v60 }
0x19d6   :  { %3259 = vmatmul.msk.bf16.vlgmr.msra.gmra.mxu3 %vm1054_vm2, %v2854_v39 }
0x1a59   :  { %v2874_v42 = vpop.f32.mrf.mxu3 }
0x1a5a   :  { %v5592_v43 = vadd.f32 %v3313_v41, %v2874_v42 }
0x1a5c   :  { %v5595_v45 = vmul.f32 0.70710677, %v5592_v43 }
0x1a5e   :  { %v2883_v47 = vmul.f32 %v5595_v45, %v5595_v45 }
0x1a60   :  { %v2884_v49 = vmin.f32 %v2883_v47, 16.0 }
0x1a61   :  { %v2876_v50 = vpop.f32.mrf.mxu3 }
0x1a62   :  { %v2885_v52 = vmul.f32 2.1237322e-06, %v2884_v49  ;;  %v2896_v53 = vmul.f32 3.8918573e-05, %v2884_v49  ;;  %v5599_v0 = vadd.f32 %v3313_v41, %v2876_v50 }
0x1a64   :  { %v2886_v56 = vadd.f32 0.00028619796, %v2885_v52  ;;  %v2897_v59 = vadd.f32 0.001143296, %v2896_v53  ;;  %v5602_v61 = vmul.f32 0.70710677, %v5599_v0 }
0x1a66   :  { %v2898_v63 = vmul.f32 %v2897_v59, %v2884_v49  ;;  %v2923_v4 = vmul.f32 %v5602_v61, %v5602_v61  ;;  %v2887_v2 = vmul.f32 %v2886_v56, %v2884_v49 }
0x1a68   :  { %v2899_v3 = vadd.f32 0.014752088, %v2898_v63  ;;  %v5606_v22 = vmin.f32 %v2923_v4, 16.0  ;;  %v2888_v13 = vadd.f32 0.0036580483, %v2887_v2 }
0x1a6a   :  { %v2900_v8 = vmul.f32 %v2899_v3, %v2884_v49  ;;  %v2925_v11 = vmul.f32 2.1237322e-06, %v5606_v22  ;;  %v2936_v15 = vmul.f32 3.8918573e-05, %v5606_v22  ;;  %v2889_v20 = vmul.f32 %v2888_v13, %v2884_v49 }
0x1a6c   :  { %v2901_v14 = vadd.f32 0.112945676, %v2900_v8  ;;  %v2926_v16 = vadd.f32 0.00028619796, %v2925_v11  ;;  %v2937_v27 = vadd.f32 0.001143296, %v2936_v15 }
0x1a6d   :  { %v2890_v62 = vadd.f32 0.05243302, %v2889_v20 }
0x1a6e   :  { %v2902_v18 = vmul.f32 %v2901_v14, %v2884_v49  ;;  %v2927_v44 = vmul.f32 %v2926_v16, %v5606_v22  ;;  %v2938_v21 = vmul.f32 %v2937_v27, %v5606_v22 }
0x1a6f   :  { %v2891_v30 = vmul.f32 %v2890_v62, %v2884_v49 }
0x1a70   :  { %v2903_v23 = vadd.f32 0.4994258, %v2902_v18  ;;  %v2928_v57 = vadd.f32 0.0036580483, %v2927_v44  ;;  %v2939_v58 = vadd.f32 0.014752088, %v2938_v21 }
0x1a71   :  { %v2892_v33 = vadd.f32 0.18741608, %v2891_v30  ;;  %v2879_v44 = vmul.f32 0.5, %v5592_v43  ;;  %v2880_v21 = vmul.f32 0.5, %v5599_v0  ;;  %v3007_v0 = vld [vmem:[%s5723_s28] sm:$0x3] }
0x1a72   :  { %v2904_v51 = vmul.f32 %v2903_v23, %v2884_v49  ;;  %v2940_v46 = vmul.f32 %v2939_v58, %v5606_v22  ;;  %v2929_v6 = vmul.f32 %v2928_v57, %v5606_v22 }
0x1a73   :  { %v2893_v41 = vmul.f32 %v2892_v33, %v2884_v49 }
0x1a74   :  { %v2905_v55 = vadd.f32 1.0, %v2904_v51  ;;  %v2941_v7 = vadd.f32 0.112945676, %v2940_v46  ;;  %v2930_v54 = vadd.f32 0.05243302, %v2929_v6 }
0x1a75   :  { %v2894_v56 = vadd.f32 1.1283791, %v2893_v41  ;;  %v3314_v51 = vld [vmem:[%s5692_s22 + $0x1] ss:$0 sm:$0xff] }
0x1a76   :  { %3403 = vrcp.f32 %v2905_v55  ;;  %v2942_v10 = vmul.f32 %v2941_v7, %v5606_v22  ;;  %v2931_v35 = vmul.f32 %v2930_v54, %v5606_v22  ;;  %v2917_v47 = vand.u32 2147483648, %v2905_v55 }
0x1a77   :  { %v2915_v52 = vand.u32 2147483647, %v2905_v55  ;;  %vm2911_vm8 = vweird.f32 %v2905_v55  ;;  %v2895_v5 = vmul.f32 %v2894_v56, %v5595_v45 }
0x1a78   :  { %v2943_v31 = vadd.f32 0.4994258, %v2942_v10  ;;  %v2932_v50 = vadd.f32 0.18741608, %v2931_v35  ;;  %v2918_v4 = vor.u32 1.1754944e-38, %v2917_v47 }
0x1a79   :  { %vm2916_vm10 = vcmp.eq.f32.partialorder %v2915_v52, 8.507059e+37 }
0x1a7a   :  { %v2944_v32 = vmul.f32 %v2943_v31, %v5606_v22  ;;  %v2933_v2 = vmul.f32 %v2932_v50, %v5606_v22 }
0x1a7c   :  { %v3404_v9 = vpop.eup %3403  ;;  %v2945_v36 = vadd.f32 1.0, %v2944_v32  ;;  %v2934_v8 = vadd.f32 1.1283791, %v2933_v2 }
0x1a7d   :  { %v2907_v34 = vmul.f32 %v3404_v9, %v2905_v55  ;;  %vm2912_vm2 = vweird.f32 %v3404_v9 }
0x1a7e   :  { %3405 = vrcp.f32 %v2945_v36  ;;  %vm2913_vm9 = vmor %vm2911_vm8, %vm2912_vm2  ;;  %v2957_v38 = vand.u32 2147483648, %v2945_v36  ;;  %v2955_v13 = vand.u32 2147483647, %v2945_v36  ;;  %vm2951_vm15 = vweird.f32 %v2945_v36 }
0x1a7f   :  { %v2908_v39 = vsub.f32 1.0, %v2907_v34  ;;  %v2935_v48 = vmul.f32 %v2934_v8, %v5602_v61  ;;  %v3315_v34 = vld [vmem:[%s5693_s23] ss:$0 sm:$0xff] }
0x1a80   :  { %v2958_v16 = vor.u32 1.1754944e-38, %v2957_v38  ;;  %vm2956_vm0 = vcmp.eq.f32.partialorder %v2955_v13, 8.507059e+37 }
0x1a81   :  { %v2909_v42 = vmul.f32 %v3404_v9, %v2908_v39 }
0x1a83   :  { %v2910_v53 = vadd.f32 %v3404_v9, %v2909_v42 }
0x1a84   :  { %v3406_v59 = vpop.eup %3405 }
0x1a85   :  { %v2914_v63 = vsel %vm2913_vm9, %v3404_v9, %v2910_v53  ;;  %v2947_v3 = vmul.f32 %v3406_v59, %v2945_v36  ;;  %vm2952_vm14 = vweird.f32 %v3406_v59 }
0x1a86   :  { %v2919_v19 = vsel %vm2916_vm10, %v2918_v4, %v2914_v63  ;;  %vm2953_vm4 = vmor %vm2951_vm15, %vm2952_vm14 }
0x1a87   :  { %v2948_v49 = vsub.f32 1.0, %v2947_v3  ;;  %v2920_v11 = vmul.f32 %v2919_v19, %v2895_v5 }
0x1a89   :  { %v2949_v15 = vmul.f32 %v3406_v59, %v2948_v49  ;;  %v3260_v27 = vclamps-f32 %v2920_v11, 1.0 }
0x1a8b   :  { %v2950_v14 = vadd.f32 %v3406_v59, %v2949_v15  ;;  %v2963_v37 = vadd.f32 1.0, %v3260_v27 }
0x1a8d   :  { %v2954_v22 = vsel %vm2953_vm4, %v3406_v59, %v2950_v14  ;;  %v2965_v23 = vmul.f32 %v2963_v37, %v2879_v44 }
0x1a8e   :  { %v2959_v17 = vsel %vm2956_vm0, %v2958_v16, %v2954_v22 }
0x1a8f   :  { %v2960_v18 = vmul.f32 %v2959_v17, %v2935_v48 }
0x1a91   :  { %v3261_v45 = vclamps-f32 %v2960_v18, 1.0 }
0x1a93   :  { %v2964_v20 = vadd.f32 1.0, %v3261_v45 }
0x1a95   :  { %v2966_v57 = vmul.f32 %v2964_v20, %v2880_v21 }
0x1a97   :  { %v2976_v58 = vpack.c.bf16 %v2966_v57, %v2965_v23 }
0x1a99   :  { %3270 = vmatmul.msk.bf16.vlgmr.msrb.gmra.mxu0 %vm2002_vm7, %v2976_v58 }
0x1b16   :  { %v2993_v24 = vpop.f32.mrf.mxu0 }
0x1b17   :  { %v2998_v61 = vadd.f32 %v2993_v24, %v5553_v40 }
0x1b19   :  { %v3005_v46 = vadd.f32 %v3314_v51, %v2998_v61 }
0x1b1e   :  { %v2995_v25 = vpop.f32.mrf.mxu0 }
0x1b1f   :  { %v2999_v26 = vadd.f32 %v2995_v25, %v5558_v1 }
0x1b21   :  { %v3006_v43 = vadd.f32 %v3314_v51, %v2999_v26 }
0x1b23   :  { %3272 = vmatpush.msk.msrb.mxu1 %vm3011_vm1, %v3006_v43 }
0x1b25   :  { %3030 = vmatpush.msrb.mxu1 %v3005_v46 }
0x1b26   :  { %3273 = vmatmul.msk.f32.vlgmr.msrb.gmra.mxu1 %vm1219_vm12, %v3007_v0 }
0x1ba3   :  { %v3032_v62 = vpop.f32.mrf.mxu1 }
0x1ba4   :  { %v3037_v40 = vsel %vm1058_vm3, %v3032_v62, 0.0 }
0x1ba5   :  { %3038 = vadd.xlane.f32.xlu0 %v3037_v40 }
0x1c18   :  { %v3039_v55 = vpop.xlane.xlu0 %3038 }
0x1c19   :  { %v3040_v6 = vmul.f32 %v3039_v55, %v4818_v12 }
0x1c1b   :  { %v3041_v7 = vsub.f32 %v3032_v62, %v3040_v6 }
0x1c1d   :  { %v3042_v1 = vmul.f32 %v3041_v7, %v3041_v7 }
0x1c1f   :  { %v3043_v28 = vsel %vm1058_vm3, %v3042_v1, 0.0 }
0x1c20   :  { %3044 = vadd.xlane.f32.xlu1 %v3043_v28 }
0x1c93   :  { %v3045_v29 = vpop.xlane.xlu1 %3044 }
0x1c94   :  { %v3046_v10 = vmul.f32 %v3045_v29, %v4818_v12  ;;  %v3316_v12 = vld [vmem:[%s5694_s24] ss:$0 sm:$0xff] }
0x1c96   :  { %v3047_v60 = vadd.f32 1e-06, %v3046_v10 }
0x1c98   :  { %3407 = vrsqrt.f32 %v3047_v60  ;;  %vm3054_vm7 = vweird.f32 %v3047_v60 }
0x1c9e   :  { %v3408_v30 = vpop.eup %3407 }
0x1c9f   :  { %v3049_v54 = vmul.f32 %v3408_v30, %v3047_v60  ;;  %vm3055_vm12 = vweird.f32 %v3408_v30 }
0x1ca0   :  { %vm3056_vm11 = vmor %vm3054_vm7, %vm3055_vm12 }
0x1ca1   :  { %v3050_v31 = vmul.f32 %v3408_v30, %v3049_v54 }
0x1ca3   :  { %v3051_v32 = vmul.f32 0.5, %v3050_v31 }
0x1ca5   :  { %v3052_v9 = vsub.f32 1.5, %v3051_v32 }
0x1ca7   :  { %v3053_v33 = vmul.f32 %v3408_v30, %v3052_v9 }
0x1ca9   :  { %v3057_v35 = vsel %vm3056_vm11, %v3408_v30, %v3053_v33 }
0x1caa   :  { %v3058_v36 = vmul.f32 %v3057_v35, %v3041_v7 }
0x1cac   :  { %v3062_v39 = vmul.f32 %v3315_v34, %v3058_v36 }
0x1cae   :  { %v3066_v41 = vadd.f32 %v3316_v12, %v3062_v39 }
0x1cb0   :  { %3067 = vst.msk [vmem:[#allocation2] sm:$0x3] %vm1058_vm3, %v3066_v41 }
0x1cb1   :  { %3078 = dma.vmem_to_hbm [thread:$0]  %s3074_s9, 32, %s3076_s18, [#allocation3]  }
0x1cb2   :  { %3435 = dma.done.wait [#allocation3], 32  }
0x1cb3   :  { %3436 = vsyncadd [#allocation3], 4294967264 }
0x1cb4   :  { %3083 = vsyncpa [#allocation3], 1 }

</bundles_post_ra>
